<compile_context>
chip_gen: v6e
topology: v6e:2x2x1
jax: 0.10.0
libtpu: 0.0.40
codegen_flags: <defaults>
</compile_context>

<pallas_src>
import functools

import jax
import jax.numpy as jnp
from jax import lax
from jax.experimental import pallas as pl
from jax.experimental.pallas import tpu as pltpu


def _round_up(x, m):
    return ((x + m - 1) // m) * m


def _vmem_limit_bytes():
    # Generation-aware scoped-VMEM cap: ~75% of physical (=> ~96-100 MiB on v5e/v6e with
    # 128 MiB physical, ~48 MiB on v7x with 64 MiB).  Conservative 32 MiB fallback.
    try:
        info = pltpu.get_tpu_info()
        cap = getattr(info, "vmem_capacity_bytes", None)
        if cap:
            return int(min(cap * 3 // 4, 100 * 1024 * 1024))
    except Exception:
        pass
    return 32 * 1024 * 1024


_VMEM_LIMIT = _vmem_limit_bytes()


# ----------------------------------------------------------------------------
# Fused [LayerNorm] -> matmul + bias [+ ReLU] [+ residual] kernel
# ----------------------------------------------------------------------------
def _fused_linear_kernel(*refs, activation, has_ln, has_res, eps):
    x_ref, w_ref, b_ref = refs[0], refs[1], refs[2]
    idx = 3
    if has_ln:
        g_ref, beta_ref = refs[idx], refs[idx + 1]
        idx += 2
    if has_res:
        r_ref = refs[idx]
        idx += 1
    o_ref = refs[idx]

    if has_ln:
        x = x_ref[...].astype(jnp.float32)
        mean = jnp.mean(x, axis=-1, keepdims=True)
        var = jnp.mean(jnp.square(x - mean), axis=-1, keepdims=True)
        x = (x - mean) * lax.rsqrt(var + eps)
        x = x * g_ref[...] + beta_ref[...]
        xb = x.astype(jnp.bfloat16)
    else:
        xb = x_ref[...].astype(jnp.bfloat16)
    # bf16 MXU operands, f32 accumulation.
    acc = jnp.dot(xb, w_ref[...], preferred_element_type=jnp.float32)
    acc = acc + b_ref[...]
    if activation == "relu":
        acc = jnp.maximum(acc, 0.0)
    if has_res:
        acc = acc + r_ref[...].astype(jnp.float32)
    o_ref[...] = acc.astype(o_ref.dtype)


def pallas_fused_linear(x, w, b, *, activation=None, ln=None, residual=None,
                        eps=1e-5, out_dtype=jnp.bfloat16):
    """y = [LN(x)] @ w + b [relu] [+ residual].  x:(M,K), w:(K,N) -> (M,N) out_dtype.

    Output N is auto-padded to a multiple of 128 (lane-dense vst), rows are tiled and the
    row-grid axis marked 'parallel' so HBM DMA overlaps MXU compute.
    """
    M, K = x.shape
    N = w.shape[1]
    Np = _round_up(N, 128)

    x_bytes = jnp.dtype(x.dtype).itemsize
    o_bytes = jnp.dtype(out_dtype).itemsize
    r_bytes = jnp.dtype(residual.dtype).itemsize if residual is not None else 0
    if M <= 1024:
        tm = _round_up(M, 8)
    else:
        per_row = 2 * (K * x_bytes + Np * (o_bytes + r_bytes))  # double-buffered streams
        tm = 2048
        while tm > 256 and tm * per_row > _VMEM_LIMIT // 2:
            tm //= 2
    Mp = _round_up(M, tm)

    if Mp != M:
        x = jnp.pad(x, ((0, Mp - M), (0, 0)))
    if Np != N:
        w = jnp.pad(w, ((0, 0), (0, Np - N)))
        b = jnp.pad(b, (0, Np - N))
    if residual is not None and (Mp != M or Np != N):
        residual = jnp.pad(residual, ((0, Mp - M), (0, Np - N)))

    args = [x, w.astype(jnp.bfloat16), b.reshape(1, Np).astype(jnp.float32)]
    in_specs = [
        pl.BlockSpec((tm, K), lambda i: (i, 0)),
        pl.BlockSpec((K, Np), lambda i: (0, 0)),
        pl.BlockSpec((1, Np), lambda i: (0, 0)),
    ]
    has_ln = ln is not None
    if has_ln:
        g, beta = ln
        args += [g.reshape(1, K).astype(jnp.float32),
                 beta.reshape(1, K).astype(jnp.float32)]
        in_specs += [pl.BlockSpec((1, K), lambda i: (0, 0)),
                     pl.BlockSpec((1, K), lambda i: (0, 0))]
    has_res = residual is not None
    if has_res:
        args.append(residual)
        in_specs.append(pl.BlockSpec((tm, Np), lambda i: (i, 0)))

    out = pl.pallas_call(
        functools.partial(_fused_linear_kernel, activation=activation,
                          has_ln=has_ln, has_res=has_res, eps=eps),
        out_shape=jax.ShapeDtypeStruct((Mp, Np), out_dtype),
        grid=(Mp // tm,),
        in_specs=in_specs,
        out_specs=pl.BlockSpec((tm, Np), lambda i: (i, 0)),
        compiler_params=pltpu.CompilerParams(
            dimension_semantics=("parallel",),
            vmem_limit_bytes=_VMEM_LIMIT),
    )(*args)
    if Mp != M or Np != N:
        out = out[:M, :N]
    return out


# ----------------------------------------------------------------------------
# Fused multi-scale Conv1d(k=3,5,7)+ReLU: streamed window, 7 shifted dots (no im2col)
# ----------------------------------------------------------------------------
def _conv_kernel(x_ref, w_ref, b_ref, o_ref):
    Tt = o_ref.shape[0]
    x = x_ref[...]                                    # (T+6, Cin) bf16, streamed once
    acc = jnp.zeros(o_ref.shape, jnp.float32)
    for j in range(7):                                # static unroll of the 7 taps
        acc += jnp.dot(x[j:j + Tt, :], w_ref[j], preferred_element_type=jnp.float32)
    acc = acc + b_ref[...]
    o_ref[...] = jnp.maximum(acc, 0.0).astype(o_ref.dtype)


def fused_multiscale_conv(x, params, E):
    """x:(B,T,Cin) bf16 channels-last; PyTorch (Cout,Cin,k) weights; 'same' padding."""
    B, T, Cin = x.shape

    def pad_taps(w, k):
        off = (7 - k) // 2            # align smaller kernels inside the 7-tap window
        return jnp.pad(w, ((0, 0), (0, 0), (off, 7 - k - off)))

    w_all = jnp.concatenate([pad_taps(params["conv1_w"], 3),
                             pad_taps(params["conv2_w"], 5),
                             pad_taps(params["conv3_w"], 7)], axis=0)      # (Cout, Cin, 7)
    b_all = jnp.concatenate([params["conv1_b"], params["conv2_b"], params["conv3_b"]])
    Cout = w_all.shape[0]
    Coutp = _round_up(Cout, 128)                                           # lane-dense store
    wk = jnp.transpose(w_all, (2, 1, 0))                                   # (7, Cin, Cout)
    wk = jnp.pad(wk, ((0, 0), (0, 0), (0, Coutp - Cout))).astype(jnp.bfloat16)
    bk = jnp.pad(b_all, (0, Coutp - Cout)).reshape(1, Coutp).astype(jnp.float32)

    xp = jnp.pad(x, ((0, 0), (3, 3), (0, 0))).astype(jnp.bfloat16)         # (B, T+6, Cin)

    # TODO(synk): for very long sequences also tile the T axis with a 6-row halo.
    out = pl.pallas_call(
        _conv_kernel,
        out_shape=jax.ShapeDtypeStruct((B, T, Coutp), jnp.bfloat16),
        grid=(B,),
        in_specs=[pl.BlockSpec((None, T + 6, Cin), lambda b: (b, 0, 0)),
                  pl.BlockSpec((7, Cin, Coutp), lambda b: (0, 0, 0)),
                  pl.BlockSpec((1, Coutp), lambda b: (0, 0))],
        out_specs=pl.BlockSpec((None, T, Coutp), lambda b: (b, 0, 0)),
        compiler_params=pltpu.CompilerParams(
            dimension_semantics=("parallel",),
            vmem_limit_bytes=_VMEM_LIMIT),
    )(xp, wk, bk)
    return out[:, :, :Cout]


# ----------------------------------------------------------------------------
# Bidirectional LSTM: both directions fused into one recurrence, time-tiled grid
# ----------------------------------------------------------------------------
def _lstm_kernel(xg_ref, whh_ref, out_ref, h_ref, c_ref, *, Gp, TT, unroll):
    # One grid step = TT timesteps for BOTH directions (gates packed along lanes).
    # h/c live in VMEM scratch across grid steps; xg of the next chunk is DMA'd while
    # this chunk's recurrence runs.
    @pl.when(pl.program_id(0) == 0)
    def _():
        h_ref[...] = jnp.zeros_like(h_ref)
        c_ref[...] = jnp.zeros_like(c_ref)

    whh = whh_ref[...]                                   # (Gp, 4Gp) f32, stays resident

    def step(t, carry):
        h, c = carry
        gates = xg_ref[t].astype(jnp.float32) + jnp.dot(
            h, whh, preferred_element_type=jnp.float32)  # (Bp, 4Gp) f32
        # Gate chunks are Gp-wide (multiple of 128) -> lane-aligned slices, no shuffles.
        i = jax.nn.sigmoid(gates[:, 0 * Gp:1 * Gp])
        f = jax.nn.sigmoid(gates[:, 1 * Gp:2 * Gp])
        g = jnp.tanh(gates[:, 2 * Gp:3 * Gp])
        o = jax.nn.sigmoid(gates[:, 3 * Gp:4 * Gp])
        c_new = f * c + i * g
        h_new = o * jnp.tanh(c_new)
        out_ref[t] = h_new.astype(out_ref.dtype)
        return h_new, c_new

    h, c = lax.fori_loop(0, TT, step, (h_ref[...], c_ref[...]), unroll=unroll)
    h_ref[...] = h
    c_ref[...] = c


def pallas_bilstm_layer(x, layer_params, H, *, time_tile=128):
    """x:(B,T,in_dim) -> (B,T,2H) bf16.  Fwd+bwd share one recurrence: per gate the
    lanes are [fwd H | bwd H | pad to 128-multiple], w_hh is block-diagonal."""
    B, T, in_dim = x.shape
    fwd, bwd = layer_params["fwd"], layer_params["bwd"]
    Gp = _round_up(2 * H, 128)                       # per-gate lane width (both directions)

    def gate_cols(wf, wb):                           # (in,4H),(in,4H) -> (in,4Gp)
        cols = []
        for k in range(4):
            blk = jnp.concatenate([wf[:, k * H:(k + 1) * H],
                                   wb[:, k * H:(k + 1) * H]], axis=1)
            cols.append(jnp.pad(blk, ((0, 0), (0, Gp - 2 * H))))
        return jnp.concatenate(cols, axis=1)

    w_ih = gate_cols(fwd["w_ih"], bwd["w_ih"])                               # (in_dim, 4Gp)
    b_ih = gate_cols((fwd["b_ih"] + fwd["b_hh"]).reshape(1, -1),
                     (bwd["b_ih"] + bwd["b_hh"]).reshape(1, -1)).reshape(-1)  # (4Gp,)

    def whh_block(wf, wb):                           # (H,4H),(H,4H) -> (Gp,4Gp) block-diag
        cols = []
        for k in range(4):
            f = wf[:, k * H:(k + 1) * H]
            b_ = wb[:, k * H:(k + 1) * H]
            top = jnp.concatenate([f, jnp.zeros_like(f)], axis=1)
            bot = jnp.concatenate([jnp.zeros_like(b_), b_], axis=1)
            blk = jnp.concatenate([top, bot], axis=0)                        # (2H, 2H)
            cols.append(jnp.pad(blk, ((0, Gp - 2 * H), (0, Gp - 2 * H))))
        return jnp.concatenate(cols, axis=1)

    # Recurrent weights / state stay f32 for parity with PyTorch's f32 LSTM.
    whh = whh_block(fwd["w_hh"], bwd["w_hh"]).astype(jnp.float32)            # (Gp, 4Gp)

    # Input projection for both directions in one lane-dense matmul, bf16 writeback.
    xg = pallas_fused_linear(x.reshape(B * T, in_dim), w_ih, b_ih,
                             out_dtype=jnp.bfloat16)                         # (B*T, 4Gp)
    xg = xg.reshape(B, T, 4, Gp)
    # Forward lanes [0:H) read time t; backward lanes [H:2H) read time T-1-t.
    lane = jnp.arange(Gp)
    is_f = (lane < H)[None, None, None, :]
    is_b = ((lane >= H) & (lane < 2 * H))[None, None, None, :]
    xg_stream = jnp.where(is_f, xg, jnp.where(is_b, jnp.flip(xg, axis=1), 0))
    xg_stream = xg_stream.reshape(B, T, 4 * Gp).transpose(1, 0, 2)           # (T, B, 4Gp)

    Bp = _round_up(max(B, 8), 8)                     # sublane-align batch rows
    TT = T if T <= time_tile else time_tile
    Tp = _round_up(T, TT)
    xg_stream = jnp.pad(xg_stream,
                        ((0, Tp - T), (0, Bp - B), (0, 0))).astype(jnp.bfloat16)

    hs = pl.pallas_call(
        functools.partial(_lstm_kernel, Gp=Gp, TT=TT,
                          unroll=TT if TT <= 16 else 8),
        out_shape=jax.ShapeDtypeStruct((Tp, Bp, Gp), jnp.bfloat16),
        grid=(Tp // TT,),
        in_specs=[pl.BlockSpec((TT, Bp, 4 * Gp), lambda t: (t, 0, 0)),
                  pl.BlockSpec((Gp, 4 * Gp), lambda t: (0, 0))],
        out_specs=pl.BlockSpec((TT, Bp, Gp), lambda t: (t, 0, 0)),
        scratch_shapes=[pltpu.VMEM((Bp, Gp), jnp.float32),
                        pltpu.VMEM((Bp, Gp), jnp.float32)],
        compiler_params=pltpu.CompilerParams(
            dimension_semantics=("arbitrary",),      # time recurrence is sequential
            vmem_limit_bytes=_VMEM_LIMIT),
    )(xg_stream, whh)

    h_f = hs[:T, :B, 0:H].transpose(1, 0, 2)                                  # (B,T,H)
    h_b = jnp.flip(hs[:T, :B, H:2 * H], axis=0).transpose(1, 0, 2)            # (B,T,H)
    return jnp.concatenate([h_f, h_b], axis=-1)                               # (B,T,2H) bf16


# ----------------------------------------------------------------------------
# Multi-head self-attention: one (batch, head) pair per grid step, bf16 in/out
# ----------------------------------------------------------------------------
def _attn_kernel(q_ref, k_ref, v_ref, o_ref, *, scale):
    q = q_ref[...]                                   # (T, hd) bf16
    k = k_ref[...]
    v = v_ref[...]
    s = jnp.dot(q, k.T, preferred_element_type=jnp.float32) * scale          # (T, T)
    s = s - jnp.max(s, axis=-1, keepdims=True)
    p = jnp.exp(s)
    p = p * pl.reciprocal(jnp.sum(p, axis=-1, keepdims=True), approx=True)   # EUP slot
    out = jnp.dot(p.astype(jnp.bfloat16), v, preferred_element_type=jnp.float32)
    o_ref[...] = out.astype(o_ref.dtype)


def pallas_attention(q, k, v, scale):
    """q,k,v: (B, num_heads, T, hd) bf16 -> (B, num_heads, T, hd) bf16."""
    B, nh, T, hd = q.shape
    spec = pl.BlockSpec((None, None, T, hd), lambda b, h: (b, h, 0, 0))
    # TODO(synk): for long sequences add key-axis tiling with online softmax (flash).
    return pl.pallas_call(
        functools.partial(_attn_kernel, scale=scale),
        out_shape=jax.ShapeDtypeStruct((B, nh, T, hd), jnp.bfloat16),
        grid=(B, nh),
        in_specs=[spec, spec, spec],
        out_specs=spec,
        compiler_params=pltpu.CompilerParams(
            dimension_semantics=("parallel", "parallel"),
            vmem_limit_bytes=_VMEM_LIMIT),
    )(q, k, v)


# ----------------------------------------------------------------------------
# CRF Viterbi decode (glue) and parameter init
# ----------------------------------------------------------------------------
def crf_decode(emissions, start_trans, trans, end_trans):
    """Viterbi decode (no mask == all positions valid), matches torchcrf.decode."""
    B, T, K = emissions.shape
    em = jnp.transpose(emissions, (1, 0, 2))  # (T,B,K)
    score0 = start_trans[None, :] + em[0]

    def fwd(score, e_t):
        cand = score[:, :, None] + trans[None, :, :] + e_t[:, None, :]  # (B,Kprev,Knext)
        return jnp.max(cand, axis=1), jnp.argmax(cand, axis=1)

    final_score, history = lax.scan(fwd, score0, em[1:])  # history: (T-1,B,K)
    final_score = final_score + end_trans[None, :]
    last_tag = jnp.argmax(final_score, axis=-1).astype(jnp.int32)  # (B,)

    def back(tag, hist_t):
        prev = hist_t[jnp.arange(tag.shape[0]), tag].astype(jnp.int32)
        return prev, prev

    _, tags_front = lax.scan(back, last_tag, history, reverse=True)  # (T-1,B)
    tags = jnp.concatenate([tags_front, last_tag[None, :]], axis=0)  # (T,B)
    return tags.T  # (B,T)


def init_params(key, vocab_size, tag_size, E, H, F, num_layers):
    keys = iter(jax.random.split(key, 128))

    def nrm(shape, scale=0.1):
        return jax.random.normal(next(keys), shape, jnp.float32) * scale

    p = {}
    emb = nrm((vocab_size, E))
    p["embedding"] = emb.at[0].set(0.0)  # padding_idx=0
    # feature_proj: Linear(F,E) + BatchNorm1d(E) (eval) + ReLU
    p["fp_w"] = nrm((F, E))
    p["fp_b"] = nrm((E,))
    p["bn_gamma"] = 1.0 + nrm((E,))
    p["bn_beta"] = nrm((E,))
    p["bn_mean"] = nrm((E,))
    p["bn_var"] = jnp.abs(nrm((E,))) + 1.0
    for name, cout, k in (("conv1", E // 2, 3), ("conv2", E // 4, 5), ("conv3", E // 4, 7)):
        p[name + "_w"] = nrm((cout, 2 * E, k))
        p[name + "_b"] = nrm((cout,))
    lstm = []
    for l in range(num_layers):
        in_dim = E if l == 0 else 2 * H
        layer = {}
        for d in ("fwd", "bwd"):
            layer[d] = dict(w_ih=nrm((in_dim, 4 * H)), w_hh=nrm((H, 4 * H)),
                            b_ih=nrm((4 * H,)), b_hh=nrm((4 * H,)))
        lstm.append(layer)
    p["lstm"] = lstm
    D = 2 * H
    for n in ("ln1", "ln2", "ln3"):
        p[n + "_g"] = 1.0 + nrm((D,))
        p[n + "_b"] = nrm((D,))
    p["attn_in_w"] = nrm((D, 3 * D))
    p["attn_in_b"] = nrm((3 * D,))
    p["attn_out_w"] = nrm((D, D))
    p["attn_out_b"] = nrm((D,))
    p["ffn_w1"] = nrm((D, 4 * H))
    p["ffn_b1"] = nrm((4 * H,))
    p["ffn_w2"] = nrm((4 * H, D))
    p["ffn_b2"] = nrm((D,))
    p["h2t_w1"] = nrm((D, H))
    p["h2t_b1"] = nrm((H,))
    p["h2t_w2"] = nrm((H, tag_size))
    p["h2t_b2"] = nrm((tag_size,))
    p["crf_start"] = jax.random.uniform(next(keys), (tag_size,), minval=-0.1, maxval=0.1)
    p["crf_end"] = jax.random.uniform(next(keys), (tag_size,), minval=-0.1, maxval=0.1)
    p["crf_trans"] = jax.random.uniform(next(keys), (tag_size, tag_size), minval=-0.1, maxval=0.1)
    return p


# ----------------------------------------------------------------------------
# Forward pass (eval mode, tags=None, mask=None -> CRF decode path)
# ----------------------------------------------------------------------------
def forward(params, char_indices, features, *, E, H, tag_size, num_layers, num_heads=8):
    B, T = char_indices.shape
    F_dim = features.shape[-1]
    D = 2 * H

    # embedding gather (glue)
    char_embeds = jnp.take(params["embedding"], char_indices, axis=0)  # (B,T,E)

    # feature_proj: Linear + BatchNorm1d(eval) + ReLU, BN folded into the matmul
    inv = params["bn_gamma"] / jnp.sqrt(params["bn_var"] + 1e-5)
    fp_w = params["fp_w"] * inv[None, :]
    fp_b = (params["fp_b"] - params["bn_mean"]) * inv + params["bn_beta"]
    feat_emb = pallas_fused_linear(features.reshape(B * T, F_dim), fp_w, fp_b,
                                   activation="relu",
                                   out_dtype=jnp.bfloat16).reshape(B, T, E)

    combined = jnp.concatenate([char_embeds.astype(jnp.bfloat16), feat_emb], axis=-1)
    # dropout -> identity (eval)

    # multi-scale convs: streamed window conv kernel; channel sum == E -> no pooling branch
    conv_out = fused_multiscale_conv(combined, params, E)  # (B,T,E) bf16

    # bidirectional LSTM stack (inter-layer dropout is identity in eval)
    x = conv_out
    for l in range(num_layers):
        x = pallas_bilstm_layer(x, params["lstm"][l], H)
    lstm_out = x  # (B,T,D) bf16

    flat = lambda a: a.reshape(B * T, D)
    hd = D // num_heads

    # layer_norm1 fused into the QKV projection (bf16 out); one bf16 head-split transpose
    qkv = pallas_fused_linear(flat(lstm_out), params["attn_in_w"], params["attn_in_b"],
                              ln=(params["ln1_g"], params["ln1_b"]),
                              out_dtype=jnp.bfloat16)                       # (B*T,3D) bf16
    qkv = qkv.reshape(B, T, 3, num_heads, hd).transpose(2, 0, 3, 1, 4)      # (3,B,nh,T,hd)
    attn = pallas_attention(qkv[0], qkv[1], qkv[2], scale=1.0 / (hd ** 0.5))
    attn = attn.transpose(0, 2, 1, 3).reshape(B * T, D)                     # (B*T,D) bf16

    # output projection with fused residual add
    lstm_out = pallas_fused_linear(attn, params["attn_out_w"], params["attn_out_b"],
                                   residual=flat(lstm_out),
                                   out_dtype=jnp.bfloat16).reshape(B, T, D)

    # layer_norm2 fused into FFN up-proj; residual fused into FFN down-proj
    h1 = pallas_fused_linear(flat(lstm_out), params["ffn_w1"], params["ffn_b1"],
                             activation="relu", ln=(params["ln2_g"], params["ln2_b"]),
                             out_dtype=jnp.bfloat16)
    lstm_out = pallas_fused_linear(h1, params["ffn_w2"], params["ffn_b2"],
                                   residual=flat(lstm_out),
                                   out_dtype=jnp.bfloat16).reshape(B, T, D)

    # hidden2tag: LayerNorm fused into first Linear; emissions kept f32
    t1 = pallas_fused_linear(flat(lstm_out), params["h2t_w1"], params["h2t_b1"],
                             activation="relu", ln=(params["ln3_g"], params["ln3_b"]),
                             out_dtype=jnp.bfloat16)
    emissions = pallas_fused_linear(t1, params["h2t_w2"], params["h2t_b2"],
                                    out_dtype=jnp.float32).reshape(B, T, tag_size)

    # TODO(synk): CRF Viterbi backtrace is a tiny sequential scalar loop -> plain JAX glue.
    best_tags = crf_decode(emissions, params["crf_start"], params["crf_trans"],
                           params["crf_end"])
    return best_tags, emissions


# ----------------------------------------------------------------------------
if __name__ == "__main__":
    VOCAB, TAGS = 50, 8
    E, H, F, NL = 64, 32, 16, 1     # embedding_dim, hidden_dim, feature_dim, num_layers
    B, T = 2, 8

    key = jax.random.PRNGKey(0)
    kp, kc, kf = jax.random.split(key, 3)
    params = init_params(kp, VOCAB, TAGS, E, H, F, NL)
    char_indices = jax.random.randint(kc, (B, T), 1, VOCAB, dtype=jnp.int32)
    features = jax.random.normal(kf, (B, T, F), jnp.float32)

    fwd = jax.jit(functools.partial(forward, E=E, H=H, tag_size=TAGS, num_layers=NL))
    best_tags, emissions = fwd(params, char_indices, features)
    jax.block_until_ready((best_tags, emissions))
    assert best_tags.shape == (B, T) and emissions.shape == (B, T, TAGS)
    print("KERNEL_OK")
</pallas_src>

<mosaic_0001>
module attributes {stable_mosaic.version = 11 : i64} {
  func.func @_fused_linear_kernel(%arg0: i32, %arg1: memref<16x16xf32, #tpu.memory_space<vmem>>, %arg2: memref<16x128xbf16, #tpu.memory_space<vmem>>, %arg3: memref<1x128xf32, #tpu.memory_space<vmem>>, %arg4: memref<16x128xbf16, #tpu.memory_space<vmem>>) attributes {dimension_semantics = [#tpu.dimension_semantics<parallel>], iteration_bounds = array<i64: 1>, scalar_prefetch = 0 : i64, scratch_operands = 0 : i64, tpu.core_type = #tpu.core_type<tc>, window_params = [{transform_indices = @transform_0, window_bounds = array<i64: 16, 16>}, {pipeline_mode = #tpu.pipeline_mode<synchronous>, transform_indices = @transform_1, window_bounds = array<i64: 16, 128>}, {pipeline_mode = #tpu.pipeline_mode<synchronous>, transform_indices = @transform_2, window_bounds = array<i64: 1, 128>}, {transform_indices = @transform_3, window_bounds = array<i64: 16, 128>}]} {
    %c0 = arith.constant 0 : index
    %c0_0 = arith.constant 0 : index
    %0 = vector.load %arg1[%c0, %c0_0] : memref<16x16xf32, #tpu.memory_space<vmem>>, vector<16x16xf32>
    %1 = arith.truncf %0 : vector<16x16xf32> to vector<16x16xbf16>
    %c0_1 = arith.constant 0 : index
    %c0_2 = arith.constant 0 : index
    %2 = vector.load %arg2[%c0_1, %c0_2] : memref<16x128xbf16, #tpu.memory_space<vmem>>, vector<16x128xbf16>
    %cst = arith.constant dense<0.000000e+00> : vector<16x128xf32>
    %3 = tpu.matmul %1, %2, %cst {dimension_numbers = #tpu.dot_dimension_numbers<[1], [0], [0], [1], [0, 0, 1, 1], [], []>} : vector<16x16xbf16>, vector<16x128xbf16>, vector<16x128xf32> -> vector<16x128xf32>
    %c0_3 = arith.constant 0 : index
    %c0_4 = arith.constant 0 : index
    %4 = vector.load %arg3[%c0_3, %c0_4] : memref<1x128xf32, #tpu.memory_space<vmem>>, vector<1x128xf32>
    %5 = vector.broadcast %4 : vector<1x128xf32> to vector<16x128xf32>
    %6 = arith.addf %3, %5 : vector<16x128xf32>
    %cst_5 = arith.constant 0.000000e+00 : f32
    %7 = vector.broadcast %cst_5 : f32 to vector<16x128xf32>
    %8 = arith.maximumf %6, %7 : vector<16x128xf32>
    %9 = arith.truncf %8 : vector<16x128xf32> to vector<16x128xbf16>
    %c0_6 = arith.constant 0 : index
    %c0_7 = arith.constant 0 : index
    %10 = vector.load %arg4[%c0_6, %c0_7] : memref<16x128xbf16, #tpu.memory_space<vmem>>, vector<16x128xbf16>
    tpu.vector_store %arg4[%c0_6, %c0_7], %9 {strides = array<i32>} : memref<16x128xbf16, #tpu.memory_space<vmem>>, vector<16x128xbf16>,
    return
  }
  func.func @transform_0(%arg0: i32) -> (i32, i32) {
    %c0_i32 = arith.constant 0 : i32
    %c0_i32_0 = arith.constant 0 : i32
    return %arg0, %c0_i32 : i32, i32
  }
  func.func @transform_1(%arg0: i32) -> (i32, i32) {
    %c0_i32 = arith.constant 0 : i32
    %c0_i32_0 = arith.constant 0 : i32
    %c0_i32_1 = arith.constant 0 : i32
    return %c0_i32, %c0_i32_0 : i32, i32
  }
  func.func @transform_2(%arg0: i32) -> (i32, i32) {
    %c0_i32 = arith.constant 0 : i32
    %c0_i32_0 = arith.constant 0 : i32
    %c0_i32_1 = arith.constant 0 : i32
    return %c0_i32, %c0_i32_0 : i32, i32
  }
  func.func @transform_3(%arg0: i32) -> (i32, i32) {
    %c0_i32 = arith.constant 0 : i32
    %c0_i32_0 = arith.constant 0 : i32
    return %arg0, %c0_i32 : i32, i32
  }
}

module attributes {stable_mosaic.version = 11 : i64} {
  func.func @_conv_kernel(%arg0: i32, %arg1: memref<1x14x128xbf16, #tpu.memory_space<vmem>>, %arg2: memref<7x128x128xbf16, #tpu.memory_space<vmem>>, %arg3: memref<1x128xf32, #tpu.memory_space<vmem>>, %arg4: memref<1x8x128xbf16, #tpu.memory_space<vmem>>) attributes {dimension_semantics = [#tpu.dimension_semantics<parallel>], iteration_bounds = array<i64: 2>, scalar_prefetch = 0 : i64, scratch_operands = 0 : i64, tpu.core_type = #tpu.core_type<tc>, window_params = [{transform_indices = @transform_0, window_bounds = array<i64: 1, 14, 128>}, {pipeline_mode = #tpu.pipeline_mode<synchronous>, transform_indices = @transform_1, window_bounds = array<i64: 7, 128, 128>}, {pipeline_mode = #tpu.pipeline_mode<synchronous>, transform_indices = @transform_2, window_bounds = array<i64: 1, 128>}, {transform_indices = @transform_3, window_bounds = array<i64: 1, 8, 128>}]} {
    %c0 = arith.constant 0 : index
    %c0_0 = arith.constant 0 : index
    %c0_1 = arith.constant 0 : index
    %0 = vector.load %arg1[%c0, %c0_0, %c0_1] : memref<1x14x128xbf16, #tpu.memory_space<vmem>>, vector<1x14x128xbf16>
    %1 = vector.shape_cast %0 : vector<1x14x128xbf16> to vector<14x128xbf16>
    %cst = arith.constant 0.000000e+00 : f32
    %2 = vector.broadcast %cst : f32 to vector<8x128xf32>
    %3 = vector.extract_strided_slice %1 {offsets = [0, 0], sizes = [8, 128], strides = [1, 1]} : vector<14x128xbf16> to vector<8x128xbf16>
    %c0_2 = arith.constant 0 : index
    %c0_3 = arith.constant 0 : index
    %c0_4 = arith.constant 0 : index
    %4 = vector.load %arg2[%c0_2, %c0_3, %c0_4] : memref<7x128x128xbf16, #tpu.memory_space<vmem>>, vector<1x128x128xbf16>
    %5 = vector.shape_cast %4 : vector<1x128x128xbf16> to vector<128x128xbf16>
    %cst_5 = arith.constant dense<0.000000e+00> : vector<8x128xf32>
    %6 = tpu.matmul %3, %5, %cst_5 {dimension_numbers = #tpu.dot_dimension_numbers<[1], [0], [0], [1], [0, 0, 1, 1], [], []>} : vector<8x128xbf16>, vector<128x128xbf16>, vector<8x128xf32> -> vector<8x128xf32>
    %7 = arith.addf %2, %6 : vector<8x128xf32>
    %8 = vector.extract_strided_slice %1 {offsets = [1, 0], sizes = [8, 128], strides = [1, 1]} : vector<14x128xbf16> to vector<8x128xbf16>
    %c1 = arith.constant 1 : index
    %c0_6 = arith.constant 0 : index
    %c0_7 = arith.constant 0 : index
    %9 = vector.load %arg2[%c1, %c0_6, %c0_7] : memref<7x128x128xbf16, #tpu.memory_space<vmem>>, vector<1x128x128xbf16>
    %10 = vector.shape_cast %9 : vector<1x128x128xbf16> to vector<128x128xbf16>
    %cst_8 = arith.constant dense<0.000000e+00> : vector<8x128xf32>
    %11 = tpu.matmul %8, %10, %cst_8 {dimension_numbers = #tpu.dot_dimension_numbers<[1], [0], [0], [1], [0, 0, 1, 1], [], []>} : vector<8x128xbf16>, vector<128x128xbf16>, vector<8x128xf32> -> vector<8x128xf32>
    %12 = arith.addf %7, %11 : vector<8x128xf32>
    %13 = vector.extract_strided_slice %1 {offsets = [2, 0], sizes = [8, 128], strides = [1, 1]} : vector<14x128xbf16> to vector<8x128xbf16>
    %c2 = arith.constant 2 : index
    %c0_9 = arith.constant 0 : index
    %c0_10 = arith.constant 0 : index
    %14 = vector.load %arg2[%c2, %c0_9, %c0_10] : memref<7x128x128xbf16, #tpu.memory_space<vmem>>, vector<1x128x128xbf16>
    %15 = vector.shape_cast %14 : vector<1x128x128xbf16> to vector<128x128xbf16>
    %cst_11 = arith.constant dense<0.000000e+00> : vector<8x128xf32>
    %16 = tpu.matmul %13, %15, %cst_11 {dimension_numbers = #tpu.dot_dimension_numbers<[1], [0], [0], [1], [0, 0, 1, 1], [], []>} : vector<8x128xbf16>, vector<128x128xbf16>, vector<8x128xf32> -> vector<8x128xf32>
    %17 = arith.addf %12, %16 : vector<8x128xf32>
    %18 = vector.extract_strided_slice %1 {offsets = [3, 0], sizes = [8, 128], strides = [1, 1]} : vector<14x128xbf16> to vector<8x128xbf16>
    %c3 = arith.constant 3 : index
    %c0_12 = arith.constant 0 : index
    %c0_13 = arith.constant 0 : index
    %19 = vector.load %arg2[%c3, %c0_12, %c0_13] : memref<7x128x128xbf16, #tpu.memory_space<vmem>>, vector<1x128x128xbf16>
    %20 = vector.shape_cast %19 : vector<1x128x128xbf16> to vector<128x128xbf16>
    %cst_14 = arith.constant dense<0.000000e+00> : vector<8x128xf32>
    %21 = tpu.matmul %18, %20, %cst_14 {dimension_numbers = #tpu.dot_dimension_numbers<[1], [0], [0], [1], [0, 0, 1, 1], [], []>} : vector<8x128xbf16>, vector<128x128xbf16>, vector<8x128xf32> -> vector<8x128xf32>
    %22 = arith.addf %17, %21 : vector<8x128xf32>
    %23 = vector.extract_strided_slice %1 {offsets = [4, 0], sizes = [8, 128], strides = [1, 1]} : vector<14x128xbf16> to vector<8x128xbf16>
    %c4 = arith.constant 4 : index
    %c0_15 = arith.constant 0 : index
    %c0_16 = arith.constant 0 : index
    %24 = vector.load %arg2[%c4, %c0_15, %c0_16] : memref<7x128x128xbf16, #tpu.memory_space<vmem>>, vector<1x128x128xbf16>
    %25 = vector.shape_cast %24 : vector<1x128x128xbf16> to vector<128x128xbf16>
    %cst_17 = arith.constant dense<0.000000e+00> : vector<8x128xf32>
    %26 = tpu.matmul %23, %25, %cst_17 {dimension_numbers = #tpu.dot_dimension_numbers<[1], [0], [0], [1], [0, 0, 1, 1], [], []>} : vector<8x128xbf16>, vector<128x128xbf16>, vector<8x128xf32> -> vector<8x128xf32>
    %27 = arith.addf %22, %26 : vector<8x128xf32>
    %28 = vector.extract_strided_slice %1 {offsets = [5, 0], sizes = [8, 128], strides = [1, 1]} : vector<14x128xbf16> to vector<8x128xbf16>
    %c5 = arith.constant 5 : index
    %c0_18 = arith.constant 0 : index
    %c0_19 = arith.constant 0 : index
    %29 = vector.load %arg2[%c5, %c0_18, %c0_19] : memref<7x128x128xbf16, #tpu.memory_space<vmem>>, vector<1x128x128xbf16>
    %30 = vector.shape_cast %29 : vector<1x128x128xbf16> to vector<128x128xbf16>
    %cst_20 = arith.constant dense<0.000000e+00> : vector<8x128xf32>
    %31 = tpu.matmul %28, %30, %cst_20 {dimension_numbers = #tpu.dot_dimension_numbers<[1], [0], [0], [1], [0, 0, 1, 1], [], []>} : vector<8x128xbf16>, vector<128x128xbf16>, vector<8x128xf32> -> vector<8x128xf32>
    %32 = arith.addf %27, %31 : vector<8x128xf32>
    %33 = vector.extract_strided_slice %1 {offsets = [6, 0], sizes = [8, 128], strides = [1, 1]} : vector<14x128xbf16> to vector<8x128xbf16>
    %c6 = arith.constant 6 : index
    %c0_21 = arith.constant 0 : index
    %c0_22 = arith.constant 0 : index
    %34 = vector.load %arg2[%c6, %c0_21, %c0_22] : memref<7x128x128xbf16, #tpu.memory_space<vmem>>, vector<1x128x128xbf16>
    %35 = vector.shape_cast %34 : vector<1x128x128xbf16> to vector<128x128xbf16>
    %cst_23 = arith.constant dense<0.000000e+00> : vector<8x128xf32>
    %36 = tpu.matmul %33, %35, %cst_23 {dimension_numbers = #tpu.dot_dimension_numbers<[1], [0], [0], [1], [0, 0, 1, 1], [], []>} : vector<8x128xbf16>, vector<128x128xbf16>, vector<8x128xf32> -> vector<8x128xf32>
    %37 = arith.addf %32, %36 : vector<8x128xf32>
    %c0_24 = arith.constant 0 : index
    %c0_25 = arith.constant 0 : index
    %38 = vector.load %arg3[%c0_24, %c0_25] : memref<1x128xf32, #tpu.memory_space<vmem>>, vector<1x128xf32>
    %39 = vector.broadcast %38 : vector<1x128xf32> to vector<8x128xf32>
    %40 = arith.addf %37, %39 : vector<8x128xf32>
    %cst_26 = arith.constant 0.000000e+00 : f32
    %41 = vector.broadcast %cst_26 : f32 to vector<8x128xf32>
    %42 = arith.maximumf %40, %41 : vector<8x128xf32>
    %43 = arith.truncf %42 : vector<8x128xf32> to vector<8x128xbf16>
    %c0_27 = arith.constant 0 : index
    %c0_28 = arith.constant 0 : index
    %c0_29 = arith.constant 0 : index
    %44 = vector.load %arg4[%c0_27, %c0_28, %c0_29] : memref<1x8x128xbf16, #tpu.memory_space<vmem>>, vector<1x8x128xbf16>
    %45 = vector.shape_cast %44 : vector<1x8x128xbf16> to vector<8x128xbf16>
    %46 = vector.shape_cast %43 : vector<8x128xbf16> to vector<1x8x128xbf16>
    tpu.vector_store %arg4[%c0_27, %c0_28, %c0_29], %46 {strides = array<i32>} : memref<1x8x128xbf16, #tpu.memory_space<vmem>>, vector<1x8x128xbf16>,
    return
  }
  func.func @transform_0(%arg0: i32) -> (i32, i32, i32) {
    %c0_i32 = arith.constant 0 : i32
    %c0_i32_0 = arith.constant 0 : i32
    %c0_i32_1 = arith.constant 0 : i32
    return %arg0, %c0_i32, %c0_i32_0 : i32, i32, i32
  }
  func.func @transform_1(%arg0: i32) -> (i32, i32, i32) {
    %c0_i32 = arith.constant 0 : i32
    %c0_i32_0 = arith.constant 0 : i32
    %c0_i32_1 = arith.constant 0 : i32
    %c0_i32_2 = arith.constant 0 : i32
    return %c0_i32, %c0_i32_0, %c0_i32_1 : i32, i32, i32
  }
  func.func @transform_2(%arg0: i32) -> (i32, i32) {
    %c0_i32 = arith.constant 0 : i32
    %c0_i32_0 = arith.constant 0 : i32
    %c0_i32_1 = arith.constant 0 : i32
    return %c0_i32, %c0_i32_0 : i32, i32
  }
  func.func @transform_3(%arg0: i32) -> (i32, i32, i32) {
    %c0_i32 = arith.constant 0 : i32
    %c0_i32_0 = arith.constant 0 : i32
    %c0_i32_1 = arith.constant 0 : i32
    return %arg0, %c0_i32, %c0_i32_0 : i32, i32, i32
  }
}

module attributes {stable_mosaic.version = 11 : i64} {
  func.func @_fused_linear_kernel(%arg0: i32, %arg1: memref<16x64xbf16, #tpu.memory_space<vmem>>, %arg2: memref<64x512xbf16, #tpu.memory_space<vmem>>, %arg3: memref<1x512xf32, #tpu.memory_space<vmem>>, %arg4: memref<16x512xbf16, #tpu.memory_space<vmem>>) attributes {dimension_semantics = [#tpu.dimension_semantics<parallel>], iteration_bounds = array<i64: 1>, scalar_prefetch = 0 : i64, scratch_operands = 0 : i64, tpu.core_type = #tpu.core_type<tc>, window_params = [{transform_indices = @transform_0, window_bounds = array<i64: 16, 64>}, {pipeline_mode = #tpu.pipeline_mode<synchronous>, transform_indices = @transform_1, window_bounds = array<i64: 64, 512>}, {pipeline_mode = #tpu.pipeline_mode<synchronous>, transform_indices = @transform_2, window_bounds = array<i64: 1, 512>}, {transform_indices = @transform_3, window_bounds = array<i64: 16, 512>}]} {
    %c0 = arith.constant 0 : index
    %c0_0 = arith.constant 0 : index
    %0 = vector.load %arg1[%c0, %c0_0] : memref<16x64xbf16, #tpu.memory_space<vmem>>, vector<16x64xbf16>
    %c0_1 = arith.constant 0 : index
    %c0_2 = arith.constant 0 : index
    %1 = vector.load %arg2[%c0_1, %c0_2] : memref<64x512xbf16, #tpu.memory_space<vmem>>, vector<64x512xbf16>
    %cst = arith.constant dense<0.000000e+00> : vector<16x512xf32>
    %2 = tpu.matmul %0, %1, %cst {dimension_numbers = #tpu.dot_dimension_numbers<[1], [0], [0], [1], [0, 0, 1, 1], [], []>} : vector<16x64xbf16>, vector<64x512xbf16>, vector<16x512xf32> -> vector<16x512xf32>
    %c0_3 = arith.constant 0 : index
    %c0_4 = arith.constant 0 : index
    %3 = vector.load %arg3[%c0_3, %c0_4] : memref<1x512xf32, #tpu.memory_space<vmem>>, vector<1x512xf32>
    %4 = vector.broadcast %3 : vector<1x512xf32> to vector<16x512xf32>
    %5 = arith.addf %2, %4 : vector<16x512xf32>
    %6 = arith.truncf %5 : vector<16x512xf32> to vector<16x512xbf16>
    %c0_5 = arith.constant 0 : index
    %c0_6 = arith.constant 0 : index
    %7 = vector.load %arg4[%c0_5, %c0_6] : memref<16x512xbf16, #tpu.memory_space<vmem>>, vector<16x512xbf16>
    tpu.vector_store %arg4[%c0_5, %c0_6], %6 {strides = array<i32>} : memref<16x512xbf16, #tpu.memory_space<vmem>>, vector<16x512xbf16>,
    return
  }
  func.func @transform_0(%arg0: i32) -> (i32, i32) {
    %c0_i32 = arith.constant 0 : i32
    %c0_i32_0 = arith.constant 0 : i32
    return %arg0, %c0_i32 : i32, i32
  }
  func.func @transform_1(%arg0: i32) -> (i32, i32) {
    %c0_i32 = arith.constant 0 : i32
    %c0_i32_0 = arith.constant 0 : i32
    %c0_i32_1 = arith.constant 0 : i32
    return %c0_i32, %c0_i32_0 : i32, i32
  }
  func.func @transform_2(%arg0: i32) -> (i32, i32) {
    %c0_i32 = arith.constant 0 : i32
    %c0_i32_0 = arith.constant 0 : i32
    %c0_i32_1 = arith.constant 0 : i32
    return %c0_i32, %c0_i32_0 : i32, i32
  }
  func.func @transform_3(%arg0: i32) -> (i32, i32) {
    %c0_i32 = arith.constant 0 : i32
    %c0_i32_0 = arith.constant 0 : i32
    return %arg0, %c0_i32 : i32, i32
  }
}

module attributes {stable_mosaic.version = 11 : i64} {
  func.func @_lstm_kernel(%arg0: i32, %arg1: memref<8x8x512xbf16, #tpu.memory_space<vmem>>, %arg2: memref<128x512xf32, #tpu.memory_space<vmem>>, %arg3: memref<8x8x128xbf16, #tpu.memory_space<vmem>>, %arg4: memref<8x128xf32, #tpu.memory_space<vmem>>, %arg5: memref<8x128xf32, #tpu.memory_space<vmem>>) attributes {dimension_semantics = [#tpu.dimension_semantics<arbitrary>], iteration_bounds = array<i64: 1>, scalar_prefetch = 0 : i64, scratch_operands = 2 : i64, tpu.core_type = #tpu.core_type<tc>, window_params = [{transform_indices = @transform_0, window_bounds = array<i64: 8, 8, 512>}, {pipeline_mode = #tpu.pipeline_mode<synchronous>, transform_indices = @transform_1, window_bounds = array<i64: 128, 512>}, {transform_indices = @transform_2, window_bounds = array<i64: 8, 8, 128>}]} {
    %c0_i32 = arith.constant 0 : i32
    %0 = arith.cmpi eq, %arg0, %c0_i32 : i32
    %1 = arith.extui %0 : i1 to i32
    %c0_i32_0 = arith.constant 0 : i32
    %2 = arith.cmpi ne, %1, %c0_i32_0 : i32
    scf.if %2 {
      %cst_74 = arith.constant 0.000000e+00 : f32
      %296 = vector.broadcast %cst_74 : f32 to vector<8x128xf32>
      %c0_75 = arith.constant 0 : index
      %c0_76 = arith.constant 0 : index
      %297 = vector.load %arg4[%c0_75, %c0_76] : memref<8x128xf32, #tpu.memory_space<vmem>>, vector<8x128xf32>
      tpu.vector_store %arg4[%c0_75, %c0_76], %296 {strides = array<i32>} : memref<8x128xf32, #tpu.memory_space<vmem>>, vector<8x128xf32>,
      %cst_77 = arith.constant 0.000000e+00 : f32
      %298 = vector.broadcast %cst_77 : f32 to vector<8x128xf32>
      %c0_78 = arith.constant 0 : index
      %c0_79 = arith.constant 0 : index
      %299 = vector.load %arg5[%c0_78, %c0_79] : memref<8x128xf32, #tpu.memory_space<vmem>>, vector<8x128xf32>
      tpu.vector_store %arg5[%c0_78, %c0_79], %298 {strides = array<i32>} : memref<8x128xf32, #tpu.memory_space<vmem>>, vector<8x128xf32>,
    } else {
    }
    %c0 = arith.constant 0 : index
    %c0_1 = arith.constant 0 : index
    %3 = vector.load %arg2[%c0, %c0_1] : memref<128x512xf32, #tpu.memory_space<vmem>>, vector<128x512xf32>
    %c0_2 = arith.constant 0 : index
    %c0_3 = arith.constant 0 : index
    %4 = vector.load %arg4[%c0_2, %c0_3] : memref<8x128xf32, #tpu.memory_space<vmem>>, vector<8x128xf32>
    %c0_4 = arith.constant 0 : index
    %c0_5 = arith.constant 0 : index
    %5 = vector.load %arg5[%c0_4, %c0_5] : memref<8x128xf32, #tpu.memory_space<vmem>>, vector<8x128xf32>
    %c0_i32_6 = arith.constant 0 : i32
    %6 = arith.index_cast %c0_i32_6 : i32 to index
    %c0_7 = arith.constant 0 : index
    %c0_8 = arith.constant 0 : index
    %7 = vector.load %arg1[%6, %c0_7, %c0_8] : memref<8x8x512xbf16, #tpu.memory_space<vmem>>, vector<1x8x512xbf16>
    %8 = vector.shape_cast %7 : vector<1x8x512xbf16> to vector<8x512xbf16>
    %9 = arith.extf %8 : vector<8x512xbf16> to vector<8x512xf32>
    %cst = arith.constant dense<0.000000e+00> : vector<8x512xf32>
    %10 = tpu.matmul %4, %3, %cst {dimension_numbers = #tpu.dot_dimension_numbers<[1], [0], [0], [1], [0, 0, 1, 1], [], []>} : vector<8x128xf32>, vector<128x512xf32>, vector<8x512xf32> -> vector<8x512xf32>
    %11 = arith.addf %9, %10 : vector<8x512xf32>
    %12 = vector.extract_strided_slice %11 {offsets = [0, 0], sizes = [8, 128], strides = [1, 1]} : vector<8x512xf32> to vector<8x128xf32>
    %13 = arith.negf %12 : vector<8x128xf32>
    %14 = math.exp %13 : vector<8x128xf32>
    %cst_9 = arith.constant 1.000000e+00 : f32
    %15 = vector.broadcast %cst_9 : f32 to vector<8x128xf32>
    %16 = arith.addf %15, %14 : vector<8x128xf32>
    %17 = arith.divf %15, %16 : vector<8x128xf32>
    %18 = vector.extract_strided_slice %11 {offsets = [0, 128], sizes = [8, 128], strides = [1, 1]} : vector<8x512xf32> to vector<8x128xf32>
    %19 = arith.negf %18 : vector<8x128xf32>
    %20 = math.exp %19 : vector<8x128xf32>
    %cst_10 = arith.constant 1.000000e+00 : f32
    %21 = vector.broadcast %cst_10 : f32 to vector<8x128xf32>
    %22 = arith.addf %21, %20 : vector<8x128xf32>
    %23 = arith.divf %21, %22 : vector<8x128xf32>
    %24 = vector.extract_strided_slice %11 {offsets = [0, 256], sizes = [8, 128], strides = [1, 1]} : vector<8x512xf32> to vector<8x128xf32>
    %25 = math.tanh %24 : vector<8x128xf32>
    %26 = vector.extract_strided_slice %11 {offsets = [0, 384], sizes = [8, 128], strides = [1, 1]} : vector<8x512xf32> to vector<8x128xf32>
    %27 = arith.negf %26 : vector<8x128xf32>
    %28 = math.exp %27 : vector<8x128xf32>
    %cst_11 = arith.constant 1.000000e+00 : f32
    %29 = vector.broadcast %cst_11 : f32 to vector<8x128xf32>
    %30 = arith.addf %29, %28 : vector<8x128xf32>
    %31 = arith.divf %29, %30 : vector<8x128xf32>
    %32 = arith.mulf %23, %5 : vector<8x128xf32>
    %33 = arith.mulf %17, %25 : vector<8x128xf32>
    %34 = arith.addf %32, %33 : vector<8x128xf32>
    %35 = math.tanh %34 : vector<8x128xf32>
    %36 = arith.mulf %31, %35 : vector<8x128xf32>
    %37 = arith.truncf %36 : vector<8x128xf32> to vector<8x128xbf16>
    %38 = arith.index_cast %c0_i32_6 : i32 to index
    %c0_12 = arith.constant 0 : index
    %c0_13 = arith.constant 0 : index
    %39 = vector.load %arg3[%38, %c0_12, %c0_13] : memref<8x8x128xbf16, #tpu.memory_space<vmem>>, vector<1x8x128xbf16>
    %40 = vector.shape_cast %39 : vector<1x8x128xbf16> to vector<8x128xbf16>
    %41 = vector.shape_cast %37 : vector<8x128xbf16> to vector<1x8x128xbf16>
    tpu.vector_store %arg3[%38, %c0_12, %c0_13], %41 {strides = array<i32>} : memref<8x8x128xbf16, #tpu.memory_space<vmem>>, vector<1x8x128xbf16>,
    %c1_i32 = arith.constant 1 : i32
    %42 = arith.index_cast %c1_i32 : i32 to index
    %c0_14 = arith.constant 0 : index
    %c0_15 = arith.constant 0 : index
    %43 = vector.load %arg1[%42, %c0_14, %c0_15] : memref<8x8x512xbf16, #tpu.memory_space<vmem>>, vector<1x8x512xbf16>
    %44 = vector.shape_cast %43 : vector<1x8x512xbf16> to vector<8x512xbf16>
    %45 = arith.extf %44 : vector<8x512xbf16> to vector<8x512xf32>
    %cst_16 = arith.constant dense<0.000000e+00> : vector<8x512xf32>
    %46 = tpu.matmul %36, %3, %cst_16 {dimension_numbers = #tpu.dot_dimension_numbers<[1], [0], [0], [1], [0, 0, 1, 1], [], []>} : vector<8x128xf32>, vector<128x512xf32>, vector<8x512xf32> -> vector<8x512xf32>
    %47 = arith.addf %45, %46 : vector<8x512xf32>
    %48 = vector.extract_strided_slice %47 {offsets = [0, 0], sizes = [8, 128], strides = [1, 1]} : vector<8x512xf32> to vector<8x128xf32>
    %49 = arith.negf %48 : vector<8x128xf32>
    %50 = math.exp %49 : vector<8x128xf32>
    %cst_17 = arith.constant 1.000000e+00 : f32
    %51 = vector.broadcast %cst_17 : f32 to vector<8x128xf32>
    %52 = arith.addf %51, %50 : vector<8x128xf32>
    %53 = arith.divf %51, %52 : vector<8x128xf32>
    %54 = vector.extract_strided_slice %47 {offsets = [0, 128], sizes = [8, 128], strides = [1, 1]} : vector<8x512xf32> to vector<8x128xf32>
    %55 = arith.negf %54 : vector<8x128xf32>
    %56 = math.exp %55 : vector<8x128xf32>
    %cst_18 = arith.constant 1.000000e+00 : f32
    %57 = vector.broadcast %cst_18 : f32 to vector<8x128xf32>
    %58 = arith.addf %57, %56 : vector<8x128xf32>
    %59 = arith.divf %57, %58 : vector<8x128xf32>
    %60 = vector.extract_strided_slice %47 {offsets = [0, 256], sizes = [8, 128], strides = [1, 1]} : vector<8x512xf32> to vector<8x128xf32>
    %61 = math.tanh %60 : vector<8x128xf32>
    %62 = vector.extract_strided_slice %47 {offsets = [0, 384], sizes = [8, 128], strides = [1, 1]} : vector<8x512xf32> to vector<8x128xf32>
    %63 = arith.negf %62 : vector<8x128xf32>
    %64 = math.exp %63 : vector<8x128xf32>
    %cst_19 = arith.constant 1.000000e+00 : f32
    %65 = vector.broadcast %cst_19 : f32 to vector<8x128xf32>
    %66 = arith.addf %65, %64 : vector<8x128xf32>
    %67 = arith.divf %65, %66 : vector<8x128xf32>
    %68 = arith.mulf %59, %34 : vector<8x128xf32>
    %69 = arith.mulf %53, %61 : vector<8x128xf32>
    %70 = arith.addf %68, %69 : vector<8x128xf32>
    %71 = math.tanh %70 : vector<8x128xf32>
    %72 = arith.mulf %67, %71 : vector<8x128xf32>
    %73 = arith.truncf %72 : vector<8x128xf32> to vector<8x128xbf16>
    %74 = arith.index_cast %c1_i32 : i32 to index
    %c0_20 = arith.constant 0 : index
    %c0_21 = arith.constant 0 : index
    %75 = vector.load %arg3[%74, %c0_20, %c0_21] : memref<8x8x128xbf16, #tpu.memory_space<vmem>>, vector<1x8x128xbf16>
    %76 = vector.shape_cast %75 : vector<1x8x128xbf16> to vector<8x128xbf16>
    %77 = vector.shape_cast %73 : vector<8x128xbf16> to vector<1x8x128xbf16>
    tpu.vector_store %arg3[%74, %c0_20, %c0_21], %77 {strides = array<i32>} : memref<8x8x128xbf16, #tpu.memory_space<vmem>>, vector<1x8x128xbf16>,
    %c2_i32 = arith.constant 2 : i32
    %78 = arith.index_cast %c2_i32 : i32 to index
    %c0_22 = arith.constant 0 : index
    %c0_23 = arith.constant 0 : index
    %79 = vector.load %arg1[%78, %c0_22, %c0_23] : memref<8x8x512xbf16, #tpu.memory_space<vmem>>, vector<1x8x512xbf16>
    %80 = vector.shape_cast %79 : vector<1x8x512xbf16> to vector<8x512xbf16>
    %81 = arith.extf %80 : vector<8x512xbf16> to vector<8x512xf32>
    %cst_24 = arith.constant dense<0.000000e+00> : vector<8x512xf32>
    %82 = tpu.matmul %72, %3, %cst_24 {dimension_numbers = #tpu.dot_dimension_numbers<[1], [0], [0], [1], [0, 0, 1, 1], [], []>} : vector<8x128xf32>, vector<128x512xf32>, vector<8x512xf32> -> vector<8x512xf32>
    %83 = arith.addf %81, %82 : vector<8x512xf32>
    %84 = vector.extract_strided_slice %83 {offsets = [0, 0], sizes = [8, 128], strides = [1, 1]} : vector<8x512xf32> to vector<8x128xf32>
    %85 = arith.negf %84 : vector<8x128xf32>
    %86 = math.exp %85 : vector<8x128xf32>
    %cst_25 = arith.constant 1.000000e+00 : f32
    %87 = vector.broadcast %cst_25 : f32 to vector<8x128xf32>
    %88 = arith.addf %87, %86 : vector<8x128xf32>
    %89 = arith.divf %87, %88 : vector<8x128xf32>
    %90 = vector.extract_strided_slice %83 {offsets = [0, 128], sizes = [8, 128], strides = [1, 1]} : vector<8x512xf32> to vector<8x128xf32>
    %91 = arith.negf %90 : vector<8x128xf32>
    %92 = math.exp %91 : vector<8x128xf32>
    %cst_26 = arith.constant 1.000000e+00 : f32
    %93 = vector.broadcast %cst_26 : f32 to vector<8x128xf32>
    %94 = arith.addf %93, %92 : vector<8x128xf32>
    %95 = arith.divf %93, %94 : vector<8x128xf32>
    %96 = vector.extract_strided_slice %83 {offsets = [0, 256], sizes = [8, 128], strides = [1, 1]} : vector<8x512xf32> to vector<8x128xf32>
    %97 = math.tanh %96 : vector<8x128xf32>
    %98 = vector.extract_strided_slice %83 {offsets = [0, 384], sizes = [8, 128], strides = [1, 1]} : vector<8x512xf32> to vector<8x128xf32>
    %99 = arith.negf %98 : vector<8x128xf32>
    %100 = math.exp %99 : vector<8x128xf32>
    %cst_27 = arith.constant 1.000000e+00 : f32
    %101 = vector.broadcast %cst_27 : f32 to vector<8x128xf32>
    %102 = arith.addf %101, %100 : vector<8x128xf32>
    %103 = arith.divf %101, %102 : vector<8x128xf32>
    %104 = arith.mulf %95, %70 : vector<8x128xf32>
    %105 = arith.mulf %89, %97 : vector<8x128xf32>
    %106 = arith.addf %104, %105 : vector<8x128xf32>
    %107 = math.tanh %106 : vector<8x128xf32>
    %108 = arith.mulf %103, %107 : vector<8x128xf32>
    %109 = arith.truncf %108 : vector<8x128xf32> to vector<8x128xbf16>
    %110 = arith.index_cast %c2_i32 : i32 to index
    %c0_28 = arith.constant 0 : index
    %c0_29 = arith.constant 0 : index
    %111 = vector.load %arg3[%110, %c0_28, %c0_29] : memref<8x8x128xbf16, #tpu.memory_space<vmem>>, vector<1x8x128xbf16>
    %112 = vector.shape_cast %111 : vector<1x8x128xbf16> to vector<8x128xbf16>
    %113 = vector.shape_cast %109 : vector<8x128xbf16> to vector<1x8x128xbf16>
    tpu.vector_store %arg3[%110, %c0_28, %c0_29], %113 {strides = array<i32>} : memref<8x8x128xbf16, #tpu.memory_space<vmem>>, vector<1x8x128xbf16>,
    %c3_i32 = arith.constant 3 : i32
    %114 = arith.index_cast %c3_i32 : i32 to index
    %c0_30 = arith.constant 0 : index
    %c0_31 = arith.constant 0 : index
    %115 = vector.load %arg1[%114, %c0_30, %c0_31] : memref<8x8x512xbf16, #tpu.memory_space<vmem>>, vector<1x8x512xbf16>
    %116 = vector.shape_cast %115 : vector<1x8x512xbf16> to vector<8x512xbf16>
    %117 = arith.extf %116 : vector<8x512xbf16> to vector<8x512xf32>
    %cst_32 = arith.constant dense<0.000000e+00> : vector<8x512xf32>
    %118 = tpu.matmul %108, %3, %cst_32 {dimension_numbers = #tpu.dot_dimension_numbers<[1], [0], [0], [1], [0, 0, 1, 1], [], []>} : vector<8x128xf32>, vector<128x512xf32>, vector<8x512xf32> -> vector<8x512xf32>
    %119 = arith.addf %117, %118 : vector<8x512xf32>
    %120 = vector.extract_strided_slice %119 {offsets = [0, 0], sizes = [8, 128], strides = [1, 1]} : vector<8x512xf32> to vector<8x128xf32>
    %121 = arith.negf %120 : vector<8x128xf32>
    %122 = math.exp %121 : vector<8x128xf32>
    %cst_33 = arith.constant 1.000000e+00 : f32
    %123 = vector.broadcast %cst_33 : f32 to vector<8x128xf32>
    %124 = arith.addf %123, %122 : vector<8x128xf32>
    %125 = arith.divf %123, %124 : vector<8x128xf32>
    %126 = vector.extract_strided_slice %119 {offsets = [0, 128], sizes = [8, 128], strides = [1, 1]} : vector<8x512xf32> to vector<8x128xf32>
    %127 = arith.negf %126 : vector<8x128xf32>
    %128 = math.exp %127 : vector<8x128xf32>
    %cst_34 = arith.constant 1.000000e+00 : f32
    %129 = vector.broadcast %cst_34 : f32 to vector<8x128xf32>
    %130 = arith.addf %129, %128 : vector<8x128xf32>
    %131 = arith.divf %129, %130 : vector<8x128xf32>
    %132 = vector.extract_strided_slice %119 {offsets = [0, 256], sizes = [8, 128], strides = [1, 1]} : vector<8x512xf32> to vector<8x128xf32>
    %133 = math.tanh %132 : vector<8x128xf32>
    %134 = vector.extract_strided_slice %119 {offsets = [0, 384], sizes = [8, 128], strides = [1, 1]} : vector<8x512xf32> to vector<8x128xf32>
    %135 = arith.negf %134 : vector<8x128xf32>
    %136 = math.exp %135 : vector<8x128xf32>
    %cst_35 = arith.constant 1.000000e+00 : f32
    %137 = vector.broadcast %cst_35 : f32 to vector<8x128xf32>
    %138 = arith.addf %137, %136 : vector<8x128xf32>
    %139 = arith.divf %137, %138 : vector<8x128xf32>
    %140 = arith.mulf %131, %106 : vector<8x128xf32>
    %141 = arith.mulf %125, %133 : vector<8x128xf32>
    %142 = arith.addf %140, %141 : vector<8x128xf32>
    %143 = math.tanh %142 : vector<8x128xf32>
    %144 = arith.mulf %139, %143 : vector<8x128xf32>
    %145 = arith.truncf %144 : vector<8x128xf32> to vector<8x128xbf16>
    %146 = arith.index_cast %c3_i32 : i32 to index
    %c0_36 = arith.constant 0 : index
    %c0_37 = arith.constant 0 : index
    %147 = vector.load %arg3[%146, %c0_36, %c0_37] : memref<8x8x128xbf16, #tpu.memory_space<vmem>>, vector<1x8x128xbf16>
    %148 = vector.shape_cast %147 : vector<1x8x128xbf16> to vector<8x128xbf16>
    %149 = vector.shape_cast %145 : vector<8x128xbf16> to vector<1x8x128xbf16>
    tpu.vector_store %arg3[%146, %c0_36, %c0_37], %149 {strides = array<i32>} : memref<8x8x128xbf16, #tpu.memory_space<vmem>>, vector<1x8x128xbf16>,
    %c4_i32 = arith.constant 4 : i32
    %150 = arith.index_cast %c4_i32 : i32 to index
    %c0_38 = arith.constant 0 : index
    %c0_39 = arith.constant 0 : index
    %151 = vector.load %arg1[%150, %c0_38, %c0_39] : memref<8x8x512xbf16, #tpu.memory_space<vmem>>, vector<1x8x512xbf16>
    %152 = vector.shape_cast %151 : vector<1x8x512xbf16> to vector<8x512xbf16>
    %153 = arith.extf %152 : vector<8x512xbf16> to vector<8x512xf32>
    %cst_40 = arith.constant dense<0.000000e+00> : vector<8x512xf32>
    %154 = tpu.matmul %144, %3, %cst_40 {dimension_numbers = #tpu.dot_dimension_numbers<[1], [0], [0], [1], [0, 0, 1, 1], [], []>} : vector<8x128xf32>, vector<128x512xf32>, vector<8x512xf32> -> vector<8x512xf32>
    %155 = arith.addf %153, %154 : vector<8x512xf32>
    %156 = vector.extract_strided_slice %155 {offsets = [0, 0], sizes = [8, 128], strides = [1, 1]} : vector<8x512xf32> to vector<8x128xf32>
    %157 = arith.negf %156 : vector<8x128xf32>
    %158 = math.exp %157 : vector<8x128xf32>
    %cst_41 = arith.constant 1.000000e+00 : f32
    %159 = vector.broadcast %cst_41 : f32 to vector<8x128xf32>
    %160 = arith.addf %159, %158 : vector<8x128xf32>
    %161 = arith.divf %159, %160 : vector<8x128xf32>
    %162 = vector.extract_strided_slice %155 {offsets = [0, 128], sizes = [8, 128], strides = [1, 1]} : vector<8x512xf32> to vector<8x128xf32>
    %163 = arith.negf %162 : vector<8x128xf32>
    %164 = math.exp %163 : vector<8x128xf32>
    %cst_42 = arith.constant 1.000000e+00 : f32
    %165 = vector.broadcast %cst_42 : f32 to vector<8x128xf32>
    %166 = arith.addf %165, %164 : vector<8x128xf32>
    %167 = arith.divf %165, %166 : vector<8x128xf32>
    %168 = vector.extract_strided_slice %155 {offsets = [0, 256], sizes = [8, 128], strides = [1, 1]} : vector<8x512xf32> to vector<8x128xf32>
    %169 = math.tanh %168 : vector<8x128xf32>
    %170 = vector.extract_strided_slice %155 {offsets = [0, 384], sizes = [8, 128], strides = [1, 1]} : vector<8x512xf32> to vector<8x128xf32>
    %171 = arith.negf %170 : vector<8x128xf32>
    %172 = math.exp %171 : vector<8x128xf32>
    %cst_43 = arith.constant 1.000000e+00 : f32
    %173 = vector.broadcast %cst_43 : f32 to vector<8x128xf32>
    %174 = arith.addf %173, %172 : vector<8x128xf32>
    %175 = arith.divf %173, %174 : vector<8x128xf32>
    %176 = arith.mulf %167, %142 : vector<8x128xf32>
    %177 = arith.mulf %161, %169 : vector<8x128xf32>
    %178 = arith.addf %176, %177 : vector<8x128xf32>
    %179 = math.tanh %178 : vector<8x128xf32>
    %180 = arith.mulf %175, %179 : vector<8x128xf32>
    %181 = arith.truncf %180 : vector<8x128xf32> to vector<8x128xbf16>
    %182 = arith.index_cast %c4_i32 : i32 to index
    %c0_44 = arith.constant 0 : index
    %c0_45 = arith.constant 0 : index
    %183 = vector.load %arg3[%182, %c0_44, %c0_45] : memref<8x8x128xbf16, #tpu.memory_space<vmem>>, vector<1x8x128xbf16>
    %184 = vector.shape_cast %183 : vector<1x8x128xbf16> to vector<8x128xbf16>
    %185 = vector.shape_cast %181 : vector<8x128xbf16> to vector<1x8x128xbf16>
    tpu.vector_store %arg3[%182, %c0_44, %c0_45], %185 {strides = array<i32>} : memref<8x8x128xbf16, #tpu.memory_space<vmem>>, vector<1x8x128xbf16>,
    %c5_i32 = arith.constant 5 : i32
    %186 = arith.index_cast %c5_i32 : i32 to index
    %c0_46 = arith.constant 0 : index
    %c0_47 = arith.constant 0 : index
    %187 = vector.load %arg1[%186, %c0_46, %c0_47] : memref<8x8x512xbf16, #tpu.memory_space<vmem>>, vector<1x8x512xbf16>
    %188 = vector.shape_cast %187 : vector<1x8x512xbf16> to vector<8x512xbf16>
    %189 = arith.extf %188 : vector<8x512xbf16> to vector<8x512xf32>
    %cst_48 = arith.constant dense<0.000000e+00> : vector<8x512xf32>
    %190 = tpu.matmul %180, %3, %cst_48 {dimension_numbers = #tpu.dot_dimension_numbers<[1], [0], [0], [1], [0, 0, 1, 1], [], []>} : vector<8x128xf32>, vector<128x512xf32>, vector<8x512xf32> -> vector<8x512xf32>
    %191 = arith.addf %189, %190 : vector<8x512xf32>
    %192 = vector.extract_strided_slice %191 {offsets = [0, 0], sizes = [8, 128], strides = [1, 1]} : vector<8x512xf32> to vector<8x128xf32>
    %193 = arith.negf %192 : vector<8x128xf32>
    %194 = math.exp %193 : vector<8x128xf32>
    %cst_49 = arith.constant 1.000000e+00 : f32
    %195 = vector.broadcast %cst_49 : f32 to vector<8x128xf32>
    %196 = arith.addf %195, %194 : vector<8x128xf32>
    %197 = arith.divf %195, %196 : vector<8x128xf32>
    %198 = vector.extract_strided_slice %191 {offsets = [0, 128], sizes = [8, 128], strides = [1, 1]} : vector<8x512xf32> to vector<8x128xf32>
    %199 = arith.negf %198 : vector<8x128xf32>
    %200 = math.exp %199 : vector<8x128xf32>
    %cst_50 = arith.constant 1.000000e+00 : f32
    %201 = vector.broadcast %cst_50 : f32 to vector<8x128xf32>
    %202 = arith.addf %201, %200 : vector<8x128xf32>
    %203 = arith.divf %201, %202 : vector<8x128xf32>
    %204 = vector.extract_strided_slice %191 {offsets = [0, 256], sizes = [8, 128], strides = [1, 1]} : vector<8x512xf32> to vector<8x128xf32>
    %205 = math.tanh %204 : vector<8x128xf32>
    %206 = vector.extract_strided_slice %191 {offsets = [0, 384], sizes = [8, 128], strides = [1, 1]} : vector<8x512xf32> to vector<8x128xf32>
    %207 = arith.negf %206 : vector<8x128xf32>
    %208 = math.exp %207 : vector<8x128xf32>
    %cst_51 = arith.constant 1.000000e+00 : f32
    %209 = vector.broadcast %cst_51 : f32 to vector<8x128xf32>
    %210 = arith.addf %209, %208 : vector<8x128xf32>
    %211 = arith.divf %209, %210 : vector<8x128xf32>
    %212 = arith.mulf %203, %178 : vector<8x128xf32>
    %213 = arith.mulf %197, %205 : vector<8x128xf32>
    %214 = arith.addf %212, %213 : vector<8x128xf32>
    %215 = math.tanh %214 : vector<8x128xf32>
    %216 = arith.mulf %211, %215 : vector<8x128xf32>
    %217 = arith.truncf %216 : vector<8x128xf32> to vector<8x128xbf16>
    %218 = arith.index_cast %c5_i32 : i32 to index
    %c0_52 = arith.constant 0 : index
    %c0_53 = arith.constant 0 : index
    %219 = vector.load %arg3[%218, %c0_52, %c0_53] : memref<8x8x128xbf16, #tpu.memory_space<vmem>>, vector<1x8x128xbf16>
    %220 = vector.shape_cast %219 : vector<1x8x128xbf16> to vector<8x128xbf16>
    %221 = vector.shape_cast %217 : vector<8x128xbf16> to vector<1x8x128xbf16>
    tpu.vector_store %arg3[%218, %c0_52, %c0_53], %221 {strides = array<i32>} : memref<8x8x128xbf16, #tpu.memory_space<vmem>>, vector<1x8x128xbf16>,
    %c6_i32 = arith.constant 6 : i32
    %222 = arith.index_cast %c6_i32 : i32 to index
    %c0_54 = arith.constant 0 : index
    %c0_55 = arith.constant 0 : index
    %223 = vector.load %arg1[%222, %c0_54, %c0_55] : memref<8x8x512xbf16, #tpu.memory_space<vmem>>, vector<1x8x512xbf16>
    %224 = vector.shape_cast %223 : vector<1x8x512xbf16> to vector<8x512xbf16>
    %225 = arith.extf %224 : vector<8x512xbf16> to vector<8x512xf32>
    %cst_56 = arith.constant dense<0.000000e+00> : vector<8x512xf32>
    %226 = tpu.matmul %216, %3, %cst_56 {dimension_numbers = #tpu.dot_dimension_numbers<[1], [0], [0], [1], [0, 0, 1, 1], [], []>} : vector<8x128xf32>, vector<128x512xf32>, vector<8x512xf32> -> vector<8x512xf32>
    %227 = arith.addf %225, %226 : vector<8x512xf32>
    %228 = vector.extract_strided_slice %227 {offsets = [0, 0], sizes = [8, 128], strides = [1, 1]} : vector<8x512xf32> to vector<8x128xf32>
    %229 = arith.negf %228 : vector<8x128xf32>
    %230 = math.exp %229 : vector<8x128xf32>
    %cst_57 = arith.constant 1.000000e+00 : f32
    %231 = vector.broadcast %cst_57 : f32 to vector<8x128xf32>
    %232 = arith.addf %231, %230 : vector<8x128xf32>
    %233 = arith.divf %231, %232 : vector<8x128xf32>
    %234 = vector.extract_strided_slice %227 {offsets = [0, 128], sizes = [8, 128], strides = [1, 1]} : vector<8x512xf32> to vector<8x128xf32>
    %235 = arith.negf %234 : vector<8x128xf32>
    %236 = math.exp %235 : vector<8x128xf32>
    %cst_58 = arith.constant 1.000000e+00 : f32
    %237 = vector.broadcast %cst_58 : f32 to vector<8x128xf32>
    %238 = arith.addf %237, %236 : vector<8x128xf32>
    %239 = arith.divf %237, %238 : vector<8x128xf32>
    %240 = vector.extract_strided_slice %227 {offsets = [0, 256], sizes = [8, 128], strides = [1, 1]} : vector<8x512xf32> to vector<8x128xf32>
    %241 = math.tanh %240 : vector<8x128xf32>
    %242 = vector.extract_strided_slice %227 {offsets = [0, 384], sizes = [8, 128], strides = [1, 1]} : vector<8x512xf32> to vector<8x128xf32>
    %243 = arith.negf %242 : vector<8x128xf32>
    %244 = math.exp %243 : vector<8x128xf32>
    %cst_59 = arith.constant 1.000000e+00 : f32
    %245 = vector.broadcast %cst_59 : f32 to vector<8x128xf32>
    %246 = arith.addf %245, %244 : vector<8x128xf32>
    %247 = arith.divf %245, %246 : vector<8x128xf32>
    %248 = arith.mulf %239, %214 : vector<8x128xf32>
    %249 = arith.mulf %233, %241 : vector<8x128xf32>
    %250 = arith.addf %248, %249 : vector<8x128xf32>
    %251 = math.tanh %250 : vector<8x128xf32>
    %252 = arith.mulf %247, %251 : vector<8x128xf32>
    %253 = arith.truncf %252 : vector<8x128xf32> to vector<8x128xbf16>
    %254 = arith.index_cast %c6_i32 : i32 to index
    %c0_60 = arith.constant 0 : index
    %c0_61 = arith.constant 0 : index
    %255 = vector.load %arg3[%254, %c0_60, %c0_61] : memref<8x8x128xbf16, #tpu.memory_space<vmem>>, vector<1x8x128xbf16>
    %256 = vector.shape_cast %255 : vector<1x8x128xbf16> to vector<8x128xbf16>
    %257 = vector.shape_cast %253 : vector<8x128xbf16> to vector<1x8x128xbf16>
    tpu.vector_store %arg3[%254, %c0_60, %c0_61], %257 {strides = array<i32>} : memref<8x8x128xbf16, #tpu.memory_space<vmem>>, vector<1x8x128xbf16>,
    %c7_i32 = arith.constant 7 : i32
    %258 = arith.index_cast %c7_i32 : i32 to index
    %c0_62 = arith.constant 0 : index
    %c0_63 = arith.constant 0 : index
    %259 = vector.load %arg1[%258, %c0_62, %c0_63] : memref<8x8x512xbf16, #tpu.memory_space<vmem>>, vector<1x8x512xbf16>
    %260 = vector.shape_cast %259 : vector<1x8x512xbf16> to vector<8x512xbf16>
    %261 = arith.extf %260 : vector<8x512xbf16> to vector<8x512xf32>
    %cst_64 = arith.constant dense<0.000000e+00> : vector<8x512xf32>
    %262 = tpu.matmul %252, %3, %cst_64 {dimension_numbers = #tpu.dot_dimension_numbers<[1], [0], [0], [1], [0, 0, 1, 1], [], []>} : vector<8x128xf32>, vector<128x512xf32>, vector<8x512xf32> -> vector<8x512xf32>
    %263 = arith.addf %261, %262 : vector<8x512xf32>
    %264 = vector.extract_strided_slice %263 {offsets = [0, 0], sizes = [8, 128], strides = [1, 1]} : vector<8x512xf32> to vector<8x128xf32>
    %265 = arith.negf %264 : vector<8x128xf32>
    %266 = math.exp %265 : vector<8x128xf32>
    %cst_65 = arith.constant 1.000000e+00 : f32
    %267 = vector.broadcast %cst_65 : f32 to vector<8x128xf32>
    %268 = arith.addf %267, %266 : vector<8x128xf32>
    %269 = arith.divf %267, %268 : vector<8x128xf32>
    %270 = vector.extract_strided_slice %263 {offsets = [0, 128], sizes = [8, 128], strides = [1, 1]} : vector<8x512xf32> to vector<8x128xf32>
    %271 = arith.negf %270 : vector<8x128xf32>
    %272 = math.exp %271 : vector<8x128xf32>
    %cst_66 = arith.constant 1.000000e+00 : f32
    %273 = vector.broadcast %cst_66 : f32 to vector<8x128xf32>
    %274 = arith.addf %273, %272 : vector<8x128xf32>
    %275 = arith.divf %273, %274 : vector<8x128xf32>
    %276 = vector.extract_strided_slice %263 {offsets = [0, 256], sizes = [8, 128], strides = [1, 1]} : vector<8x512xf32> to vector<8x128xf32>
    %277 = math.tanh %276 : vector<8x128xf32>
    %278 = vector.extract_strided_slice %263 {offsets = [0, 384], sizes = [8, 128], strides = [1, 1]} : vector<8x512xf32> to vector<8x128xf32>
    %279 = arith.negf %278 : vector<8x128xf32>
    %280 = math.exp %279 : vector<8x128xf32>
    %cst_67 = arith.constant 1.000000e+00 : f32
    %281 = vector.broadcast %cst_67 : f32 to vector<8x128xf32>
    %282 = arith.addf %281, %280 : vector<8x128xf32>
    %283 = arith.divf %281, %282 : vector<8x128xf32>
    %284 = arith.mulf %275, %250 : vector<8x128xf32>
    %285 = arith.mulf %269, %277 : vector<8x128xf32>
    %286 = arith.addf %284, %285 : vector<8x128xf32>
    %287 = math.tanh %286 : vector<8x128xf32>
    %288 = arith.mulf %283, %287 : vector<8x128xf32>
    %289 = arith.truncf %288 : vector<8x128xf32> to vector<8x128xbf16>
    %290 = arith.index_cast %c7_i32 : i32 to index
    %c0_68 = arith.constant 0 : index
    %c0_69 = arith.constant 0 : index
    %291 = vector.load %arg3[%290, %c0_68, %c0_69] : memref<8x8x128xbf16, #tpu.memory_space<vmem>>, vector<1x8x128xbf16>
    %292 = vector.shape_cast %291 : vector<1x8x128xbf16> to vector<8x128xbf16>
    %293 = vector.shape_cast %289 : vector<8x128xbf16> to vector<1x8x128xbf16>
    tpu.vector_store %arg3[%290, %c0_68, %c0_69], %293 {strides = array<i32>} : memref<8x8x128xbf16, #tpu.memory_space<vmem>>, vector<1x8x128xbf16>,
    %c8_i32 = arith.constant 8 : i32
    %c0_70 = arith.constant 0 : index
    %c0_71 = arith.constant 0 : index
    %294 = vector.load %arg4[%c0_70, %c0_71] : memref<8x128xf32, #tpu.memory_space<vmem>>, vector<8x128xf32>
    tpu.vector_store %arg4[%c0_70, %c0_71], %288 {strides = array<i32>} : memref<8x128xf32, #tpu.memory_space<vmem>>, vector<8x128xf32>,
    %c0_72 = arith.constant 0 : index
    %c0_73 = arith.constant 0 : index
    %295 = vector.load %arg5[%c0_72, %c0_73] : memref<8x128xf32, #tpu.memory_space<vmem>>, vector<8x128xf32>
    tpu.vector_store %arg5[%c0_72, %c0_73], %286 {strides = array<i32>} : memref<8x128xf32, #tpu.memory_space<vmem>>, vector<8x128xf32>,
    return
  }
  func.func @transform_0(%arg0: i32) -> (i32, i32, i32) {
    %c0_i32 = arith.constant 0 : i32
    %c0_i32_0 = arith.constant 0 : i32
    %c0_i32_1 = arith.constant 0 : i32
    return %arg0, %c0_i32, %c0_i32_0 : i32, i32, i32
  }
  func.func @transform_1(%arg0: i32) -> (i32, i32) {
    %c0_i32 = arith.constant 0 : i32
    %c0_i32_0 = arith.constant 0 : i32
    %c0_i32_1 = arith.constant 0 : i32
    return %c0_i32, %c0_i32_0 : i32, i32
  }
  func.func @transform_2(%arg0: i32) -> (i32, i32, i32) {
    %c0_i32 = arith.constant 0 : i32
    %c0_i32_0 = arith.constant 0 : i32
    %c0_i32_1 = arith.constant 0 : i32
    return %arg0, %c0_i32, %c0_i32_0 : i32, i32, i32
  }
}

module attributes {stable_mosaic.version = 11 : i64} {
  func.func @_fused_linear_kernel(%arg0: i32, %arg1: memref<16x64xbf16, #tpu.memory_space<vmem>>, %arg2: memref<64x256xbf16, #tpu.memory_space<vmem>>, %arg3: memref<1x256xf32, #tpu.memory_space<vmem>>, %arg4: memref<1x64xf32, #tpu.memory_space<vmem>>, %arg5: memref<1x64xf32, #tpu.memory_space<vmem>>, %arg6: memref<16x256xbf16, #tpu.memory_space<vmem>>) attributes {dimension_semantics = [#tpu.dimension_semantics<parallel>], iteration_bounds = array<i64: 1>, scalar_prefetch = 0 : i64, scratch_operands = 0 : i64, tpu.core_type = #tpu.core_type<tc>, window_params = [{transform_indices = @transform_0, window_bounds = array<i64: 16, 64>}, {pipeline_mode = #tpu.pipeline_mode<synchronous>, transform_indices = @transform_1, window_bounds = array<i64: 64, 256>}, {pipeline_mode = #tpu.pipeline_mode<synchronous>, transform_indices = @transform_2, window_bounds = array<i64: 1, 256>}, {pipeline_mode = #tpu.pipeline_mode<synchronous>, transform_indices = @transform_3, window_bounds = array<i64: 1, 64>}, {pipeline_mode = #tpu.pipeline_mode<synchronous>, transform_indices = @transform_4, window_bounds = array<i64: 1, 64>}, {transform_indices = @transform_5, window_bounds = array<i64: 16, 256>}]} {
    %c0 = arith.constant 0 : index
    %c0_0 = arith.constant 0 : index
    %0 = vector.load %arg1[%c0, %c0_0] : memref<16x64xbf16, #tpu.memory_space<vmem>>, vector<16x64xbf16>
    %1 = arith.extf %0 : vector<16x64xbf16> to vector<16x64xf32>
    %cst = arith.constant dense<0.000000e+00> : vector<16xf32>
    %2 = vector.multi_reduction <add>, %1, %cst [1] : vector<16x64xf32> to vector<16xf32>
    %3 = vector.shape_cast %2 : vector<16xf32> to vector<16x1xf32>
    %cst_1 = arith.constant 6.400000e+01 : f32
    %4 = vector.broadcast %cst_1 : f32 to vector<16x1xf32>
    %5 = arith.divf %3, %4 : vector<16x1xf32>
    %6 = vector.broadcast %5 : vector<16x1xf32> to vector<16x64xf32>
    %7 = arith.subf %1, %6 : vector<16x64xf32>
    %8 = arith.mulf %7, %7 : vector<16x64xf32>
    %cst_2 = arith.constant dense<0.000000e+00> : vector<16xf32>
    %9 = vector.multi_reduction <add>, %8, %cst_2 [1] : vector<16x64xf32> to vector<16xf32>
    %10 = vector.shape_cast %9 : vector<16xf32> to vector<16x1xf32>
    %cst_3 = arith.constant 6.400000e+01 : f32
    %11 = vector.broadcast %cst_3 : f32 to vector<16x1xf32>
    %12 = arith.divf %10, %11 : vector<16x1xf32>
    %13 = vector.broadcast %5 : vector<16x1xf32> to vector<16x64xf32>
    %14 = arith.subf %1, %13 : vector<16x64xf32>
    %cst_4 = arith.constant 9.99999974E-6 : f32
    %15 = vector.broadcast %cst_4 : f32 to vector<16x1xf32>
    %16 = arith.addf %12, %15 : vector<16x1xf32>
    %17 = math.rsqrt %16 : vector<16x1xf32>
    %18 = vector.broadcast %17 : vector<16x1xf32> to vector<16x64xf32>
    %19 = arith.mulf %14, %18 : vector<16x64xf32>
    %c0_5 = arith.constant 0 : index
    %c0_6 = arith.constant 0 : index
    %20 = vector.load %arg4[%c0_5, %c0_6] : memref<1x64xf32, #tpu.memory_space<vmem>>, vector<1x64xf32>
    %21 = vector.broadcast %20 : vector<1x64xf32> to vector<16x64xf32>
    %22 = arith.mulf %19, %21 : vector<16x64xf32>
    %c0_7 = arith.constant 0 : index
    %c0_8 = arith.constant 0 : index
    %23 = vector.load %arg5[%c0_7, %c0_8] : memref<1x64xf32, #tpu.memory_space<vmem>>, vector<1x64xf32>
    %24 = vector.broadcast %23 : vector<1x64xf32> to vector<16x64xf32>
    %25 = arith.addf %22, %24 : vector<16x64xf32>
    %26 = arith.truncf %25 : vector<16x64xf32> to vector<16x64xbf16>
    %c0_9 = arith.constant 0 : index
    %c0_10 = arith.constant 0 : index
    %27 = vector.load %arg2[%c0_9, %c0_10] : memref<64x256xbf16, #tpu.memory_space<vmem>>, vector<64x256xbf16>
    %cst_11 = arith.constant dense<0.000000e+00> : vector<16x256xf32>
    %28 = tpu.matmul %26, %27, %cst_11 {dimension_numbers = #tpu.dot_dimension_numbers<[1], [0], [0], [1], [0, 0, 1, 1], [], []>} : vector<16x64xbf16>, vector<64x256xbf16>, vector<16x256xf32> -> vector<16x256xf32>
    %c0_12 = arith.constant 0 : index
    %c0_13 = arith.constant 0 : index
    %29 = vector.load %arg3[%c0_12, %c0_13] : memref<1x256xf32, #tpu.memory_space<vmem>>, vector<1x256xf32>
    %30 = vector.broadcast %29 : vector<1x256xf32> to vector<16x256xf32>
    %31 = arith.addf %28, %30 : vector<16x256xf32>
    %32 = arith.truncf %31 : vector<16x256xf32> to vector<16x256xbf16>
    %c0_14 = arith.constant 0 : index
    %c0_15 = arith.constant 0 : index
    %33 = vector.load %arg6[%c0_14, %c0_15] : memref<16x256xbf16, #tpu.memory_space<vmem>>, vector<16x256xbf16>
    tpu.vector_store %arg6[%c0_14, %c0_15], %32 {strides = array<i32>} : memref<16x256xbf16, #tpu.memory_space<vmem>>, vector<16x256xbf16>,
    return
  }
  func.func @transform_0(%arg0: i32) -> (i32, i32) {
    %c0_i32 = arith.constant 0 : i32
    %c0_i32_0 = arith.constant 0 : i32
    return %arg0, %c0_i32 : i32, i32
  }
  func.func @transform_1(%arg0: i32) -> (i32, i32) {
    %c0_i32 = arith.constant 0 : i32
    %c0_i32_0 = arith.constant 0 : i32
    %c0_i32_1 = arith.constant 0 : i32
    return %c0_i32, %c0_i32_0 : i32, i32
  }
  func.func @transform_2(%arg0: i32) -> (i32, i32) {
    %c0_i32 = arith.constant 0 : i32
    %c0_i32_0 = arith.constant 0 : i32
    %c0_i32_1 = arith.constant 0 : i32
    return %c0_i32, %c0_i32_0 : i32, i32
  }
  func.func @transform_3(%arg0: i32) -> (i32, i32) {
    %c0_i32 = arith.constant 0 : i32
    %c0_i32_0 = arith.constant 0 : i32
    %c0_i32_1 = arith.constant 0 : i32
    return %c0_i32, %c0_i32_0 : i32, i32
  }
  func.func @transform_4(%arg0: i32) -> (i32, i32) {
    %c0_i32 = arith.constant 0 : i32
    %c0_i32_0 = arith.constant 0 : i32
    %c0_i32_1 = arith.constant 0 : i32
    return %c0_i32, %c0_i32_0 : i32, i32
  }
  func.func @transform_5(%arg0: i32) -> (i32, i32) {
    %c0_i32 = arith.constant 0 : i32
    %c0_i32_0 = arith.constant 0 : i32
    return %arg0, %c0_i32 : i32, i32
  }
}

module attributes {stable_mosaic.version = 11 : i64} {
  func.func @_attn_kernel(%arg0: i32, %arg1: i32, %arg2: memref<1x1x8x8xbf16, #tpu.memory_space<vmem>>, %arg3: memref<1x1x8x8xbf16, #tpu.memory_space<vmem>>, %arg4: memref<1x1x8x8xbf16, #tpu.memory_space<vmem>>, %arg5: memref<1x1x8x8xbf16, #tpu.memory_space<vmem>>) attributes {dimension_semantics = [#tpu.dimension_semantics<parallel>, #tpu.dimension_semantics<parallel>], iteration_bounds = array<i64: 2, 8>, scalar_prefetch = 0 : i64, scratch_operands = 0 : i64, tpu.core_type = #tpu.core_type<tc>, window_params = [{transform_indices = @transform_0, window_bounds = array<i64: 1, 1, 8, 8>}, {transform_indices = @transform_1, window_bounds = array<i64: 1, 1, 8, 8>}, {transform_indices = @transform_2, window_bounds = array<i64: 1, 1, 8, 8>}, {transform_indices = @transform_3, window_bounds = array<i64: 1, 1, 8, 8>}]} {
    %c0 = arith.constant 0 : index
    %c0_0 = arith.constant 0 : index
    %c0_1 = arith.constant 0 : index
    %c0_2 = arith.constant 0 : index
    %0 = vector.load %arg2[%c0, %c0_0, %c0_1, %c0_2] : memref<1x1x8x8xbf16, #tpu.memory_space<vmem>>, vector<1x1x8x8xbf16>
    %1 = vector.shape_cast %0 : vector<1x1x8x8xbf16> to vector<8x8xbf16>
    %c0_3 = arith.constant 0 : index
    %c0_4 = arith.constant 0 : index
    %c0_5 = arith.constant 0 : index
    %c0_6 = arith.constant 0 : index
    %2 = vector.load %arg3[%c0_3, %c0_4, %c0_5, %c0_6] : memref<1x1x8x8xbf16, #tpu.memory_space<vmem>>, vector<1x1x8x8xbf16>
    %3 = vector.shape_cast %2 : vector<1x1x8x8xbf16> to vector<8x8xbf16>
    %c0_7 = arith.constant 0 : index
    %c0_8 = arith.constant 0 : index
    %c0_9 = arith.constant 0 : index
    %c0_10 = arith.constant 0 : index
    %4 = vector.load %arg4[%c0_7, %c0_8, %c0_9, %c0_10] : memref<1x1x8x8xbf16, #tpu.memory_space<vmem>>, vector<1x1x8x8xbf16>
    %5 = vector.shape_cast %4 : vector<1x1x8x8xbf16> to vector<8x8xbf16>
    %6 = tpu.transpose %3, [1, 0] : vector<8x8xbf16> -> vector<8x8xbf16>
    %cst = arith.constant dense<0.000000e+00> : vector<8x8xf32>
    %7 = tpu.matmul %1, %6, %cst {dimension_numbers = #tpu.dot_dimension_numbers<[1], [0], [0], [1], [0, 0, 1, 1], [], []>} : vector<8x8xbf16>, vector<8x8xbf16>, vector<8x8xf32> -> vector<8x8xf32>
    %cst_11 = arith.constant 0.353553385 : f32
    %8 = vector.broadcast %cst_11 : f32 to vector<8x8xf32>
    %9 = arith.mulf %7, %8 : vector<8x8xf32>
    %cst_12 = arith.constant dense<0xFF800000> : vector<8xf32>
    %10 = vector.multi_reduction <maximumf>, %9, %cst_12 [1] : vector<8x8xf32> to vector<8xf32>
    %11 = vector.shape_cast %10 : vector<8xf32> to vector<8x1xf32>
    %12 = vector.broadcast %11 : vector<8x1xf32> to vector<8x8xf32>
    %13 = arith.subf %9, %12 : vector<8x8xf32>
    %14 = math.exp %13 : vector<8x8xf32>
    %cst_13 = arith.constant dense<0.000000e+00> : vector<8xf32>
    %15 = vector.multi_reduction <add>, %14, %cst_13 [1] : vector<8x8xf32> to vector<8xf32>
    %16 = vector.shape_cast %15 : vector<8xf32> to vector<8x1xf32>
    %17 = tpu.reciprocal %16 {approx = true} : vector<8x1xf32> -> vector<8x1xf32>
    %18 = vector.broadcast %17 : vector<8x1xf32> to vector<8x8xf32>
    %19 = arith.mulf %14, %18 : vector<8x8xf32>
    %20 = arith.truncf %19 : vector<8x8xf32> to vector<8x8xbf16>
    %cst_14 = arith.constant dense<0.000000e+00> : vector<8x8xf32>
    %21 = tpu.matmul %20, %5, %cst_14 {dimension_numbers = #tpu.dot_dimension_numbers<[1], [0], [0], [1], [0, 0, 1, 1], [], []>} : vector<8x8xbf16>, vector<8x8xbf16>, vector<8x8xf32> -> vector<8x8xf32>
    %22 = arith.truncf %21 : vector<8x8xf32> to vector<8x8xbf16>
    %c0_15 = arith.constant 0 : index
    %c0_16 = arith.constant 0 : index
    %c0_17 = arith.constant 0 : index
    %c0_18 = arith.constant 0 : index
    %23 = vector.load %arg5[%c0_15, %c0_16, %c0_17, %c0_18] : memref<1x1x8x8xbf16, #tpu.memory_space<vmem>>, vector<1x1x8x8xbf16>
    %24 = vector.shape_cast %23 : vector<1x1x8x8xbf16> to vector<8x8xbf16>
    %25 = vector.shape_cast %22 : vector<8x8xbf16> to vector<1x1x8x8xbf16>
    tpu.vector_store %arg5[%c0_15, %c0_16, %c0_17, %c0_18], %25 {strides = array<i32>} : memref<1x1x8x8xbf16, #tpu.memory_space<vmem>>, vector<1x1x8x8xbf16>,
    return
  }
  func.func @transform_0(%arg0: i32, %arg1: i32) -> (i32, i32, i32, i32) {
    %c0_i32 = arith.constant 0 : i32
    %c0_i32_0 = arith.constant 0 : i32
    %c0_i32_1 = arith.constant 0 : i32
    return %arg0, %arg1, %c0_i32, %c0_i32_0 : i32, i32, i32, i32
  }
  func.func @transform_1(%arg0: i32, %arg1: i32) -> (i32, i32, i32, i32) {
    %c0_i32 = arith.constant 0 : i32
    %c0_i32_0 = arith.constant 0 : i32
    %c0_i32_1 = arith.constant 0 : i32
    return %arg0, %arg1, %c0_i32, %c0_i32_0 : i32, i32, i32, i32
  }
  func.func @transform_2(%arg0: i32, %arg1: i32) -> (i32, i32, i32, i32) {
    %c0_i32 = arith.constant 0 : i32
    %c0_i32_0 = arith.constant 0 : i32
    %c0_i32_1 = arith.constant 0 : i32
    return %arg0, %arg1, %c0_i32, %c0_i32_0 : i32, i32, i32, i32
  }
  func.func @transform_3(%arg0: i32, %arg1: i32) -> (i32, i32, i32, i32) {
    %c0_i32 = arith.constant 0 : i32
    %c0_i32_0 = arith.constant 0 : i32
    %c0_i32_1 = arith.constant 0 : i32
    return %arg0, %arg1, %c0_i32, %c0_i32_0 : i32, i32, i32, i32
  }
}

module attributes {stable_mosaic.version = 11 : i64} {
  func.func @_fused_linear_kernel(%arg0: i32, %arg1: memref<16x64xbf16, #tpu.memory_space<vmem>>, %arg2: memref<64x128xbf16, #tpu.memory_space<vmem>>, %arg3: memref<1x128xf32, #tpu.memory_space<vmem>>, %arg4: memref<16x128xbf16, #tpu.memory_space<vmem>>, %arg5: memref<16x128xbf16, #tpu.memory_space<vmem>>) attributes {dimension_semantics = [#tpu.dimension_semantics<parallel>], iteration_bounds = array<i64: 1>, scalar_prefetch = 0 : i64, scratch_operands = 0 : i64, tpu.core_type = #tpu.core_type<tc>, window_params = [{transform_indices = @transform_0, window_bounds = array<i64: 16, 64>}, {pipeline_mode = #tpu.pipeline_mode<synchronous>, transform_indices = @transform_1, window_bounds = array<i64: 64, 128>}, {pipeline_mode = #tpu.pipeline_mode<synchronous>, transform_indices = @transform_2, window_bounds = array<i64: 1, 128>}, {transform_indices = @transform_3, window_bounds = array<i64: 16, 128>}, {transform_indices = @transform_4, window_bounds = array<i64: 16, 128>}]} {
    %c0 = arith.constant 0 : index
    %c0_0 = arith.constant 0 : index
    %0 = vector.load %arg1[%c0, %c0_0] : memref<16x64xbf16, #tpu.memory_space<vmem>>, vector<16x64xbf16>
    %c0_1 = arith.constant 0 : index
    %c0_2 = arith.constant 0 : index
    %1 = vector.load %arg2[%c0_1, %c0_2] : memref<64x128xbf16, #tpu.memory_space<vmem>>, vector<64x128xbf16>
    %cst = arith.constant dense<0.000000e+00> : vector<16x128xf32>
    %2 = tpu.matmul %0, %1, %cst {dimension_numbers = #tpu.dot_dimension_numbers<[1], [0], [0], [1], [0, 0, 1, 1], [], []>} : vector<16x64xbf16>, vector<64x128xbf16>, vector<16x128xf32> -> vector<16x128xf32>
    %c0_3 = arith.constant 0 : index
    %c0_4 = arith.constant 0 : index
    %3 = vector.load %arg3[%c0_3, %c0_4] : memref<1x128xf32, #tpu.memory_space<vmem>>, vector<1x128xf32>
    %4 = vector.broadcast %3 : vector<1x128xf32> to vector<16x128xf32>
    %5 = arith.addf %2, %4 : vector<16x128xf32>
    %c0_5 = arith.constant 0 : index
    %c0_6 = arith.constant 0 : index
    %6 = vector.load %arg4[%c0_5, %c0_6] : memref<16x128xbf16, #tpu.memory_space<vmem>>, vector<16x128xbf16>
    %7 = arith.extf %6 : vector<16x128xbf16> to vector<16x128xf32>
    %8 = arith.addf %5, %7 : vector<16x128xf32>
    %9 = arith.truncf %8 : vector<16x128xf32> to vector<16x128xbf16>
    %c0_7 = arith.constant 0 : index
    %c0_8 = arith.constant 0 : index
    %10 = vector.load %arg5[%c0_7, %c0_8] : memref<16x128xbf16, #tpu.memory_space<vmem>>, vector<16x128xbf16>
    tpu.vector_store %arg5[%c0_7, %c0_8], %9 {strides = array<i32>} : memref<16x128xbf16, #tpu.memory_space<vmem>>, vector<16x128xbf16>,
    return
  }
  func.func @transform_0(%arg0: i32) -> (i32, i32) {
    %c0_i32 = arith.constant 0 : i32
    %c0_i32_0 = arith.constant 0 : i32
    return %arg0, %c0_i32 : i32, i32
  }
  func.func @transform_1(%arg0: i32) -> (i32, i32) {
    %c0_i32 = arith.constant 0 : i32
    %c0_i32_0 = arith.constant 0 : i32
    %c0_i32_1 = arith.constant 0 : i32
    return %c0_i32, %c0_i32_0 : i32, i32
  }
  func.func @transform_2(%arg0: i32) -> (i32, i32) {
    %c0_i32 = arith.constant 0 : i32
    %c0_i32_0 = arith.constant 0 : i32
    %c0_i32_1 = arith.constant 0 : i32
    return %c0_i32, %c0_i32_0 : i32, i32
  }
  func.func @transform_3(%arg0: i32) -> (i32, i32) {
    %c0_i32 = arith.constant 0 : i32
    %c0_i32_0 = arith.constant 0 : i32
    return %arg0, %c0_i32 : i32, i32
  }
  func.func @transform_4(%arg0: i32) -> (i32, i32) {
    %c0_i32 = arith.constant 0 : i32
    %c0_i32_0 = arith.constant 0 : i32
    return %arg0, %c0_i32 : i32, i32
  }
}

module attributes {stable_mosaic.version = 11 : i64} {
  func.func @_fused_linear_kernel(%arg0: i32, %arg1: memref<16x64xbf16, #tpu.memory_space<vmem>>, %arg2: memref<64x128xbf16, #tpu.memory_space<vmem>>, %arg3: memref<1x128xf32, #tpu.memory_space<vmem>>, %arg4: memref<1x64xf32, #tpu.memory_space<vmem>>, %arg5: memref<1x64xf32, #tpu.memory_space<vmem>>, %arg6: memref<16x128xbf16, #tpu.memory_space<vmem>>) attributes {dimension_semantics = [#tpu.dimension_semantics<parallel>], iteration_bounds = array<i64: 1>, scalar_prefetch = 0 : i64, scratch_operands = 0 : i64, tpu.core_type = #tpu.core_type<tc>, window_params = [{transform_indices = @transform_0, window_bounds = array<i64: 16, 64>}, {pipeline_mode = #tpu.pipeline_mode<synchronous>, transform_indices = @transform_1, window_bounds = array<i64: 64, 128>}, {pipeline_mode = #tpu.pipeline_mode<synchronous>, transform_indices = @transform_2, window_bounds = array<i64: 1, 128>}, {pipeline_mode = #tpu.pipeline_mode<synchronous>, transform_indices = @transform_3, window_bounds = array<i64: 1, 64>}, {pipeline_mode = #tpu.pipeline_mode<synchronous>, transform_indices = @transform_4, window_bounds = array<i64: 1, 64>}, {transform_indices = @transform_5, window_bounds = array<i64: 16, 128>}]} {
    %c0 = arith.constant 0 : index
    %c0_0 = arith.constant 0 : index
    %0 = vector.load %arg1[%c0, %c0_0] : memref<16x64xbf16, #tpu.memory_space<vmem>>, vector<16x64xbf16>
    %1 = arith.extf %0 : vector<16x64xbf16> to vector<16x64xf32>
    %cst = arith.constant dense<0.000000e+00> : vector<16xf32>
    %2 = vector.multi_reduction <add>, %1, %cst [1] : vector<16x64xf32> to vector<16xf32>
    %3 = vector.shape_cast %2 : vector<16xf32> to vector<16x1xf32>
    %cst_1 = arith.constant 6.400000e+01 : f32
    %4 = vector.broadcast %cst_1 : f32 to vector<16x1xf32>
    %5 = arith.divf %3, %4 : vector<16x1xf32>
    %6 = vector.broadcast %5 : vector<16x1xf32> to vector<16x64xf32>
    %7 = arith.subf %1, %6 : vector<16x64xf32>
    %8 = arith.mulf %7, %7 : vector<16x64xf32>
    %cst_2 = arith.constant dense<0.000000e+00> : vector<16xf32>
    %9 = vector.multi_reduction <add>, %8, %cst_2 [1] : vector<16x64xf32> to vector<16xf32>
    %10 = vector.shape_cast %9 : vector<16xf32> to vector<16x1xf32>
    %cst_3 = arith.constant 6.400000e+01 : f32
    %11 = vector.broadcast %cst_3 : f32 to vector<16x1xf32>
    %12 = arith.divf %10, %11 : vector<16x1xf32>
    %13 = vector.broadcast %5 : vector<16x1xf32> to vector<16x64xf32>
    %14 = arith.subf %1, %13 : vector<16x64xf32>
    %cst_4 = arith.constant 9.99999974E-6 : f32
    %15 = vector.broadcast %cst_4 : f32 to vector<16x1xf32>
    %16 = arith.addf %12, %15 : vector<16x1xf32>
    %17 = math.rsqrt %16 : vector<16x1xf32>
    %18 = vector.broadcast %17 : vector<16x1xf32> to vector<16x64xf32>
    %19 = arith.mulf %14, %18 : vector<16x64xf32>
    %c0_5 = arith.constant 0 : index
    %c0_6 = arith.constant 0 : index
    %20 = vector.load %arg4[%c0_5, %c0_6] : memref<1x64xf32, #tpu.memory_space<vmem>>, vector<1x64xf32>
    %21 = vector.broadcast %20 : vector<1x64xf32> to vector<16x64xf32>
    %22 = arith.mulf %19, %21 : vector<16x64xf32>
    %c0_7 = arith.constant 0 : index
    %c0_8 = arith.constant 0 : index
    %23 = vector.load %arg5[%c0_7, %c0_8] : memref<1x64xf32, #tpu.memory_space<vmem>>, vector<1x64xf32>
    %24 = vector.broadcast %23 : vector<1x64xf32> to vector<16x64xf32>
    %25 = arith.addf %22, %24 : vector<16x64xf32>
    %26 = arith.truncf %25 : vector<16x64xf32> to vector<16x64xbf16>
    %c0_9 = arith.constant 0 : index
    %c0_10 = arith.constant 0 : index
    %27 = vector.load %arg2[%c0_9, %c0_10] : memref<64x128xbf16, #tpu.memory_space<vmem>>, vector<64x128xbf16>
    %cst_11 = arith.constant dense<0.000000e+00> : vector<16x128xf32>
    %28 = tpu.matmul %26, %27, %cst_11 {dimension_numbers = #tpu.dot_dimension_numbers<[1], [0], [0], [1], [0, 0, 1, 1], [], []>} : vector<16x64xbf16>, vector<64x128xbf16>, vector<16x128xf32> -> vector<16x128xf32>
    %c0_12 = arith.constant 0 : index
    %c0_13 = arith.constant 0 : index
    %29 = vector.load %arg3[%c0_12, %c0_13] : memref<1x128xf32, #tpu.memory_space<vmem>>, vector<1x128xf32>
    %30 = vector.broadcast %29 : vector<1x128xf32> to vector<16x128xf32>
    %31 = arith.addf %28, %30 : vector<16x128xf32>
    %cst_14 = arith.constant 0.000000e+00 : f32
    %32 = vector.broadcast %cst_14 : f32 to vector<16x128xf32>
    %33 = arith.maximumf %31, %32 : vector<16x128xf32>
    %34 = arith.truncf %33 : vector<16x128xf32> to vector<16x128xbf16>
    %c0_15 = arith.constant 0 : index
    %c0_16 = arith.constant 0 : index
    %35 = vector.load %arg6[%c0_15, %c0_16] : memref<16x128xbf16, #tpu.memory_space<vmem>>, vector<16x128xbf16>
    tpu.vector_store %arg6[%c0_15, %c0_16], %34 {strides = array<i32>} : memref<16x128xbf16, #tpu.memory_space<vmem>>, vector<16x128xbf16>,
    return
  }
  func.func @transform_0(%arg0: i32) -> (i32, i32) {
    %c0_i32 = arith.constant 0 : i32
    %c0_i32_0 = arith.constant 0 : i32
    return %arg0, %c0_i32 : i32, i32
  }
  func.func @transform_1(%arg0: i32) -> (i32, i32) {
    %c0_i32 = arith.constant 0 : i32
    %c0_i32_0 = arith.constant 0 : i32
    %c0_i32_1 = arith.constant 0 : i32
    return %c0_i32, %c0_i32_0 : i32, i32
  }
  func.func @transform_2(%arg0: i32) -> (i32, i32) {
    %c0_i32 = arith.constant 0 : i32
    %c0_i32_0 = arith.constant 0 : i32
    %c0_i32_1 = arith.constant 0 : i32
    return %c0_i32, %c0_i32_0 : i32, i32
  }
  func.func @transform_3(%arg0: i32) -> (i32, i32) {
    %c0_i32 = arith.constant 0 : i32
    %c0_i32_0 = arith.constant 0 : i32
    %c0_i32_1 = arith.constant 0 : i32
    return %c0_i32, %c0_i32_0 : i32, i32
  }
  func.func @transform_4(%arg0: i32) -> (i32, i32) {
    %c0_i32 = arith.constant 0 : i32
    %c0_i32_0 = arith.constant 0 : i32
    %c0_i32_1 = arith.constant 0 : i32
    return %c0_i32, %c0_i32_0 : i32, i32
  }
  func.func @transform_5(%arg0: i32) -> (i32, i32) {
    %c0_i32 = arith.constant 0 : i32
    %c0_i32_0 = arith.constant 0 : i32
    return %arg0, %c0_i32 : i32, i32
  }
}

module attributes {stable_mosaic.version = 11 : i64} {
  func.func @_fused_linear_kernel(%arg0: i32, %arg1: memref<16x128xbf16, #tpu.memory_space<vmem>>, %arg2: memref<128x128xbf16, #tpu.memory_space<vmem>>, %arg3: memref<1x128xf32, #tpu.memory_space<vmem>>, %arg4: memref<16x128xbf16, #tpu.memory_space<vmem>>, %arg5: memref<16x128xbf16, #tpu.memory_space<vmem>>) attributes {dimension_semantics = [#tpu.dimension_semantics<parallel>], iteration_bounds = array<i64: 1>, scalar_prefetch = 0 : i64, scratch_operands = 0 : i64, tpu.core_type = #tpu.core_type<tc>, window_params = [{transform_indices = @transform_0, window_bounds = array<i64: 16, 128>}, {pipeline_mode = #tpu.pipeline_mode<synchronous>, transform_indices = @transform_1, window_bounds = array<i64: 128, 128>}, {pipeline_mode = #tpu.pipeline_mode<synchronous>, transform_indices = @transform_2, window_bounds = array<i64: 1, 128>}, {transform_indices = @transform_3, window_bounds = array<i64: 16, 128>}, {transform_indices = @transform_4, window_bounds = array<i64: 16, 128>}]} {
    %c0 = arith.constant 0 : index
    %c0_0 = arith.constant 0 : index
    %0 = vector.load %arg1[%c0, %c0_0] : memref<16x128xbf16, #tpu.memory_space<vmem>>, vector<16x128xbf16>
    %c0_1 = arith.constant 0 : index
    %c0_2 = arith.constant 0 : index
    %1 = vector.load %arg2[%c0_1, %c0_2] : memref<128x128xbf16, #tpu.memory_space<vmem>>, vector<128x128xbf16>
    %cst = arith.constant dense<0.000000e+00> : vector<16x128xf32>
    %2 = tpu.matmul %0, %1, %cst {dimension_numbers = #tpu.dot_dimension_numbers<[1], [0], [0], [1], [0, 0, 1, 1], [], []>} : vector<16x128xbf16>, vector<128x128xbf16>, vector<16x128xf32> -> vector<16x128xf32>
    %c0_3 = arith.constant 0 : index
    %c0_4 = arith.constant 0 : index
    %3 = vector.load %arg3[%c0_3, %c0_4] : memref<1x128xf32, #tpu.memory_space<vmem>>, vector<1x128xf32>
    %4 = vector.broadcast %3 : vector<1x128xf32> to vector<16x128xf32>
    %5 = arith.addf %2, %4 : vector<16x128xf32>
    %c0_5 = arith.constant 0 : index
    %c0_6 = arith.constant 0 : index
    %6 = vector.load %arg4[%c0_5, %c0_6] : memref<16x128xbf16, #tpu.memory_space<vmem>>, vector<16x128xbf16>
    %7 = arith.extf %6 : vector<16x128xbf16> to vector<16x128xf32>
    %8 = arith.addf %5, %7 : vector<16x128xf32>
    %9 = arith.truncf %8 : vector<16x128xf32> to vector<16x128xbf16>
    %c0_7 = arith.constant 0 : index
    %c0_8 = arith.constant 0 : index
    %10 = vector.load %arg5[%c0_7, %c0_8] : memref<16x128xbf16, #tpu.memory_space<vmem>>, vector<16x128xbf16>
    tpu.vector_store %arg5[%c0_7, %c0_8], %9 {strides = array<i32>} : memref<16x128xbf16, #tpu.memory_space<vmem>>, vector<16x128xbf16>,
    return
  }
  func.func @transform_0(%arg0: i32) -> (i32, i32) {
    %c0_i32 = arith.constant 0 : i32
    %c0_i32_0 = arith.constant 0 : i32
    return %arg0, %c0_i32 : i32, i32
  }
  func.func @transform_1(%arg0: i32) -> (i32, i32) {
    %c0_i32 = arith.constant 0 : i32
    %c0_i32_0 = arith.constant 0 : i32
    %c0_i32_1 = arith.constant 0 : i32
    return %c0_i32, %c0_i32_0 : i32, i32
  }
  func.func @transform_2(%arg0: i32) -> (i32, i32) {
    %c0_i32 = arith.constant 0 : i32
    %c0_i32_0 = arith.constant 0 : i32
    %c0_i32_1 = arith.constant 0 : i32
    return %c0_i32, %c0_i32_0 : i32, i32
  }
  func.func @transform_3(%arg0: i32) -> (i32, i32) {
    %c0_i32 = arith.constant 0 : i32
    %c0_i32_0 = arith.constant 0 : i32
    return %arg0, %c0_i32 : i32, i32
  }
  func.func @transform_4(%arg0: i32) -> (i32, i32) {
    %c0_i32 = arith.constant 0 : i32
    %c0_i32_0 = arith.constant 0 : i32
    return %arg0, %c0_i32 : i32, i32
  }
}

module attributes {stable_mosaic.version = 11 : i64} {
  func.func @_fused_linear_kernel(%arg0: i32, %arg1: memref<16x32xbf16, #tpu.memory_space<vmem>>, %arg2: memref<32x128xbf16, #tpu.memory_space<vmem>>, %arg3: memref<1x128xf32, #tpu.memory_space<vmem>>, %arg4: memref<16x128xf32, #tpu.memory_space<vmem>>) attributes {dimension_semantics = [#tpu.dimension_semantics<parallel>], iteration_bounds = array<i64: 1>, scalar_prefetch = 0 : i64, scratch_operands = 0 : i64, tpu.core_type = #tpu.core_type<tc>, window_params = [{transform_indices = @transform_0, window_bounds = array<i64: 16, 32>}, {pipeline_mode = #tpu.pipeline_mode<synchronous>, transform_indices = @transform_1, window_bounds = array<i64: 32, 128>}, {pipeline_mode = #tpu.pipeline_mode<synchronous>, transform_indices = @transform_2, window_bounds = array<i64: 1, 128>}, {transform_indices = @transform_3, window_bounds = array<i64: 16, 128>}]} {
    %c0 = arith.constant 0 : index
    %c0_0 = arith.constant 0 : index
    %0 = vector.load %arg1[%c0, %c0_0] : memref<16x32xbf16, #tpu.memory_space<vmem>>, vector<16x32xbf16>
    %c0_1 = arith.constant 0 : index
    %c0_2 = arith.constant 0 : index
    %1 = vector.load %arg2[%c0_1, %c0_2] : memref<32x128xbf16, #tpu.memory_space<vmem>>, vector<32x128xbf16>
    %cst = arith.constant dense<0.000000e+00> : vector<16x128xf32>
    %2 = tpu.matmul %0, %1, %cst {dimension_numbers = #tpu.dot_dimension_numbers<[1], [0], [0], [1], [0, 0, 1, 1], [], []>} : vector<16x32xbf16>, vector<32x128xbf16>, vector<16x128xf32> -> vector<16x128xf32>
    %c0_3 = arith.constant 0 : index
    %c0_4 = arith.constant 0 : index
    %3 = vector.load %arg3[%c0_3, %c0_4] : memref<1x128xf32, #tpu.memory_space<vmem>>, vector<1x128xf32>
    %4 = vector.broadcast %3 : vector<1x128xf32> to vector<16x128xf32>
    %5 = arith.addf %2, %4 : vector<16x128xf32>
    %c0_5 = arith.constant 0 : index
    %c0_6 = arith.constant 0 : index
    %6 = vector.load %arg4[%c0_5, %c0_6] : memref<16x128xf32, #tpu.memory_space<vmem>>, vector<16x128xf32>
    tpu.vector_store %arg4[%c0_5, %c0_6], %5 {strides = array<i32>} : memref<16x128xf32, #tpu.memory_space<vmem>>, vector<16x128xf32>,
    return
  }
  func.func @transform_0(%arg0: i32) -> (i32, i32) {
    %c0_i32 = arith.constant 0 : i32
    %c0_i32_0 = arith.constant 0 : i32
    return %arg0, %c0_i32 : i32, i32
  }
  func.func @transform_1(%arg0: i32) -> (i32, i32) {
    %c0_i32 = arith.constant 0 : i32
    %c0_i32_0 = arith.constant 0 : i32
    %c0_i32_1 = arith.constant 0 : i32
    return %c0_i32, %c0_i32_0 : i32, i32
  }
  func.func @transform_2(%arg0: i32) -> (i32, i32) {
    %c0_i32 = arith.constant 0 : i32
    %c0_i32_0 = arith.constant 0 : i32
    %c0_i32_1 = arith.constant 0 : i32
    return %c0_i32, %c0_i32_0 : i32, i32
  }
  func.func @transform_3(%arg0: i32) -> (i32, i32) {
    %c0_i32 = arith.constant 0 : i32
    %c0_i32_0 = arith.constant 0 : i32
    return %arg0, %c0_i32 : i32, i32
  }
}

</mosaic_0001>

<bundles_post_ra>
// kernel: forward.11
= control target key start
LH: loop header
LB: loop body
LE: loop exit
PB: predicated region body
PF: predicated region fallthrough
CT: control target
= control target key end

     0   :  { %v117_v0 = vmov 0.0   ;;  %vm118_vm0 = vmmov 0   ;;  %vm33_vm1 = vcmask 130048   ;;  %s154_s1 = inlined_call_operand.vmem [shape: bf16[16,128], index: 1, kind: input, shape index: {}]   ;;  %s155_s0 = inlined_call_operand.vmem [shape: f32[16,16], index: 0, kind: input, shape index: {}]   ;;  %s156_s2 = inlined_call_operand.vmem [shape: f32[1,128], index: 2, kind: input, shape index: {}]   ;;  %s157_s3 = inlined_call_operand.vmem [shape: bf16[16,128], index: 3, kind: output, shape index: {}]  }
   0x1   :  { %108 = vmatprep.subr.bf16.mxu0 %v117_v0  ;;  %v116_v1 = vld [vmem:[%s154_s1] sm:$0xff]   ;;  %110 = vmatprep.mubr.msk.bf16.mxu0 %vm118_vm0, %v117_v0  ;;  %v16_v3 = vld [vmem:[%s155_s0 + $0x8] sm:$0xff] }
   0x2   :  { %v15_v2 = vld [vmem:[%s155_s0] sm:$0xff]  ;;  %109 = vmatpush3.bf16.msra.mxu0 %v116_v1 }
   0x3   :  { %v17_v4 = vpack.c.bf16 %v16_v3, %v15_v2  ;;  %v94_v5 = vld [vmem:[%s156_s2] ss:$0 sm:$0xff] }
   0x5   :  { %111 = vmatmul.mubr.msk.bf16.vlgmr.msra.gmra.mxu0 %vm33_vm1, %v17_v4 }
  0xc5   :  { %v71_v6 = vpop.f32.mrf.mxu0 }
  0xc6   :  { %v72_v8 = vadd.f32 %v94_v5, %v71_v6 }
  0xc7   :  { %v112_v7 = vpop.f32.mrf.mxu0 }
  0xc8   :  { %v78_v12 = vmax.f32 %v72_v8, 0.0 }
  0xc9   :  { %v74_v9 = vpop.f32.mrf.mxu0 }
  0xca   :  { %v75_v10 = vadd.f32 %v94_v5, %v74_v9 }
  0xcb   :  { %v113_v11 = vpop.f32.mrf.mxu0 }
  0xcc   :  { %v79_v13 = vmax.f32 %v75_v10, 0.0 }
  0xce   :  { %v104_v14 = vpack.c.bf16 %v79_v13, %v78_v12 }
  0xd0   :  { %105 = vst [vmem:[%s157_s3] sm:$0xff] %v104_v14  }

// kernel: forward.12
= control target key start
LH: loop header
LB: loop body
LE: loop exit
PB: predicated region body
PF: predicated region fallthrough
CT: control target
= control target key end

     0   :  { %s1467_s12 = smov 0   ;;  %s1749_s0 = inlined_call_operand.vmem [shape: bf16[2,14,128], index: 0, kind: input, shape index: {}]   ;;  %s1750_s1 = inlined_call_operand.vmem [shape: bf16[7,128,128], index: 1, kind: input, shape index: {}]   ;;  %s1751_s2 = inlined_call_operand.vmem [shape: f32[1,128], index: 2, kind: input, shape index: {}]   ;;  %s1752_s3 = inlined_call_operand.vmem [shape: bf16[2,8,128], index: 3, kind: output, shape index: {}]  }
   0x1 LB: > { %s1002_s13 = sadd.s32 4294967295, %s1443_s12   ;;  %p1006_p0 = scmp.ge.s32.totalorder %s1443_s12, 1  ;;  %s1443_s12 = sphi %s1467_s12, %s13_s12  }
   0x2   : > { %p137_p1 = scmp.lt.s32.totalorder %s1443_s12, 3 }
   0x4   : > { %p138_p2 = pnand %p1006_p0, %p137_p1 }
   0x5   : > { %p160_p3 = scmp.lt.s32.totalorder (!%p138_p2), %s1002_s13, 1 }
   0x6   : > { %141 = sbr.rel (%p138_p2) target bundleno = 342 (0x156), region = 32 }
   0xb   : > { %v1380_v0 = vld [vmem:[%s1750_s1 + $0x78] sm:$0xff]   ;;  %v1445_v1 = vmov 0.0   ;;  %v1382_v3 = vld [vmem:[%s1750_s1 + $0x70] sm:$0xff]   ;;  %vm1446_vm0 = vmmov 0   ;;  %v1384_v5 = vld [vmem:[%s1750_s1 + $0x68] sm:$0xff]   ;;  %s1754_s13 = smov (!%p160_p3, %s1002_s13), 1 }
   0xc   : > { %1230 = vmatprep.subr.bf16.mxu0 %v1445_v1  ;;  %1250 = vmatprep.subr.bf16.mxu1 %v1445_v1  ;;  %v1381_v2 = vld [vmem:[%s1750_s1 + $0x38] sm:$0xff]   ;;  %v1383_v4 = vld [vmem:[%s1750_s1 + $0x30] sm:$0xff]   ;;  %v1385_v6 = vld [vmem:[%s1750_s1 + $0x28] sm:$0xff]   ;;  %s1166_s28 = sshll.u32 %s1754_s13, 3  ;;  %s1009_s5 = sshll.u32 %s1754_s13, 2 }
   0xd   : > { %1231 = vmatpush3.bf16.msra.mxu0 %v1380_v0  ;;  %1246 = vmatprep.mubr.msk.bf16.mxu0 %vm1446_vm0, %v1445_v1  ;;  %v1386_v7 = vld [vmem:[%s1750_s1 + $0x60] sm:$0xff]   ;;  %s164_s6 = scalar_lea.vmem %s1749_s0, %s1166_s28  ;;  %v1388_v9 = vld [vmem:[%s1750_s1 + $0x58] sm:$0xff]   ;;  %v1390_v14 = vld [vmem:[%s1750_s1 + $0x50] sm:$0xff]   ;;  %s168_s8 = scalar_lea.vmem %s1752_s3, %s1009_s5 }
   0xe   : > { %1251 = vmatpush3.bf16.msra.mxu1 %v1381_v2  ;;  %1232 = vmatprep.subr.bf16.mxu0 %v1445_v1  ;;  %v1387_v8 = vld [vmem:[%s1750_s1 + $0x20] sm:$0xff]   ;;  %v1389_v10 = vld [vmem:[%s1750_s1 + $0x18] sm:$0xff]   ;;  %v1391_v15 = vld [vmem:[%s1750_s1 + $0x10] sm:$0xff]  }
   0xf   : > { %1252 = vmatprep.subr.bf16.mxu1 %v1445_v1  ;;  %1266 = vmatprep.mubr.msk.bf16.mxu1 %vm1446_vm0, %v1445_v1  ;;  %v170_v11 = vld [vmem:[%s164_s6] sm:$0xf]  ;;  %v171_v12 = vld [vmem:[%s164_s6 + $0x4] sm:$0x7]  ;;  %v1392_v17 = vld [vmem:[%s1750_s1 + $0x48] sm:$0xff]  }
  0x10   : > { %v1525_v13 = vcombine.low %v170_v11, %v171_v12  ;;  %v1393_v18 = vld [vmem:[%s1750_s1 + $0x8] sm:$0xff]   ;;  %v1394_v21 = vld [vmem:[%s1750_s1 + $0x40] sm:$0xff]   ;;  %v1397_v27 = vld [vmem:[%s1750_s1 + $0xb8] sm:$0xff]  }
  0x11   : > { %1233 = vmatpush3.bf16.msra.mxu0 %v1382_v3  ;;  %v1395_v23 = vld [vmem:[%s1750_s1] sm:$0xff]   ;;  %v1398_v28 = vld [vmem:[%s1750_s1 + $0xf8] sm:$0xff]   ;;  %v1399_v29 = vld [vmem:[%s1750_s1 + $0xb0] sm:$0xff]  }
  0x12   : > { %1253 = vmatpush3.bf16.msra.mxu1 %v1383_v4  ;;  %1234 = vmatprep.subr.bf16.mxu0 %v1445_v1  ;;  %v1536_v16 = vshll.u32 %v1525_v13, 16  ;;  %v1547_v19 = vshrl.u32 %v1525_v13, 16  ;;  %v1400_v30 = vld [vmem:[%s1750_s1 + $0xf0] sm:$0xff]   ;;  %v1401_v31 = vld [vmem:[%s1750_s1 + $0xa8] sm:$0xff]   ;;  %v1403_v33 = vld [vmem:[%s1750_s1 + $0xa0] sm:$0xff]   ;;  %v411_v45 = vrot.slane %v1525_v13, 1 }
  0x13   : > { %1254 = vmatprep.subr.bf16.mxu1 %v1445_v1  ;;  %v1402_v32 = vld [vmem:[%s1750_s1 + $0xe8] sm:$0xff]   ;;  %v1404_v34 = vld [vmem:[%s1750_s1 + $0xe0] sm:$0xff]   ;;  %v1405_v35 = vld [vmem:[%s1750_s1 + $0x98] sm:$0xff]   ;;  %v629_v63 = vrot.slane %v1525_v13, 2 }
  0x14   : > { %v215_v20 = vrot.slane %v1536_v16, 1  ;;  %v737_v22 = vrot.slane %v1547_v19, 2  ;;  %v738_v24 = vrot.slane %v1536_v16, 3  ;;  %v1406_v36 = vld [vmem:[%s1750_s1 + $0xd8] sm:$0xff]   ;;  %v1407_v37 = vld [vmem:[%s1750_s1 + $0x90] sm:$0xff]   ;;  %v1409_v39 = vld [vmem:[%s1750_s1 + $0x88] sm:$0xff]  }
  0x15   : > { %1235 = vmatpush3.bf16.msra.mxu0 %v1384_v5  ;;  %v1408_v38 = vld [vmem:[%s1750_s1 + $0xd0] sm:$0xff]   ;;  %v1410_v40 = vld [vmem:[%s1750_s1 + $0xc8] sm:$0xff]   ;;  %v1411_v41 = vld [vmem:[%s1750_s1 + $0x80] sm:$0xff]   ;;  %v519_v42 = vrot.slane %v1547_v19, 1  ;;  %v520_v43 = vrot.slane %v1536_v16, 2 }
  0x16   : > { %1255 = vmatpush3.bf16.msra.mxu1 %v1385_v6  ;;  %1236 = vmatprep.subr.bf16.mxu0 %v1445_v1  ;;  %v216_v25 = vor.u32 %v215_v20, %v1547_v19  ;;  %v1561_v26 = vor.u32 %v738_v24, %v737_v22  ;;  %v1412_v44 = vld [vmem:[%s1750_s1 + $0xc0] sm:$0xff]   ;;  %v1413_v46 = vld [vmem:[%s1750_s1 + $0x138] sm:$0xff]   ;;  %v1415_v49 = vld [vmem:[%s1750_s1 + $0x130] sm:$0xff]  }
  0x17   : > { %1256 = vmatprep.subr.bf16.mxu1 %v1445_v1  ;;  %v521_v47 = vor.u32 %v520_v43, %v519_v42  ;;  %v1414_v48 = vld [vmem:[%s1750_s1 + $0x178] sm:$0xff]   ;;  %v1416_v50 = vld [vmem:[%s1750_s1 + $0x170] sm:$0xff]   ;;  %v1417_v51 = vld [vmem:[%s1750_s1 + $0x128] sm:$0xff]  }
  0x18   : > { %v1418_v52 = vld [vmem:[%s1750_s1 + $0x168] sm:$0xff]   ;;  %v1419_v53 = vld [vmem:[%s1750_s1 + $0x120] sm:$0xff]   ;;  %v1421_v55 = vld [vmem:[%s1750_s1 + $0x118] sm:$0xff]  }
  0x19   : > { %1237 = vmatpush3.bf16.msra.mxu0 %v1386_v7  ;;  %v1420_v54 = vld [vmem:[%s1750_s1 + $0x160] sm:$0xff]   ;;  %v1422_v56 = vld [vmem:[%s1750_s1 + $0x158] sm:$0xff]   ;;  %v1423_v57 = vld [vmem:[%s1750_s1 + $0x110] sm:$0xff]  }
  0x1a   : > { %1257 = vmatpush3.bf16.msra.mxu1 %v1387_v8  ;;  %1238 = vmatprep.subr.bf16.mxu0 %v1445_v1  ;;  %v1424_v58 = vld [vmem:[%s1750_s1 + $0x150] sm:$0xff]   ;;  %v1425_v59 = vld [vmem:[%s1750_s1 + $0x108] sm:$0xff]   ;;  %v1427_v61 = vld [vmem:[%s1750_s1 + $0x100] sm:$0xff]  }
  0x1b   : > { %1258 = vmatprep.subr.bf16.mxu1 %v1445_v1  ;;  %v1426_v60 = vld [vmem:[%s1750_s1 + $0x148] sm:$0xff]   ;;  %v1428_v62 = vld [vmem:[%s1750_s1 + $0x140] sm:$0xff]   ;;  %v1429_v0 = vld [vmem:[%s1750_s1 + $0x1b8] sm:$0xff]  }
  0x1c   : > { %v1430_v2 = vld [vmem:[%s1750_s1 + $0x1b0] sm:$0xff]   ;;  %v1431_v3 = vld [vmem:[%s1750_s1 + $0x1a8] sm:$0xff]   ;;  %v1432_v4 = vld [vmem:[%s1750_s1 + $0x1a0] sm:$0xff]  }
  0x1d   : > { %1239 = vmatpush3.bf16.msra.mxu0 %v1388_v9  ;;  %v1433_v5 = vld [vmem:[%s1750_s1 + $0x198] sm:$0xff]   ;;  %v1434_v6 = vld [vmem:[%s1750_s1 + $0x190] sm:$0xff]   ;;  %v1435_v7 = vld [vmem:[%s1750_s1 + $0x188] sm:$0xff]   ;;  %v847_v9 = vrot.slane %v1525_v13, 3 }
  0x1e   : > { %1259 = vmatpush3.bf16.msra.mxu1 %v1389_v10  ;;  %1240 = vmatprep.subr.bf16.mxu0 %v1445_v1  ;;  %v1436_v8 = vld [vmem:[%s1750_s1 + $0x180] sm:$0xff]  }
  0x1f   : > { %1260 = vmatprep.subr.bf16.mxu1 %v1445_v1 }
  0x21   : > { %1241 = vmatpush3.bf16.msra.mxu0 %v1390_v14 }
  0x22   : > { %1261 = vmatpush3.bf16.msra.mxu1 %v1391_v15  ;;  %1242 = vmatprep.subr.bf16.mxu0 %v1445_v1 }
  0x23   : > { %1262 = vmatprep.subr.bf16.mxu1 %v1445_v1 }
  0x25   : > { %1243 = vmatpush3.bf16.msra.mxu0 %v1392_v17 }
  0x26   : > { %1263 = vmatpush3.bf16.msra.mxu1 %v1393_v18  ;;  %1244 = vmatprep.subr.bf16.mxu0 %v1445_v1 }
  0x27   : > { %1264 = vmatprep.subr.bf16.mxu1 %v1445_v1 }
  0x29   : > { %1245 = vmatpush3.bf16.msra.mxu0 %v1394_v21 }
  0x2a   : > { %1265 = vmatpush3.bf16.msra.mxu1 %v1395_v23  ;;  %1270 = vmatprep.subr.bf16.mxu0 %v1445_v1 }
  0x2b   : > { %1290 = vmatprep.subr.bf16.mxu1 %v1445_v1 }
  0x2c   : > { %1247 = vmatmul.mubr.bf16.vlgmr.msra.gmra.mxu0 %v216_v25 }
  0x2d   : > { %1267 = vmatmul.mubr.bf16.vlgmr.msra.gmra.mxu1 %v170_v11  ;;  %1271 = vmatpush3.bf16.msra.mxu0 %v1397_v27 }
  0x2e   : > { %1291 = vmatpush3.bf16.msra.mxu1 %v1398_v28  ;;  %1272 = vmatprep.subr.bf16.mxu0 %v1445_v1 }
  0x2f   : > { %1292 = vmatprep.subr.bf16.mxu1 %v1445_v1  ;;  %1286 = vmatprep.mubr.msk.bf16.mxu0 %vm1446_vm0, %v1445_v1 }
  0x30   : > { %1306 = vmatprep.mubr.msk.bf16.mxu1 %vm1446_vm0, %v1445_v1 }
  0x31   : > { %1273 = vmatpush3.bf16.msra.mxu0 %v1399_v29 }
  0x32   : > { %1293 = vmatpush3.bf16.msra.mxu1 %v1400_v30  ;;  %1274 = vmatprep.subr.bf16.mxu0 %v1445_v1 }
  0x33   : > { %1294 = vmatprep.subr.bf16.mxu1 %v1445_v1 }
  0x35   : > { %1275 = vmatpush3.bf16.msra.mxu0 %v1401_v31 }
  0x36   : > { %1295 = vmatpush3.bf16.msra.mxu1 %v1402_v32  ;;  %1276 = vmatprep.subr.bf16.mxu0 %v1445_v1 }
  0x37   : > { %1296 = vmatprep.subr.bf16.mxu1 %v1445_v1 }
  0x39   : > { %1277 = vmatpush3.bf16.msra.mxu0 %v1403_v33 }
  0x3a   : > { %1297 = vmatpush3.bf16.msra.mxu1 %v1404_v34  ;;  %1278 = vmatprep.subr.bf16.mxu0 %v1445_v1 }
  0x3b   : > { %1298 = vmatprep.subr.bf16.mxu1 %v1445_v1 }
  0x3d   : > { %1279 = vmatpush3.bf16.msra.mxu0 %v1405_v35 }
  0x3e   : > { %1299 = vmatpush3.bf16.msra.mxu1 %v1406_v36  ;;  %1280 = vmatprep.subr.bf16.mxu0 %v1445_v1 }
  0x3f   : > { %1300 = vmatprep.subr.bf16.mxu1 %v1445_v1 }
  0x41   : > { %1281 = vmatpush3.bf16.msra.mxu0 %v1407_v37 }
  0x42   : > { %1301 = vmatpush3.bf16.msra.mxu1 %v1408_v38  ;;  %1282 = vmatprep.subr.bf16.mxu0 %v1445_v1 }
  0x43   : > { %1302 = vmatprep.subr.bf16.mxu1 %v1445_v1 }
  0x45   : > { %1283 = vmatpush3.bf16.msra.mxu0 %v1409_v39  ;;  %v1163_v39 = vld [vmem:[%s1751_s2] ss:$0 sm:$0xff] }
  0x46   : > { %1303 = vmatpush3.bf16.msra.mxu1 %v1410_v40  ;;  %1284 = vmatprep.subr.bf16.mxu0 %v1445_v1 }
  0x47   : > { %1304 = vmatprep.subr.bf16.mxu1 %v1445_v1 }
  0x49   : > { %1285 = vmatpush3.bf16.msra.mxu0 %v1411_v41 }
  0x4a   : > { %1305 = vmatpush3.bf16.msra.mxu1 %v1412_v44  ;;  %1310 = vmatprep.subr.bf16.mxu0 %v1445_v1 }
  0x4b   : > { %1330 = vmatprep.subr.bf16.mxu1 %v1445_v1 }
  0x4c   : > { %1287 = vmatmul.mubr.bf16.vlgmr.msra.gmra.mxu0 %v411_v45 }
  0x4d   : > { %1311 = vmatpush3.bf16.msra.mxu0 %v1413_v46  ;;  %1307 = vmatmul.mubr.bf16.vlgmr.msra.gmra.mxu1 %v521_v47 }
  0x4e   : > { %1331 = vmatpush3.bf16.msra.mxu1 %v1414_v48  ;;  %1312 = vmatprep.subr.bf16.mxu0 %v1445_v1 }
  0x4f   : > { %1332 = vmatprep.subr.bf16.mxu1 %v1445_v1  ;;  %1326 = vmatprep.mubr.msk.bf16.mxu0 %vm1446_vm0, %v1445_v1 }
  0x50   : > { %1346 = vmatprep.mubr.msk.bf16.mxu1 %vm1446_vm0, %v1445_v1 }
  0x51   : > { %1313 = vmatpush3.bf16.msra.mxu0 %v1415_v49 }
  0x52   : > { %1333 = vmatpush3.bf16.msra.mxu1 %v1416_v50  ;;  %1314 = vmatprep.subr.bf16.mxu0 %v1445_v1 }
  0x53   : > { %1334 = vmatprep.subr.bf16.mxu1 %v1445_v1 }
  0x55   : > { %1315 = vmatpush3.bf16.msra.mxu0 %v1417_v51 }
  0x56   : > { %1335 = vmatpush3.bf16.msra.mxu1 %v1418_v52  ;;  %1316 = vmatprep.subr.bf16.mxu0 %v1445_v1 }
  0x57   : > { %1336 = vmatprep.subr.bf16.mxu1 %v1445_v1 }
  0x59   : > { %1317 = vmatpush3.bf16.msra.mxu0 %v1419_v53 }
  0x5a   : > { %1337 = vmatpush3.bf16.msra.mxu1 %v1420_v54  ;;  %1318 = vmatprep.subr.bf16.mxu0 %v1445_v1 }
  0x5b   : > { %1338 = vmatprep.subr.bf16.mxu1 %v1445_v1 }
  0x5d   : > { %1319 = vmatpush3.bf16.msra.mxu0 %v1421_v55 }
  0x5e   : > { %1339 = vmatpush3.bf16.msra.mxu1 %v1422_v56  ;;  %1320 = vmatprep.subr.bf16.mxu0 %v1445_v1 }
  0x5f   : > { %1340 = vmatprep.subr.bf16.mxu1 %v1445_v1 }
  0x61   : > { %1321 = vmatpush3.bf16.msra.mxu0 %v1423_v57 }
  0x62   : > { %1341 = vmatpush3.bf16.msra.mxu1 %v1424_v58  ;;  %1322 = vmatprep.subr.bf16.mxu0 %v1445_v1 }
  0x63   : > { %1342 = vmatprep.subr.bf16.mxu1 %v1445_v1 }
  0x65   : > { %1323 = vmatpush3.bf16.msra.mxu0 %v1425_v59 }
  0x66   : > { %1343 = vmatpush3.bf16.msra.mxu1 %v1426_v60  ;;  %1324 = vmatprep.subr.bf16.mxu0 %v1445_v1 }
  0x67   : > { %1344 = vmatprep.subr.bf16.mxu1 %v1445_v1 }
  0x69   : > { %1325 = vmatpush3.bf16.msra.mxu0 %v1427_v61 }
  0x6a   : > { %1345 = vmatpush3.bf16.msra.mxu1 %v1428_v62  ;;  %1350 = vmatprep.subr.bf16.mxu0 %v1445_v1 }
  0x6c   : > { %1327 = vmatmul.mubr.bf16.vlgmr.msra.gmra.mxu0 %v629_v63 }
  0x6d   : > { %1351 = vmatpush3.bf16.msra.mxu0 %v1429_v0  ;;  %1347 = vmatmul.mubr.bf16.vlgmr.msra.gmra.mxu1 %v1561_v26 }
  0x6e   : > { %1352 = vmatprep.subr.bf16.mxu0 %v1445_v1  ;;  %1366 = vmatprep.mubr.msk.bf16.mxu0 %vm1446_vm0, %v1445_v1 }
  0x71   : > { %1353 = vmatpush3.bf16.msra.mxu0 %v1430_v2 }
  0x72   : > { %1354 = vmatprep.subr.bf16.mxu0 %v1445_v1 }
  0x75   : > { %1355 = vmatpush3.bf16.msra.mxu0 %v1431_v3 }
  0x76   : > { %1356 = vmatprep.subr.bf16.mxu0 %v1445_v1 }
  0x79   : > { %1357 = vmatpush3.bf16.msra.mxu0 %v1432_v4 }
  0x7a   : > { %1358 = vmatprep.subr.bf16.mxu0 %v1445_v1 }
  0x7d   : > { %1359 = vmatpush3.bf16.msra.mxu0 %v1433_v5 }
  0x7e   : > { %1360 = vmatprep.subr.bf16.mxu0 %v1445_v1 }
  0x81   : > { %1361 = vmatpush3.bf16.msra.mxu0 %v1434_v6 }
  0x82   : > { %1362 = vmatprep.subr.bf16.mxu0 %v1445_v1 }
  0x85   : > { %1363 = vmatpush3.bf16.msra.mxu0 %v1435_v7 }
  0x86   : > { %1364 = vmatprep.subr.bf16.mxu0 %v1445_v1 }
  0x89   : > { %1365 = vmatpush3.bf16.msra.mxu0 %v1436_v8 }
  0x8c   : > { %1367 = vmatmul.mubr.bf16.vlgmr.msra.gmra.mxu0 %v847_v9 }
  0xec   : > { %v300_v10 = vpop.f32.mrf.mxu0 }
  0xed   : > { %v388_v11 = vpop.f32.mrf.mxu1 }
  0xee   : > { %v389_v12 = vadd.f32 %v388_v11, %v300_v10  ;;  %v1248_v14 = vpop.f32.mrf.mxu0 }
  0xef   : > { %v1268_v15 = vpop.f32.mrf.mxu1 }
  0xf0   : > { %v303_v16 = vpop.f32.mrf.mxu0 }
  0xf1   : > { %v391_v17 = vpop.f32.mrf.mxu1 }
  0xf2   : > { %v1249_v18 = vpop.f32.mrf.mxu0 }
  0xf3   : > { %v1269_v19 = vpop.f32.mrf.mxu1 }
 0x10c   : > { %v495_v20 = vpop.f32.mrf.mxu0 }
 0x10d   : > { %v605_v21 = vpop.f32.mrf.mxu1  ;;  %v501_v34 = vadd.f32 %v495_v20, %v389_v12 }
 0x10e   : > { %v1288_v22 = vpop.f32.mrf.mxu0 }
 0x10f   : > { %v1308_v23 = vpop.f32.mrf.mxu1  ;;  %v611_v35 = vadd.f32 %v605_v21, %v501_v34 }
 0x110   : > { %v498_v24 = vpop.f32.mrf.mxu0 }
 0x111   : > { %v608_v25 = vpop.f32.mrf.mxu1 }
 0x112   : > { %v1289_v1 = vpop.f32.mrf.mxu0 }
 0x113   : > { %v1309_v26 = vpop.f32.mrf.mxu1 }
 0x12c   : > { %v713_v13 = vpop.f32.mrf.mxu0 }
 0x12d   : > { %v823_v27 = vpop.f32.mrf.mxu1  ;;  %v719_v36 = vadd.f32 %v713_v13, %v611_v35 }
 0x12e   : > { %v1328_v28 = vpop.f32.mrf.mxu0 }
 0x12f   : > { %v1348_v29 = vpop.f32.mrf.mxu1  ;;  %v829_v37 = vadd.f32 %v823_v27, %v719_v36 }
 0x130   : > { %v716_v30 = vpop.f32.mrf.mxu0 }
 0x131   : > { %v826_v31 = vpop.f32.mrf.mxu1 }
 0x132   : > { %v1329_v32 = vpop.f32.mrf.mxu0 }
 0x133   : > { %v1349_v33 = vpop.f32.mrf.mxu1 }
 0x14c   : > { %v931_v38 = vpop.f32.mrf.mxu0 }
 0x14d   : > { %v937_v40 = vadd.f32 %v931_v38, %v829_v37 }
 0x14e   : > { %v1368_v41 = vpop.f32.mrf.mxu0 }
 0x14f   : > { %v945_v42 = vadd.f32 %v1163_v39, %v937_v40 }
 0x150   : > { %v934_v43 = vpop.f32.mrf.mxu0 }
 0x151   : > { %v946_v44 = vmax.f32 %v945_v42, 0.0 }
 0x152   : > { %v1369_v45 = vpop.f32.mrf.mxu0 }
 0x153   : > { %v947_v46 = vpack.c.bf16 %v946_v44, %v946_v44 }
 0x155   : > { %948 = vst [vmem:[%s168_s8] sm:$0xf] %v947_v46 }
 0x156 PF: > { %s13_s12 = sadd.s32 1, %s1443_s12  }
 0x157   : > { %p10_p4 = scmp.ge.s32.totalorder %s13_s12, 4  }
 0x159   :  { %12 = sbr.rel (!%p10_p4) target bundleno = 1 (0x1), region = 68 }

// kernel: forward.13
= control target key start
LH: loop header
LB: loop body
LE: loop exit
PB: predicated region body
PF: predicated region fallthrough
CT: control target
= control target key end

     0   :  { %v315_v1 = vmov 0   ;;  %vm140_vm0 = vcmask 523264   ;;  %v35_v18 = vlaneseq  ;;  %s402_s1 = inlined_call_operand.vmem [shape: bf16[64,512], index: 1, kind: input, shape index: {}]   ;;  %s403_s0 = inlined_call_operand.vmem [shape: bf16[16,64], index: 0, kind: input, shape index: {}]   ;;  %s404_s2 = inlined_call_operand.vmem [shape: f32[1,512], index: 2, kind: input, shape index: {}]   ;;  %s405_s3 = inlined_call_operand.vmem [shape: bf16[16,512], index: 3, kind: output, shape index: {}]  }
   0x1   :  { %v290_v0 = vld [vmem:[%s402_s1 + $0x64] ss:$16 sps:$4 sm:$0xff]   ;;  %176 = vmatprep.mubr.bf16.mxu0 %v315_v1  ;;  %219 = vmatprep.mubr.bf16.mxu1 %v315_v1  ;;  %v292_v2 = vld [vmem:[%s402_s1 + $0x6c] ss:$16 sps:$4 sm:$0xff]   ;;  %v294_v3 = vld [vmem:[%s402_s1 + $0x60] ss:$16 sps:$4 sm:$0xff]  }
   0x2   :  { %152 = vmatprep.subr.bf16.mxu0 %v290_v0  ;;  %v295_v4 = vld [vmem:[%s402_s1 + $0x68] ss:$16 sps:$4 sm:$0xff]   ;;  %195 = vmatprep.subr.bf16.mxu1 %v292_v2  ;;  %v296_v5 = vld [vmem:[%s402_s1 + $0x44] ss:$16 sps:$4 sm:$0xff]   ;;  %v298_v6 = vld [vmem:[%s402_s1 + $0x4c] ss:$16 sps:$4 sm:$0xff]  }
   0x3   :  { %153 = vmatpush1.bf16.msra.mxu0 %v294_v3  ;;  %196 = vmatpush1.bf16.msra.mxu1 %v295_v4  ;;  %v300_v7 = vld [vmem:[%s402_s1 + $0x40] ss:$16 sps:$4 sm:$0xff]   ;;  %v301_v8 = vld [vmem:[%s402_s1 + $0x48] ss:$16 sps:$4 sm:$0xff]   ;;  %v302_v9 = vld [vmem:[%s402_s1 + $0x24] ss:$16 sps:$4 sm:$0xff]  }
   0x4   :  { %154 = vmatprep.subr.bf16.mxu0 %v296_v5  ;;  %197 = vmatprep.subr.bf16.mxu1 %v298_v6  ;;  %v304_v10 = vld [vmem:[%s402_s1 + $0x2c] ss:$16 sps:$4 sm:$0xff]   ;;  %v306_v11 = vld [vmem:[%s402_s1 + $0x20] ss:$16 sps:$4 sm:$0xff]   ;;  %v307_v12 = vld [vmem:[%s402_s1 + $0x28] ss:$16 sps:$4 sm:$0xff]  }
   0x5   :  { %v308_v13 = vld [vmem:[%s402_s1 + $0x4] ss:$16 sps:$4 sm:$0xff]   ;;  %v310_v14 = vld [vmem:[%s402_s1 + $0xc] ss:$16 sps:$4 sm:$0xff]   ;;  %v312_v15 = vld [vmem:[%s402_s1] ss:$16 sps:$4 sm:$0xff]  }
   0x6   :  { %v313_v16 = vld [vmem:[%s402_s1 + $0x8] ss:$16 sps:$4 sm:$0xff]   ;;  %v314_v17 = vld [vmem:[%s403_s0] sm:$0xff]   ;;  %v36_v19 = vshrl.u32 %v35_v18, 7 }
   0x7   :  { %155 = vmatpush1.bf16.msra.mxu0 %v300_v7  ;;  %198 = vmatpush1.bf16.msra.mxu1 %v301_v8  ;;  %v33_v24 = vld [vmem:[%s404_s2] sm:$0xf] }
   0x8   :  { %156 = vmatprep.subr.bf16.mxu0 %v302_v9  ;;  %199 = vmatprep.subr.bf16.mxu1 %v304_v10  ;;  %v37_v20 = vsub.s32 0, %v36_v19  ;;  %v45_v21 = vsub.s32 2, %v36_v19  ;;  %v41_v22 = vsub.s32 1, %v36_v19  ;;  %v49_v23 = vsub.s32 3, %v36_v19 }
   0xa   :  { %v38_v25 = vrot.slane %v33_v24, %v37_v20  ;;  %v46_v26 = vrot.slane %v33_v24, %v45_v21  ;;  %v42_v27 = vrot.slane %v33_v24, %v41_v22  ;;  %v50_v28 = vrot.slane %v33_v24, %v49_v23 }
   0xb   :  { %157 = vmatpush1.bf16.msra.mxu0 %v306_v11  ;;  %200 = vmatpush1.bf16.msra.mxu1 %v307_v12 }
   0xc   :  { %158 = vmatprep.subr.bf16.mxu0 %v308_v13  ;;  %201 = vmatprep.subr.bf16.mxu1 %v310_v14 }
   0xf   :  { %159 = vmatpush1.bf16.msra.mxu0 %v312_v15  ;;  %202 = vmatpush1.bf16.msra.mxu1 %v313_v16 }
  0x12   :  { %279 = vmatmul.mubr.msk.bf16.vlgmr.msra.gmra.mxu0 %vm140_vm0, %v314_v17  ;;  %280 = vmatmul.mubr.msk.bf16.vlgmr.msra.gmra.mxu1 %vm140_vm0, %v314_v17 }
  0xd2   :  { %v178_v29 = vpop.f32.mrf.mxu0  ;;  %v221_v30 = vpop.f32.mrf.mxu1 }
  0xd3   :  { %v179_v33 = vadd.f32 %v178_v29, %v38_v25  ;;  %v222_v34 = vadd.f32 %v221_v30, %v46_v26 }
  0xd4   :  { %v180_v31 = vpop.f32.mrf.mxu0  ;;  %v223_v32 = vpop.f32.mrf.mxu1 }
  0xd5   :  { %v181_v35 = vadd.f32 %v180_v31, %v42_v27  ;;  %v224_v36 = vadd.f32 %v223_v32, %v50_v28 }
  0xd6   :  { %v182_v37 = vpop.f32.mrf.mxu0  ;;  %v225_v38 = vpop.f32.mrf.mxu1 }
  0xd7   :  { %v285_v39 = vpack.c.bf16 %v181_v35, %v179_v33  ;;  %v286_v40 = vpack.c.bf16 %v224_v36, %v222_v34  ;;  %v183_v43 = vadd.f32 %v182_v37, %v38_v25  ;;  %v226_v44 = vadd.f32 %v225_v38, %v46_v26 }
  0xd8   :  { %v184_v41 = vpop.f32.mrf.mxu0  ;;  %v227_v42 = vpop.f32.mrf.mxu1 }
  0xd9   :  { %254 = vst [vmem:[%s405_s3] sm:$0xff] %v285_v39  ;;  %255 = vst [vmem:[%s405_s3 + $0x8] sm:$0xff] %v286_v40  ;;  %v185_v45 = vadd.f32 %v184_v41, %v42_v27  ;;  %v228_v46 = vadd.f32 %v227_v42, %v50_v28 }
  0xdb   :  { %v287_v47 = vpack.c.bf16 %v185_v45, %v183_v43  ;;  %v288_v48 = vpack.c.bf16 %v228_v46, %v226_v44 }
  0xdd   :  { %256 = vst [vmem:[%s405_s3 + $0x10] sm:$0xff] %v287_v47  ;;  %257 = vst [vmem:[%s405_s3 + $0x18] sm:$0xff] %v288_v48 }

// kernel: forward.15
= control target key start
LH: loop header
LB: loop body
LE: loop exit
PB: predicated region body
PF: predicated region fallthrough
CT: control target
= control target key end

     0   :  { %vm25_vm0 = vcmask 523264   ;;  %v232_v16 = vmov 0   ;;  %v82_v41 = vlaneseq  ;;  %s310_s0 = inlined_call_operand.vmem [shape: bf16[16,64], index: 0, kind: input, shape index: {}]   ;;  %s311_s1 = inlined_call_operand.vmem [shape: bf16[64,256], index: 1, kind: input, shape index: {}]   ;;  %s312_s3 = inlined_call_operand.vmem [shape: f32[1,64], index: 3, kind: input, shape index: {}]   ;;  %s313_s4 = inlined_call_operand.vmem [shape: f32[1,64], index: 4, kind: input, shape index: {}]   ;;  %s314_s2 = inlined_call_operand.vmem [shape: f32[1,256], index: 2, kind: input, shape index: {}]   ;;  %s315_s5 = inlined_call_operand.vmem [shape: bf16[16,256], index: 5, kind: output, shape index: {}]  }
   0x1   :  { %v212_v0 = vld [vmem:[%s310_s0] sm:$0xff]   ;;  %v216_v15 = vld [vmem:[%s311_s1 + $0x34] ss:$8 sps:$4 sm:$0xff]   ;;  %167 = vmatprep.mubr.bf16.mxu0 %v232_v16  ;;  %v218_v17 = vld [vmem:[%s311_s1 + $0x30] ss:$8 sps:$4 sm:$0xff]  }
   0x2   :  { %v213_v1 = vunpack.c.l.bf16 %v212_v0  ;;  %v214_v2 = vunpack.c.h.bf16 %v212_v0  ;;  %143 = vmatprep.subr.bf16.mxu0 %v216_v15  ;;  %v219_v18 = vld [vmem:[%s311_s1 + $0x24] ss:$8 sps:$4 sm:$0xff]   ;;  %v221_v19 = vld [vmem:[%s311_s1 + $0x20] ss:$8 sps:$4 sm:$0xff]   ;;  %v222_v20 = vld [vmem:[%s311_s1 + $0x14] ss:$8 sps:$4 sm:$0xff]  }
   0x3   :  { %144 = vmatpush1.bf16.msra.mxu0 %v218_v17  ;;  %v224_v21 = vld [vmem:[%s311_s1 + $0x10] ss:$8 sps:$4 sm:$0xff]   ;;  %v225_v22 = vld [vmem:[%s311_s1 + $0x4] ss:$8 sps:$4 sm:$0xff]   ;;  %v227_v23 = vld [vmem:[%s311_s1] ss:$8 sps:$4 sm:$0xff]  }
   0x4   :  { %v26_v3 = vsel %vm25_vm0, %v213_v1, 0.0  ;;  %v29_v4 = vsel %vm25_vm0, %v214_v2, 0.0  ;;  %145 = vmatprep.subr.bf16.mxu0 %v219_v18  ;;  %v196_v32 = vld [vmem:[%s312_s3] ss:$0 sm:$0xff]  ;;  %v83_v42 = vshrl.u32 %v82_v41, 7 }
   0x5   :  { %27 = vadd.xlane.f32.xlu0 %v26_v3  ;;  %v197_v36 = vld [vmem:[%s313_s4] ss:$0 sm:$0xff] }
   0x6   :  { %v84_v43 = vsub.s32 0, %v83_v42  ;;  %v88_v44 = vsub.s32 1, %v83_v42  ;;  %v80_v45 = vld [vmem:[%s314_s2] sm:$0x3] }
   0x7   :  { %146 = vmatpush1.bf16.msra.mxu0 %v221_v19 }
   0x8   :  { %147 = vmatprep.subr.bf16.mxu0 %v222_v20  ;;  %v85_v46 = vrot.slane %v80_v45, %v84_v43  ;;  %v89_v47 = vrot.slane %v80_v45, %v88_v44 }
   0x9   :  { %30 = vadd.xlane.f32.xlu0 %v29_v4 }
   0xb   :  { %148 = vmatpush1.bf16.msra.mxu0 %v224_v21 }
   0xc   :  { %149 = vmatprep.subr.bf16.mxu0 %v225_v22 }
   0xf   :  { %150 = vmatpush1.bf16.msra.mxu0 %v227_v23 }
  0x8e   :  { %v28_v5 = vpop.xlane.xlu0 %27 }
  0x8f   :  { %v33_v6 = vmul.f32 0.015625, %v28_v5 }
  0x91   :  { %v35_v7 = vsub.f32 %v213_v1, %v33_v6 }
  0x92   :  { %v31_v8 = vpop.xlane.xlu0 %30 }
  0x93   :  { %v34_v9 = vmul.f32 0.015625, %v31_v8  ;;  %v37_v10 = vmul.f32 %v35_v7, %v35_v7 }
  0x95   :  { %v36_v11 = vsub.f32 %v214_v2, %v34_v9  ;;  %v39_v12 = vsel %vm25_vm0, %v37_v10, 0.0 }
  0x96   :  { %40 = vadd.xlane.f32.xlu1 %v39_v12 }
  0x97   :  { %v38_v13 = vmul.f32 %v36_v11, %v36_v11 }
  0x99   :  { %v42_v14 = vsel %vm25_vm0, %v38_v13, 0.0 }
  0x9a   :  { %43 = vadd.xlane.f32.xlu1 %v42_v14 }
 0x11f   :  { %v41_v24 = vpop.xlane.xlu1 %40 }
 0x120   :  { %v45_v25 = vmul.f32 0.015625, %v41_v24 }
 0x122   :  { %v47_v26 = vadd.f32 1e-05, %v45_v25 }
 0x123   :  { %v44_v27 = vpop.xlane.xlu1 %43 }
 0x124   :  { %228 = vrsqrt.f32 %v47_v26  ;;  %v46_v28 = vmul.f32 0.015625, %v44_v27 }
 0x126   :  { %v48_v29 = vadd.f32 1e-05, %v46_v28 }
 0x128   :  { %230 = vrsqrt.f32 %v48_v29 }
 0x131   :  { %v229_v30 = vpop.eup %228 }
 0x132   :  { %v51_v31 = vmul.f32 %v229_v30, %v35_v7 }
 0x134   :  { %v60_v35 = vmul.f32 %v196_v32, %v51_v31 }
 0x135   :  { %v231_v33 = vpop.eup %230 }
 0x136   :  { %v52_v34 = vmul.f32 %v231_v33, %v36_v11  ;;  %v69_v38 = vadd.f32 %v197_v36, %v60_v35 }
 0x138   :  { %v61_v37 = vmul.f32 %v196_v32, %v52_v34 }
 0x13a   :  { %v70_v39 = vadd.f32 %v197_v36, %v61_v37 }
 0x13c   :  { %v71_v40 = vpack.c.bf16 %v70_v39, %v69_v38 }
 0x13e   :  { %206 = vmatmul.mubr.msk.bf16.vlgmr.msra.gmra.mxu0 %vm25_vm0, %v71_v40 }
 0x1fe   :  { %v169_v48 = vpop.f32.mrf.mxu0 }
 0x1ff   :  { %v170_v50 = vadd.f32 %v169_v48, %v85_v46 }
 0x200   :  { %v171_v49 = vpop.f32.mrf.mxu0 }
 0x201   :  { %v172_v51 = vadd.f32 %v171_v49, %v89_v47 }
 0x202   :  { %v173_v52 = vpop.f32.mrf.mxu0 }
 0x203   :  { %v209_v53 = vpack.c.bf16 %v172_v51, %v170_v50  ;;  %v174_v55 = vadd.f32 %v173_v52, %v85_v46 }
 0x204   :  { %v175_v54 = vpop.f32.mrf.mxu0 }
 0x205   :  { %190 = vst [vmem:[%s315_s5] sm:$0xff] %v209_v53  ;;  %v176_v56 = vadd.f32 %v175_v54, %v89_v47 }
 0x207   :  { %v210_v57 = vpack.c.bf16 %v176_v56, %v174_v55 }
 0x209   :  { %191 = vst [vmem:[%s315_s5 + $0x8] sm:$0xff] %v210_v57 }

// kernel: forward.14
= control target key start
LH: loop header
LB: loop body
LE: loop exit
PB: predicated region body
PF: predicated region fallthrough
CT: control target
= control target key end

     0   :  { %v3052_v3 = vmov 0.0   ;;  %s3047_s1 = inlined_call_operand.vmem [shape: f32[128,512], index: 1, kind: input, shape index: {}]   ;;  %s3048_s0 = inlined_call_operand.vmem [shape: bf16[8,8,512], index: 0, kind: input, shape index: {}]   ;;  %s3049_s2 = inlined_call_operand.vmem [shape: bf16[8,8,128], index: 2, kind: output, shape index: {}]  }
   0x1   :  { %v1784_v0 = vld [vmem:[%s3047_s1 + $0x1e8] sm:$0xff]  ;;  %v1789_v1 = vld [vmem:[%s3047_s1 + $0x1e0] sm:$0xff]  ;;  %153 = vmatprep.mubr.f32.mxu0 %v3052_v3  ;;  %224 = vmatprep.mubr.f32.mxu1 %v3052_v3  ;;  %v1831_v9 = vld [vmem:[%s3047_s1 + $0x1f8] sm:$0xff] }
   0x2   :  { %3132 = vst [vmem:[#allocation4_spill] sm:$0xff] %v1784_v0  ;;  %v1794_v2 = vld [vmem:[%s3047_s1 + $0x1c8] sm:$0xff]  ;;  %89 = vmatprep.subr.mxu0 %v1784_v0  ;;  %v1802_v4 = vld [vmem:[%s3047_s1 + $0x1c0] sm:$0xff]  ;;  %3133 = vst [vmem:[#allocation5_spill] sm:$0xff] %v1831_v9  ;;  %160 = vmatprep.subr.mxu1 %v1831_v9 }
   0x3   :  { %90 = vmatpush1.msra.mxu0 %v1789_v1  ;;  %v1808_v5 = vld [vmem:[%s3047_s1 + $0x1a8] sm:$0xff]  ;;  %v1814_v6 = vld [vmem:[%s3047_s1 + $0x1a0] sm:$0xff]  ;;  %v1843_v11 = vld [vmem:[%s3047_s1 + $0x1f0] sm:$0xff] }
   0x4   :  { %91 = vmatprep.subr.mxu0 %v1794_v2  ;;  %v1820_v7 = vld [vmem:[%s3047_s1 + $0x188] sm:$0xff]  ;;  %v1826_v8 = vld [vmem:[%s3047_s1 + $0x180] sm:$0xff]  ;;  %161 = vmatpush1.msra.mxu1 %v1843_v11  ;;  %v1855_v13 = vld [vmem:[%s3047_s1 + $0x1d8] sm:$0xff] }
   0x5   :  { %92 = vmatpush1.msra.mxu0 %v1802_v4  ;;  %v1837_v10 = vld [vmem:[%s3047_s1 + $0x168] sm:$0xff]  ;;  %v1849_v12 = vld [vmem:[%s3047_s1 + $0x160] sm:$0xff]  ;;  %v1860_v14 = vld [vmem:[%s3047_s1 + $0x1d0] sm:$0xff]  ;;  %162 = vmatprep.subr.mxu1 %v1855_v13 }
   0x6   :  { %93 = vmatprep.subr.mxu0 %v1808_v5  ;;  %v1866_v15 = vld [vmem:[%s3047_s1 + $0x148] sm:$0xff]  ;;  %v1872_v16 = vld [vmem:[%s3047_s1 + $0x1b8] sm:$0xff]  ;;  %v1878_v17 = vld [vmem:[%s3047_s1 + $0x140] sm:$0xff]  ;;  %163 = vmatpush1.msra.mxu1 %v1860_v14 }
   0x7   :  { %94 = vmatpush1.msra.mxu0 %v1814_v6  ;;  %v1884_v18 = vld [vmem:[%s3047_s1 + $0x1b0] sm:$0xff]  ;;  %v1889_v19 = vld [vmem:[%s3047_s1 + $0x198] sm:$0xff]  ;;  %v1895_v20 = vld [vmem:[%s3047_s1 + $0x128] sm:$0xff]  ;;  %164 = vmatprep.subr.mxu1 %v1872_v16 }
   0x8   :  { %95 = vmatprep.subr.mxu0 %v1820_v7  ;;  %v1901_v21 = vld [vmem:[%s3047_s1 + $0x190] sm:$0xff]  ;;  %v1907_v22 = vld [vmem:[%s3047_s1 + $0x120] sm:$0xff]  ;;  %165 = vmatpush1.msra.mxu1 %v1884_v18  ;;  %v1913_v23 = vld [vmem:[%s3047_s1 + $0x178] sm:$0xff] }
   0x9   :  { %96 = vmatpush1.msra.mxu0 %v1826_v8  ;;  %v1919_v24 = vld [vmem:[%s3047_s1 + $0x108] sm:$0xff]  ;;  %166 = vmatprep.subr.mxu1 %v1889_v19  ;;  %v1925_v25 = vld [vmem:[%s3047_s1 + $0x170] sm:$0xff]  ;;  %v1931_v26 = vld [vmem:[%s3047_s1 + $0x100] sm:$0xff] }
   0xa   :  { %97 = vmatprep.subr.mxu0 %v1837_v10  ;;  %167 = vmatpush1.msra.mxu1 %v1901_v21  ;;  %v1937_v27 = vld [vmem:[%s3047_s1 + $0x158] sm:$0xff]  ;;  %v1943_v28 = vld [vmem:[%s3047_s1 + $0xe8] sm:$0xff]  ;;  %v1949_v29 = vld [vmem:[%s3047_s1 + $0x150] sm:$0xff] }
   0xb   :  { %98 = vmatpush1.msra.mxu0 %v1849_v12  ;;  %168 = vmatprep.subr.mxu1 %v1913_v23  ;;  %v1955_v30 = vld [vmem:[%s3047_s1 + $0xe0] sm:$0xff]  ;;  %v1961_v31 = vld [vmem:[%s3047_s1 + $0x138] sm:$0xff]  ;;  %v1967_v32 = vld [vmem:[%s3047_s1 + $0xc8] sm:$0xff] }
   0xc   :  { %99 = vmatprep.subr.mxu0 %v1866_v15  ;;  %169 = vmatpush1.msra.mxu1 %v1925_v25  ;;  %v1973_v33 = vld [vmem:[%s3047_s1 + $0x130] sm:$0xff]  ;;  %v1979_v34 = vld [vmem:[%s3047_s1 + $0xc0] sm:$0xff]  ;;  %v1985_v35 = vld [vmem:[%s3047_s1 + $0x118] sm:$0xff] }
   0xd   :  { %100 = vmatpush1.msra.mxu0 %v1878_v17  ;;  %170 = vmatprep.subr.mxu1 %v1937_v27  ;;  %v1991_v36 = vld [vmem:[%s3047_s1 + $0xa8] sm:$0xff]  ;;  %v1997_v37 = vld [vmem:[%s3047_s1 + $0x110] sm:$0xff]  ;;  %v2003_v38 = vld [vmem:[%s3047_s1 + $0xa0] sm:$0xff] }
   0xe   :  { %101 = vmatprep.subr.mxu0 %v1895_v20  ;;  %171 = vmatpush1.msra.mxu1 %v1949_v29  ;;  %v2009_v39 = vld [vmem:[%s3047_s1 + $0xf8] sm:$0xff]  ;;  %v2015_v40 = vld [vmem:[%s3047_s1 + $0x88] sm:$0xff]  ;;  %v2021_v41 = vld [vmem:[%s3047_s1 + $0xf0] sm:$0xff] }
   0xf   :  { %102 = vmatpush1.msra.mxu0 %v1907_v22  ;;  %172 = vmatprep.subr.mxu1 %v1961_v31  ;;  %v2027_v42 = vld [vmem:[%s3047_s1 + $0x80] sm:$0xff]  ;;  %v2033_v43 = vld [vmem:[%s3047_s1 + $0xd8] sm:$0xff]  ;;  %v2039_v44 = vld [vmem:[%s3047_s1 + $0x68] sm:$0xff] }
  0x10   :  { %103 = vmatprep.subr.mxu0 %v1919_v24  ;;  %173 = vmatpush1.msra.mxu1 %v1973_v33  ;;  %3134 = vst [vmem:[#allocation6_spill] sm:$0xff] %v2027_v42  ;;  %3135 = vst [vmem:[#allocation7_spill] sm:$0xff] %v2039_v44  ;;  %v2045_v45 = vld [vmem:[%s3047_s1 + $0xd0] sm:$0xff]  ;;  %v2051_v46 = vld [vmem:[%s3047_s1 + $0x60] sm:$0xff] }
  0x11   :  { %104 = vmatpush1.msra.mxu0 %v1931_v26  ;;  %174 = vmatprep.subr.mxu1 %v1985_v35  ;;  %3136 = vst [vmem:[#allocation8_spill] sm:$0xff] %v2051_v46  ;;  %v2057_v47 = vld [vmem:[%s3047_s1 + $0xb8] sm:$0xff]  ;;  %v2063_v48 = vld [vmem:[%s3047_s1 + $0x48] sm:$0xff]  ;;  %v2069_v49 = vld [vmem:[%s3047_s1 + $0xb0] sm:$0xff] }
  0x12   :  { %105 = vmatprep.subr.mxu0 %v1943_v28  ;;  %175 = vmatpush1.msra.mxu1 %v1997_v37  ;;  %3137 = vst [vmem:[#allocation9_spill] sm:$0xff] %v2063_v48  ;;  %v2075_v50 = vld [vmem:[%s3047_s1 + $0x40] sm:$0xff]  ;;  %v2081_v51 = vld [vmem:[%s3047_s1 + $0x98] sm:$0xff]  ;;  %v2087_v52 = vld [vmem:[%s3047_s1 + $0x28] sm:$0xff] }
  0x13   :  { %106 = vmatpush1.msra.mxu0 %v1955_v30  ;;  %176 = vmatprep.subr.mxu1 %v2009_v39  ;;  %3138 = vst [vmem:[#allocation10_spill] sm:$0xff] %v2075_v50  ;;  %3139 = vst [vmem:[#allocation11_spill] sm:$0xff] %v2087_v52  ;;  %v2093_v53 = vld [vmem:[%s3047_s1 + $0x90] sm:$0xff]  ;;  %v2099_v54 = vld [vmem:[%s3047_s1 + $0x20] sm:$0xff] }
  0x14   :  { %107 = vmatprep.subr.mxu0 %v1967_v32  ;;  %177 = vmatpush1.msra.mxu1 %v2021_v41  ;;  %3140 = vst [vmem:[#allocation12_spill] sm:$0xff] %v2093_v53  ;;  %3141 = vst [vmem:[#allocation13_spill] sm:$0xff] %v2099_v54  ;;  %v2105_v55 = vld [vmem:[%s3047_s1 + $0x78] sm:$0xff]  ;;  %v2111_v56 = vld [vmem:[%s3047_s1 + $0x8] sm:$0xff] }
  0x15   :  { %108 = vmatpush1.msra.mxu0 %v1979_v34  ;;  %178 = vmatprep.subr.mxu1 %v2033_v43  ;;  %3142 = vst [vmem:[#allocation14_spill] sm:$0xff] %v2105_v55  ;;  %3143 = vst [vmem:[#allocation15_spill] sm:$0xff] %v2111_v56  ;;  %v2117_v57 = vld [vmem:[%s3047_s1 + $0x70] sm:$0xff]  ;;  %v2123_v58 = vld [vmem:[%s3047_s1] sm:$0xff] }
  0x16   :  { %109 = vmatprep.subr.mxu0 %v1991_v36  ;;  %179 = vmatpush1.msra.mxu1 %v2045_v45  ;;  %3144 = vst [vmem:[#allocation16_spill] sm:$0xff] %v2117_v57  ;;  %3145 = vst [vmem:[#allocation17_spill] sm:$0xff] %v2123_v58  ;;  %v2129_v59 = vld [vmem:[%s3047_s1 + $0x58] sm:$0xff]  ;;  %v2136_v60 = vld [vmem:[%s3047_s1 + $0x50] sm:$0xff] }
  0x17   :  { %110 = vmatpush1.msra.mxu0 %v2003_v38  ;;  %180 = vmatprep.subr.mxu1 %v2057_v47  ;;  %3146 = vst [vmem:[#allocation18_spill] sm:$0xff] %v2129_v59  ;;  %3147 = vst [vmem:[#allocation19_spill] sm:$0xff] %v2136_v60  ;;  %v2143_v61 = vld [vmem:[%s3047_s1 + $0x38] sm:$0xff]  ;;  %v2150_v62 = vld [vmem:[%s3047_s1 + $0x30] sm:$0xff] }
  0x18   :  { %111 = vmatprep.subr.mxu0 %v2015_v40  ;;  %181 = vmatpush1.msra.mxu1 %v2069_v49  ;;  %3148 = vst [vmem:[#allocation20_spill] sm:$0xff] %v2143_v61  ;;  %3149 = vst [vmem:[#allocation21_spill] sm:$0xff] %v2150_v62  ;;  %v2157_v63 = vld [vmem:[%s3047_s1 + $0x18] sm:$0xff] }
  0x19   :  { %112 = vmatpush1.msra.mxu0 %v2027_v42  ;;  %182 = vmatprep.subr.mxu1 %v2081_v51  ;;  %3150 = vst [vmem:[#allocation22_spill] sm:$0xff] %v2157_v63 }
  0x1a   :  { %113 = vmatprep.subr.mxu0 %v2039_v44  ;;  %183 = vmatpush1.msra.mxu1 %v2093_v53 }
  0x1b   :  { %114 = vmatpush1.msra.mxu0 %v2051_v46  ;;  %184 = vmatprep.subr.mxu1 %v2105_v55 }
  0x1c   :  { %115 = vmatprep.subr.mxu0 %v2063_v48  ;;  %185 = vmatpush1.msra.mxu1 %v2117_v57 }
  0x1d   :  { %116 = vmatpush1.msra.mxu0 %v2075_v50  ;;  %186 = vmatprep.subr.mxu1 %v2129_v59 }
  0x1e   :  { %117 = vmatprep.subr.mxu0 %v2087_v52  ;;  %187 = vmatpush1.msra.mxu1 %v2136_v60 }
  0x1f   :  { %118 = vmatpush1.msra.mxu0 %v2099_v54  ;;  %188 = vmatprep.subr.mxu1 %v2143_v61 }
  0x20   :  { %119 = vmatprep.subr.mxu0 %v2111_v56  ;;  %189 = vmatpush1.msra.mxu1 %v2150_v62 }
  0x21   :  { %120 = vmatpush1.msra.mxu0 %v2123_v58  ;;  %v2163_v58 = vld [vmem:[%s3047_s1 + $0x10] sm:$0xff]  ;;  %190 = vmatprep.subr.mxu1 %v2157_v63 }
  0x22   :  { %154 = vmatmul.mubr.f32.vlgmr.msra.gmra.mxu0 %v3052_v3  ;;  %3151 = vst [vmem:[#allocation23_spill] sm:$0xff] %v2163_v58  ;;  %268 = vmatprep.subr.mxu0 %v1784_v0 }
  0x23   :  { %269 = vmatpush1.msra.mxu0 %v1789_v1  ;;  %191 = vmatpush1.msra.mxu1 %v2163_v58 }
  0x24   :  { %270 = vmatprep.subr.mxu0 %v1794_v2  ;;  %225 = vmatmul.mubr.f32.vlgmr.msra.gmra.mxu1 %v3052_v3  ;;  %v3152_v3 = vld [vmem:[#allocation17_spill] sm:$0xff] }
  0x25   :  { %271 = vmatpush1.msra.mxu0 %v1802_v4  ;;  %339 = vmatprep.subr.mxu1 %v1831_v9 }
  0x26   :  { %340 = vmatpush1.msra.mxu1 %v1843_v11  ;;  %272 = vmatprep.subr.mxu0 %v1808_v5 }
  0x27   :  { %341 = vmatprep.subr.mxu1 %v1855_v13  ;;  %273 = vmatpush1.msra.mxu0 %v1814_v6 }
  0x28   :  { %342 = vmatpush1.msra.mxu1 %v1860_v14  ;;  %274 = vmatprep.subr.mxu0 %v1820_v7 }
  0x29   :  { %343 = vmatprep.subr.mxu1 %v1872_v16  ;;  %275 = vmatpush1.msra.mxu0 %v1826_v8 }
  0x2a   :  { %344 = vmatpush1.msra.mxu1 %v1884_v18  ;;  %276 = vmatprep.subr.mxu0 %v1837_v10 }
  0x2b   :  { %345 = vmatprep.subr.mxu1 %v1889_v19  ;;  %277 = vmatpush1.msra.mxu0 %v1849_v12 }
  0x2c   :  { %346 = vmatpush1.msra.mxu1 %v1901_v21  ;;  %278 = vmatprep.subr.mxu0 %v1866_v15 }
  0x2d   :  { %347 = vmatprep.subr.mxu1 %v1913_v23  ;;  %279 = vmatpush1.msra.mxu0 %v1878_v17 }
  0x2e   :  { %348 = vmatpush1.msra.mxu1 %v1925_v25  ;;  %280 = vmatprep.subr.mxu0 %v1895_v20 }
  0x2f   :  { %349 = vmatprep.subr.mxu1 %v1937_v27  ;;  %281 = vmatpush1.msra.mxu0 %v1907_v22 }
  0x30   :  { %350 = vmatpush1.msra.mxu1 %v1949_v29  ;;  %282 = vmatprep.subr.mxu0 %v1919_v24 }
  0x31   :  { %351 = vmatprep.subr.mxu1 %v1961_v31  ;;  %283 = vmatpush1.msra.mxu0 %v1931_v26 }
  0x32   :  { %352 = vmatpush1.msra.mxu1 %v1973_v33  ;;  %284 = vmatprep.subr.mxu0 %v1943_v28 }
  0x33   :  { %353 = vmatprep.subr.mxu1 %v1985_v35  ;;  %285 = vmatpush1.msra.mxu0 %v1955_v30 }
  0x34   :  { %354 = vmatpush1.msra.mxu1 %v1997_v37  ;;  %286 = vmatprep.subr.mxu0 %v1967_v32 }
  0x35   :  { %355 = vmatprep.subr.mxu1 %v2009_v39  ;;  %287 = vmatpush1.msra.mxu0 %v1979_v34 }
  0x36   :  { %356 = vmatpush1.msra.mxu1 %v2021_v41  ;;  %288 = vmatprep.subr.mxu0 %v1991_v36 }
  0x37   :  { %357 = vmatprep.subr.mxu1 %v2033_v43  ;;  %289 = vmatpush1.msra.mxu0 %v2003_v38 }
  0x38   :  { %358 = vmatpush1.msra.mxu1 %v2045_v45  ;;  %290 = vmatprep.subr.mxu0 %v2015_v40 }
  0x39   :  { %359 = vmatprep.subr.mxu1 %v2057_v47  ;;  %291 = vmatpush1.msra.mxu0 %v2027_v42 }
  0x3a   :  { %360 = vmatpush1.msra.mxu1 %v2069_v49  ;;  %292 = vmatprep.subr.mxu0 %v2039_v44 }
  0x3b   :  { %361 = vmatprep.subr.mxu1 %v2081_v51  ;;  %293 = vmatpush1.msra.mxu0 %v2051_v46 }
  0x3c   :  { %362 = vmatpush1.msra.mxu1 %v2093_v53  ;;  %294 = vmatprep.subr.mxu0 %v2063_v48  ;;  %v3153_v48 = vmov 0.0  }
  0x3d   :  { %363 = vmatprep.subr.mxu1 %v2105_v55  ;;  %295 = vmatpush1.msra.mxu0 %v2075_v50 }
  0x3e   :  { %364 = vmatpush1.msra.mxu1 %v2117_v57  ;;  %296 = vmatprep.subr.mxu0 %v2087_v52 }
  0x3f   :  { %365 = vmatprep.subr.mxu1 %v2129_v59  ;;  %297 = vmatpush1.msra.mxu0 %v2099_v54 }
  0x40   :  { %366 = vmatpush1.msra.mxu1 %v2136_v60  ;;  %298 = vmatprep.subr.mxu0 %v2111_v56  ;;  %v83_v56 = vld [vmem:[%s3048_s0] sm:$0xff] }
  0x41   :  { %367 = vmatprep.subr.mxu1 %v2143_v61  ;;  %299 = vmatpush1.msra.mxu0 %v3152_v3  ;;  %v85_v54 = vunpack.c.l.bf16 %v83_v56  ;;  %v86_v3 = vunpack.c.h.bf16 %v83_v56 }
  0x42   :  { %368 = vmatpush1.msra.mxu1 %v2150_v62  ;;  %332 = vmatprep.mubr.f32.mxu0 %v3153_v48 }
  0x43   :  { %369 = vmatprep.subr.mxu1 %v2157_v63  ;;  %403 = vmatprep.mubr.f32.mxu1 %v3153_v48 }
  0x44   :  { %370 = vmatpush1.msra.mxu1 %v2163_v58  ;;  %448 = vmatprep.subr.mxu0 %v1784_v0  ;;  %v84_v58 = vld [vmem:[%s3048_s0 + $0x8] sm:$0xff] }
  0x45   :  { %519 = vmatprep.subr.mxu1 %v1831_v9  ;;  %v88_v9 = vunpack.c.h.bf16 %v84_v58  ;;  %v87_v59 = vunpack.c.l.bf16 %v84_v58  ;;  %v3158_v58 = vld [vmem:[#allocation8_spill] sm:$0xff] }
  0xe2   :  { %v155_v61 = vpop.f32.mrf.mxu0 }
  0xe3   :  { %v231_v62 = vadd.f32 %v155_v61, %v85_v54 }
  0xe4   :  { %v157_v52 = vpop.f32.mrf.mxu0  ;;  %v226_v0 = vpop.f32.mrf.mxu1 }
  0xe5   :  { %v1527_v60 = vmul.f32 -1.442695, %v231_v62  ;;  %v232_v50 = vadd.f32 %v157_v52, %v86_v3  ;;  %v233_v46 = vadd.f32 %v226_v0, %v87_v59  ;;  %v3159_v59 = vld [vmem:[#allocation16_spill] sm:$0xff] }
  0xe6   :  { %v228_v48 = vpop.f32.mrf.mxu1 }
  0xe7   :  { %1573 = vpow2.f32 %v1527_v60  ;;  %v1528_v63 = vmul.f32 -1.442695, %v232_v50  ;;  %v234_v57 = vadd.f32 %v228_v48, %v88_v9 }
  0xe9   :  { %1575 = vpow2.f32 %v1528_v63  ;;  %v1529_v55 = vmul.f32 -1.442695, %v234_v57  ;;  %v3157_v57 = vld [vmem:[#allocation14_spill] sm:$0xff] }
  0xea   :  { %1577 = vtanh.f32 %v233_v46 }
  0xeb   :  { %1579 = vpow2.f32 %v1529_v55  ;;  %v3156_v55 = vld [vmem:[#allocation7_spill] sm:$0xff] }
  0xf4   :  { %v1574_v56 = vpop.eup %1573 }
  0xf5   :  { %v238_v44 = vadd.f32 1.0, %v1574_v56  ;;  %v3160_v56 = vld [vmem:[#allocation9_spill] sm:$0xff] }
  0xf6   :  { %v1576_v54 = vpop.eup %1575 }
  0xf7   :  { %1581 = vrcp.f32 %v238_v44  ;;  %v244_v3 = vadd.f32 1.0, %v1576_v54  ;;  %v1578_v50 = vpop.eup %1577  ;;  %v3154_v44 = vld [vmem:[#allocation6_spill] sm:$0xff] }
  0xf8   :  { %v1580_v52 = vpop.eup %1579  ;;  %v3161_v54 = vld [vmem:[#allocation18_spill] sm:$0xff] }
  0xf9   :  { %1583 = vrcp.f32 %v244_v3  ;;  %v251_v62 = vadd.f32 1.0, %v1580_v52  ;;  %v3162_v3 = vld [vmem:[#allocation10_spill] sm:$0xff]  ;;  %v3164_v52 = vld [vmem:[#allocation11_spill] sm:$0xff] }
  0xfb   :  { %1585 = vrcp.f32 %v251_v62  ;;  %v3167_v62 = vld [vmem:[#allocation21_spill] sm:$0xff] }
 0x104   :  { %v1582_v60 = vpop.eup %1581 }
 0x105   :  { %v255_v53 = vmul.f32 %v1582_v60, %v1578_v50  ;;  %v3163_v50 = vld [vmem:[#allocation19_spill] sm:$0xff]  ;;  %v3165_v60 = vld [vmem:[#allocation20_spill] sm:$0xff] }
 0x106   :  { %v1584_v61 = vpop.eup %1583 }
 0x107   :  { %v254_v63 = vmul.f32 0.0, %v1584_v61  ;;  %v3166_v61 = vld [vmem:[#allocation13_spill] sm:$0xff] }
 0x108   :  { %v1586_v0 = vpop.eup %1585 }
 0x109   :  { %v2243_v42 = vadd.f32 %v255_v53, %v254_v63  ;;  %v3155_v53 = vld [vmem:[#allocation12_spill] sm:$0xff]  ;;  %v3168_v63 = vld [vmem:[#allocation15_spill] sm:$0xff] }
 0x10b   :  { %1587 = vtanh.f32 %v2243_v42 }
 0x118   :  { %v1588_v9 = vpop.eup %1587 }
 0x119   :  { %v258_v46 = vmul.f32 %v1588_v9, %v1586_v0  ;;  %v3169_v0 = vld [vmem:[#allocation22_spill] sm:$0xff]  ;;  %v3170_v9 = vld [vmem:[#allocation17_spill] sm:$0xff] }
 0x11b   :  { %v259_v48 = vpack.c.bf16 %v258_v46, %v258_v46  ;;  %333 = vmatmul.mubr.f32.vlgmr.msra.gmra.mxu0 %v258_v46  ;;  %404 = vmatmul.mubr.f32.vlgmr.msra.gmra.mxu1 %v258_v46  ;;  %v3171_v46 = vmov 0.0  }
 0x11c   :  { %449 = vmatpush1.msra.mxu0 %v1789_v1  ;;  %520 = vmatpush1.msra.mxu1 %v1843_v11 }
 0x11d   :  { %260 = vst [vmem:[%s3049_s2] sm:$0xf] %v259_v48  ;;  %450 = vmatprep.subr.mxu0 %v1794_v2  ;;  %521 = vmatprep.subr.mxu1 %v1855_v13  ;;  %v3172_v48 = vld [vmem:[#allocation23_spill] sm:$0xff] }
 0x11e   :  { %451 = vmatpush1.msra.mxu0 %v1802_v4  ;;  %522 = vmatpush1.msra.mxu1 %v1860_v14 }
 0x11f   :  { %452 = vmatprep.subr.mxu0 %v1808_v5  ;;  %523 = vmatprep.subr.mxu1 %v1872_v16 }
 0x120   :  { %453 = vmatpush1.msra.mxu0 %v1814_v6  ;;  %524 = vmatpush1.msra.mxu1 %v1884_v18 }
 0x121   :  { %454 = vmatprep.subr.mxu0 %v1820_v7  ;;  %525 = vmatprep.subr.mxu1 %v1889_v19 }
 0x122   :  { %455 = vmatpush1.msra.mxu0 %v1826_v8  ;;  %526 = vmatpush1.msra.mxu1 %v1901_v21 }
 0x123   :  { %456 = vmatprep.subr.mxu0 %v1837_v10  ;;  %527 = vmatprep.subr.mxu1 %v1913_v23 }
 0x124   :  { %457 = vmatpush1.msra.mxu0 %v1849_v12  ;;  %528 = vmatpush1.msra.mxu1 %v1925_v25 }
 0x125   :  { %458 = vmatprep.subr.mxu0 %v1866_v15  ;;  %529 = vmatprep.subr.mxu1 %v1937_v27 }
 0x126   :  { %459 = vmatpush1.msra.mxu0 %v1878_v17  ;;  %530 = vmatpush1.msra.mxu1 %v1949_v29 }
 0x127   :  { %460 = vmatprep.subr.mxu0 %v1895_v20  ;;  %531 = vmatprep.subr.mxu1 %v1961_v31 }
 0x128   :  { %461 = vmatpush1.msra.mxu0 %v1907_v22  ;;  %532 = vmatpush1.msra.mxu1 %v1973_v33 }
 0x129   :  { %462 = vmatprep.subr.mxu0 %v1919_v24  ;;  %533 = vmatprep.subr.mxu1 %v1985_v35 }
 0x12a   :  { %463 = vmatpush1.msra.mxu0 %v1931_v26  ;;  %534 = vmatpush1.msra.mxu1 %v1997_v37 }
 0x12b   :  { %464 = vmatprep.subr.mxu0 %v1943_v28  ;;  %535 = vmatprep.subr.mxu1 %v2009_v39 }
 0x12c   :  { %465 = vmatpush1.msra.mxu0 %v1955_v30  ;;  %536 = vmatpush1.msra.mxu1 %v2021_v41 }
 0x12d   :  { %466 = vmatprep.subr.mxu0 %v1967_v32  ;;  %537 = vmatprep.subr.mxu1 %v2033_v43 }
 0x12e   :  { %467 = vmatpush1.msra.mxu0 %v1979_v34  ;;  %538 = vmatpush1.msra.mxu1 %v2045_v45 }
 0x12f   :  { %468 = vmatprep.subr.mxu0 %v1991_v36  ;;  %539 = vmatprep.subr.mxu1 %v2057_v47 }
 0x130   :  { %469 = vmatpush1.msra.mxu0 %v2003_v38  ;;  %540 = vmatpush1.msra.mxu1 %v2069_v49 }
 0x131   :  { %470 = vmatprep.subr.mxu0 %v2015_v40  ;;  %541 = vmatprep.subr.mxu1 %v2081_v51 }
 0x132   :  { %471 = vmatpush1.msra.mxu0 %v3154_v44  ;;  %542 = vmatpush1.msra.mxu1 %v3155_v53 }
 0x133   :  { %472 = vmatprep.subr.mxu0 %v3156_v55  ;;  %543 = vmatprep.subr.mxu1 %v3157_v57 }
 0x134   :  { %473 = vmatpush1.msra.mxu0 %v3158_v58  ;;  %544 = vmatpush1.msra.mxu1 %v3159_v59 }
 0x135   :  { %474 = vmatprep.subr.mxu0 %v3160_v56  ;;  %545 = vmatprep.subr.mxu1 %v3161_v54 }
 0x136   :  { %475 = vmatpush1.msra.mxu0 %v3162_v3  ;;  %546 = vmatpush1.msra.mxu1 %v3163_v50  ;;  %v3173_v50 = vld [vmem:[#allocation4_spill] sm:$0xff] }
 0x137   :  { %476 = vmatprep.subr.mxu0 %v3164_v52  ;;  %547 = vmatprep.subr.mxu1 %v3165_v60  ;;  %v3174_v52 = vld [vmem:[#allocation5_spill] sm:$0xff] }
 0x138   :  { %477 = vmatpush1.msra.mxu0 %v3166_v61  ;;  %548 = vmatpush1.msra.mxu1 %v3167_v62  ;;  %v1530_v62 = vld [vmem:[%s3048_s0 + $0x10] sm:$0xff] }
 0x139   :  { %478 = vmatprep.subr.mxu0 %v3168_v63  ;;  %549 = vmatprep.subr.mxu1 %v3169_v0  ;;  %v264_v61 = vunpack.c.l.bf16 %v1530_v62  ;;  %v265_v63 = vunpack.c.h.bf16 %v1530_v62 }
 0x13a   :  { %479 = vmatpush1.msra.mxu0 %v3170_v9  ;;  %512 = vmatprep.mubr.f32.mxu0 %v3171_v46 }
 0x13b   :  { %550 = vmatpush1.msra.mxu1 %v3172_v48  ;;  %583 = vmatprep.mubr.f32.mxu1 %v3171_v46 }
 0x13c   :  { %628 = vmatprep.subr.mxu0 %v3173_v50  ;;  %699 = vmatprep.subr.mxu1 %v3174_v52  ;;  %v1531_v50 = vld [vmem:[%s3048_s0 + $0x18] sm:$0xff] }
 0x13d   :  { %v267_v52 = vunpack.c.h.bf16 %v1531_v50  ;;  %v266_v58 = vunpack.c.l.bf16 %v1531_v50  ;;  %v3179_v50 = vld [vmem:[#allocation8_spill] sm:$0xff] }
 0x1db   :  { %v334_v60 = vpop.f32.mrf.mxu0  ;;  %v405_v56 = vpop.f32.mrf.mxu1 }
 0x1dc   :  { %v410_v0 = vadd.f32 %v334_v60, %v264_v61  ;;  %v412_v62 = vadd.f32 %v405_v56, %v266_v58  ;;  %v3178_v56 = vld [vmem:[#allocation14_spill] sm:$0xff] }
 0x1dd   :  { %v336_v3 = vpop.f32.mrf.mxu0  ;;  %v407_v46 = vpop.f32.mrf.mxu1 }
 0x1de   :  { %v1532_v9 = vmul.f32 -1.442695, %v410_v0  ;;  %v411_v54 = vadd.f32 %v336_v3, %v265_v63  ;;  %v413_v59 = vadd.f32 %v407_v46, %v267_v52  ;;  %v3180_v46 = vld [vmem:[#allocation16_spill] sm:$0xff] }
 0x1e0   :  { %1589 = vpow2.f32 %v1532_v9  ;;  %v1533_v48 = vmul.f32 -1.442695, %v411_v54  ;;  %v1534_v57 = vmul.f32 -1.442695, %v413_v59  ;;  %v3177_v59 = vld [vmem:[#allocation7_spill] sm:$0xff] }
 0x1e2   :  { %1591 = vpow2.f32 %v1533_v48 }
 0x1e3   :  { %1593 = vpow2.f32 %v1534_v57 }
 0x1ed   :  { %v1590_v55 = vpop.eup %1589 }
 0x1ee   :  { %v417_v53 = vadd.f32 1.0, %v1590_v55 }
 0x1ef   :  { %v1592_v60 = vpop.eup %1591 }
 0x1f0   :  { %1595 = vrcp.f32 %v417_v53  ;;  %v423_v3 = vadd.f32 1.0, %v1592_v60  ;;  %v1594_v54 = vpop.eup %1593  ;;  %v3182_v60 = vld [vmem:[#allocation18_spill] sm:$0xff] }
 0x1f1   :  { %1597 = vtanh.f32 %v412_v62  ;;  %v430_v9 = vadd.f32 1.0, %v1594_v54  ;;  %v3181_v62 = vld [vmem:[#allocation9_spill] sm:$0xff]  ;;  %v3184_v54 = vld [vmem:[#allocation19_spill] sm:$0xff] }
 0x1f2   :  { %1599 = vrcp.f32 %v423_v3  ;;  %v3183_v3 = vld [vmem:[#allocation10_spill] sm:$0xff] }
 0x1f3   :  { %1601 = vrcp.f32 %v430_v9  ;;  %v3188_v9 = vld [vmem:[#allocation21_spill] sm:$0xff] }
 0x1fd   :  { %v1596_v61 = vpop.eup %1595 }
 0x1fe   :  { %v1598_v63 = vpop.eup %1597 }
 0x1ff   :  { %v1600_v0 = vpop.eup %1599  ;;  %v434_v48 = vmul.f32 %v1598_v63, %v1596_v61  ;;  %v3185_v61 = vld [vmem:[#allocation11_spill] sm:$0xff]  ;;  %v3186_v63 = vld [vmem:[#allocation20_spill] sm:$0xff] }
 0x200   :  { %v433_v44 = vmul.f32 %v1600_v0, %v2243_v42  ;;  %v1602_v55 = vpop.eup %1601  ;;  %v3175_v42 = vld [vmem:[#allocation6_spill] sm:$0xff]  ;;  %v3187_v0 = vld [vmem:[#allocation13_spill] sm:$0xff] }
 0x202   :  { %v2322_v52 = vadd.f32 %v434_v48, %v433_v44  ;;  %v3176_v44 = vld [vmem:[#allocation12_spill] sm:$0xff]  ;;  %v3189_v48 = vld [vmem:[#allocation15_spill] sm:$0xff] }
 0x204   :  { %1603 = vtanh.f32 %v2322_v52 }
 0x211   :  { %v1604_v58 = vpop.eup %1603 }
 0x212   :  { %v437_v57 = vmul.f32 %v1604_v58, %v1602_v55  ;;  %v3190_v55 = vld [vmem:[#allocation22_spill] sm:$0xff]  ;;  %v3191_v58 = vld [vmem:[#allocation17_spill] sm:$0xff] }
 0x214   :  { %v438_v53 = vpack.c.bf16 %v437_v57, %v437_v57  ;;  %513 = vmatmul.mubr.f32.vlgmr.msra.gmra.mxu0 %v437_v57  ;;  %584 = vmatmul.mubr.f32.vlgmr.msra.gmra.mxu1 %v437_v57  ;;  %v3192_v57 = vmov 0.0  }
 0x215   :  { %629 = vmatpush1.msra.mxu0 %v1789_v1  ;;  %700 = vmatpush1.msra.mxu1 %v1843_v11 }
 0x216   :  { %1535 = vst [vmem:[%s3049_s2 + $0x4] sm:$0xf] %v438_v53  ;;  %630 = vmatprep.subr.mxu0 %v1794_v2  ;;  %701 = vmatprep.subr.mxu1 %v1855_v13  ;;  %v3193_v53 = vld [vmem:[#allocation23_spill] sm:$0xff] }
 0x217   :  { %631 = vmatpush1.msra.mxu0 %v1802_v4  ;;  %702 = vmatpush1.msra.mxu1 %v1860_v14 }
 0x218   :  { %632 = vmatprep.subr.mxu0 %v1808_v5  ;;  %703 = vmatprep.subr.mxu1 %v1872_v16 }
 0x219   :  { %633 = vmatpush1.msra.mxu0 %v1814_v6  ;;  %704 = vmatpush1.msra.mxu1 %v1884_v18 }
 0x21a   :  { %634 = vmatprep.subr.mxu0 %v1820_v7  ;;  %705 = vmatprep.subr.mxu1 %v1889_v19 }
 0x21b   :  { %635 = vmatpush1.msra.mxu0 %v1826_v8  ;;  %706 = vmatpush1.msra.mxu1 %v1901_v21 }
 0x21c   :  { %636 = vmatprep.subr.mxu0 %v1837_v10  ;;  %707 = vmatprep.subr.mxu1 %v1913_v23 }
 0x21d   :  { %637 = vmatpush1.msra.mxu0 %v1849_v12  ;;  %708 = vmatpush1.msra.mxu1 %v1925_v25 }
 0x21e   :  { %638 = vmatprep.subr.mxu0 %v1866_v15  ;;  %709 = vmatprep.subr.mxu1 %v1937_v27 }
 0x21f   :  { %639 = vmatpush1.msra.mxu0 %v1878_v17  ;;  %710 = vmatpush1.msra.mxu1 %v1949_v29 }
 0x220   :  { %640 = vmatprep.subr.mxu0 %v1895_v20  ;;  %711 = vmatprep.subr.mxu1 %v1961_v31 }
 0x221   :  { %641 = vmatpush1.msra.mxu0 %v1907_v22  ;;  %712 = vmatpush1.msra.mxu1 %v1973_v33 }
 0x222   :  { %642 = vmatprep.subr.mxu0 %v1919_v24  ;;  %713 = vmatprep.subr.mxu1 %v1985_v35 }
 0x223   :  { %643 = vmatpush1.msra.mxu0 %v1931_v26  ;;  %714 = vmatpush1.msra.mxu1 %v1997_v37 }
 0x224   :  { %644 = vmatprep.subr.mxu0 %v1943_v28  ;;  %715 = vmatprep.subr.mxu1 %v2009_v39 }
 0x225   :  { %645 = vmatpush1.msra.mxu0 %v1955_v30  ;;  %716 = vmatpush1.msra.mxu1 %v2021_v41 }
 0x226   :  { %646 = vmatprep.subr.mxu0 %v1967_v32  ;;  %717 = vmatprep.subr.mxu1 %v2033_v43 }
 0x227   :  { %647 = vmatpush1.msra.mxu0 %v1979_v34  ;;  %718 = vmatpush1.msra.mxu1 %v2045_v45 }
 0x228   :  { %648 = vmatprep.subr.mxu0 %v1991_v36  ;;  %719 = vmatprep.subr.mxu1 %v2057_v47 }
 0x229   :  { %649 = vmatpush1.msra.mxu0 %v2003_v38  ;;  %720 = vmatpush1.msra.mxu1 %v2069_v49 }
 0x22a   :  { %650 = vmatprep.subr.mxu0 %v2015_v40  ;;  %721 = vmatprep.subr.mxu1 %v2081_v51 }
 0x22b   :  { %651 = vmatpush1.msra.mxu0 %v3175_v42  ;;  %722 = vmatpush1.msra.mxu1 %v3176_v44 }
 0x22c   :  { %652 = vmatprep.subr.mxu0 %v3177_v59  ;;  %723 = vmatprep.subr.mxu1 %v3178_v56 }
 0x22d   :  { %653 = vmatpush1.msra.mxu0 %v3179_v50  ;;  %724 = vmatpush1.msra.mxu1 %v3180_v46 }
 0x22e   :  { %654 = vmatprep.subr.mxu0 %v3181_v62  ;;  %725 = vmatprep.subr.mxu1 %v3182_v60 }
 0x22f   :  { %655 = vmatpush1.msra.mxu0 %v3183_v3  ;;  %726 = vmatpush1.msra.mxu1 %v3184_v54  ;;  %v3194_v54 = vld [vmem:[#allocation4_spill] sm:$0xff] }
 0x230   :  { %656 = vmatprep.subr.mxu0 %v3185_v61  ;;  %727 = vmatprep.subr.mxu1 %v3186_v63  ;;  %v3195_v61 = vld [vmem:[#allocation5_spill] sm:$0xff] }
 0x231   :  { %657 = vmatpush1.msra.mxu0 %v3187_v0  ;;  %728 = vmatpush1.msra.mxu1 %v3188_v9  ;;  %v1536_v9 = vld [vmem:[%s3048_s0 + $0x20] sm:$0xff] }
 0x232   :  { %658 = vmatprep.subr.mxu0 %v3189_v48  ;;  %729 = vmatprep.subr.mxu1 %v3190_v55  ;;  %v444_v0 = vunpack.c.l.bf16 %v1536_v9  ;;  %v445_v48 = vunpack.c.h.bf16 %v1536_v9 }
 0x233   :  { %659 = vmatpush1.msra.mxu0 %v3191_v58  ;;  %692 = vmatprep.mubr.f32.mxu0 %v3192_v57 }
 0x234   :  { %730 = vmatpush1.msra.mxu1 %v3193_v53  ;;  %763 = vmatprep.mubr.f32.mxu1 %v3192_v57 }
 0x235   :  { %808 = vmatprep.subr.mxu0 %v3194_v54  ;;  %879 = vmatprep.subr.mxu1 %v3195_v61  ;;  %v1537_v54 = vld [vmem:[%s3048_s0 + $0x28] sm:$0xff] }
 0x236   :  { %v447_v61 = vunpack.c.h.bf16 %v1537_v54  ;;  %v446_v50 = vunpack.c.l.bf16 %v1537_v54 }
 0x2d4   :  { %v514_v63 = vpop.f32.mrf.mxu0  ;;  %v585_v62 = vpop.f32.mrf.mxu1 }
 0x2d5   :  { %v590_v55 = vadd.f32 %v514_v63, %v444_v0  ;;  %v592_v9 = vadd.f32 %v585_v62, %v446_v50 }
 0x2d6   :  { %v516_v3 = vpop.f32.mrf.mxu0  ;;  %v587_v57 = vpop.f32.mrf.mxu1 }
 0x2d7   :  { %v1538_v58 = vmul.f32 -1.442695, %v590_v55  ;;  %v591_v60 = vadd.f32 %v516_v3, %v445_v48  ;;  %v593_v46 = vadd.f32 %v587_v57, %v447_v61 }
 0x2d9   :  { %1605 = vpow2.f32 %v1538_v58  ;;  %v1539_v53 = vmul.f32 -1.442695, %v591_v60  ;;  %v1540_v56 = vmul.f32 -1.442695, %v593_v46 }
 0x2db   :  { %1607 = vpow2.f32 %v1539_v53 }
 0x2dc   :  { %1609 = vpow2.f32 %v1540_v56 }
 0x2e6   :  { %v1606_v59 = vpop.eup %1605 }
 0x2e7   :  { %v597_v44 = vadd.f32 1.0, %v1606_v59 }
 0x2e8   :  { %v1608_v63 = vpop.eup %1607 }
 0x2e9   :  { %1611 = vrcp.f32 %v597_v44  ;;  %v603_v3 = vadd.f32 1.0, %v1608_v63  ;;  %v1610_v60 = vpop.eup %1609 }
 0x2ea   :  { %1613 = vtanh.f32 %v592_v9  ;;  %v610_v58 = vadd.f32 1.0, %v1610_v60 }
 0x2eb   :  { %1615 = vrcp.f32 %v603_v3 }
 0x2ec   :  { %1617 = vrcp.f32 %v610_v58  ;;  %v2517_v58 = vld [vmem:[%s3047_s1 + $0x1d8] sm:$0xff] }
 0x2f6   :  { %v1612_v0 = vpop.eup %1611 }
 0x2f7   :  { %v1614_v48 = vpop.eup %1613 }
 0x2f8   :  { %v1616_v55 = vpop.eup %1615  ;;  %v614_v53 = vmul.f32 %v1614_v48, %v1612_v0  ;;  %v2496_v0 = vld [vmem:[%s3047_s1 + $0x1e0] sm:$0xff]  ;;  %v2502_v48 = vld [vmem:[%s3047_s1 + $0x1f0] sm:$0xff] }
 0x2f9   :  { %v613_v42 = vmul.f32 %v1616_v55, %v2322_v52  ;;  %v1618_v59 = vpop.eup %1617  ;;  %v2511_v55 = vld [vmem:[%s3047_s1 + $0x1c8] sm:$0xff] }
 0x2fb   :  { %v2401_v57 = vadd.f32 %v614_v53, %v613_v42  ;;  %v2523_v53 = vld [vmem:[%s3047_s1 + $0x1c0] sm:$0xff] }
 0x2fd   :  { %1619 = vtanh.f32 %v2401_v57 }
 0x30a   :  { %v1620_v50 = vpop.eup %1619 }
 0x30b   :  { %v617_v56 = vmul.f32 %v1620_v50, %v1618_v59  ;;  %v2535_v59 = vld [vmem:[%s3047_s1 + $0x1a8] sm:$0xff]  ;;  %v2541_v50 = vld [vmem:[%s3047_s1 + $0x1b8] sm:$0xff] }
 0x30d   :  { %v618_v44 = vpack.c.bf16 %v617_v56, %v617_v56  ;;  %693 = vmatmul.mubr.f32.vlgmr.msra.gmra.mxu0 %v617_v56  ;;  %764 = vmatmul.mubr.f32.vlgmr.msra.gmra.mxu1 %v617_v56  ;;  %v2547_v56 = vld [vmem:[%s3047_s1 + $0x1a0] sm:$0xff] }
 0x30e   :  { %809 = vmatpush1.msra.mxu0 %v1789_v1  ;;  %880 = vmatpush1.msra.mxu1 %v1843_v11  ;;  %v3196_v1 = vld [vmem:[#allocation6_spill] sm:$0xff] }
 0x30f   :  { %1541 = vst [vmem:[%s3049_s2 + $0x8] sm:$0xf] %v618_v44  ;;  %810 = vmatprep.subr.mxu0 %v1794_v2  ;;  %881 = vmatprep.subr.mxu1 %v1855_v13  ;;  %v3197_v2 = vld [vmem:[#allocation12_spill] sm:$0xff]  ;;  %v3204_v11 = vld [vmem:[#allocation10_spill] sm:$0xff]  ;;  %v3206_v13 = vld [vmem:[#allocation11_spill] sm:$0xff] }
 0x310   :  { %811 = vmatpush1.msra.mxu0 %v1802_v4  ;;  %882 = vmatpush1.msra.mxu1 %v1860_v14  ;;  %v3198_v4 = vld [vmem:[#allocation7_spill] sm:$0xff]  ;;  %v3207_v14 = vld [vmem:[#allocation20_spill] sm:$0xff]  ;;  %v2553_v44 = vld [vmem:[%s3047_s1 + $0x1b0] sm:$0xff] }
 0x311   :  { %812 = vmatprep.subr.mxu0 %v1808_v5  ;;  %883 = vmatprep.subr.mxu1 %v1872_v16  ;;  %v3199_v5 = vld [vmem:[#allocation14_spill] sm:$0xff]  ;;  %v3209_v16 = vld [vmem:[#allocation21_spill] sm:$0xff] }
 0x312   :  { %813 = vmatpush1.msra.mxu0 %v1814_v6  ;;  %884 = vmatpush1.msra.mxu1 %v1884_v18  ;;  %v3200_v6 = vld [vmem:[#allocation8_spill] sm:$0xff]  ;;  %v3211_v18 = vld [vmem:[#allocation22_spill] sm:$0xff] }
 0x313   :  { %814 = vmatprep.subr.mxu0 %v1820_v7  ;;  %885 = vmatprep.subr.mxu1 %v1889_v19  ;;  %v3201_v7 = vld [vmem:[#allocation16_spill] sm:$0xff]  ;;  %v3212_v19 = vld [vmem:[#allocation17_spill] sm:$0xff] }
 0x314   :  { %815 = vmatpush1.msra.mxu0 %v1826_v8  ;;  %886 = vmatpush1.msra.mxu1 %v1901_v21  ;;  %v3202_v8 = vld [vmem:[#allocation9_spill] sm:$0xff]  ;;  %v3214_v21 = vld [vmem:[#allocation23_spill] sm:$0xff] }
 0x315   :  { %816 = vmatprep.subr.mxu0 %v1837_v10  ;;  %887 = vmatprep.subr.mxu1 %v1913_v23  ;;  %v3203_v10 = vld [vmem:[#allocation18_spill] sm:$0xff]  ;;  %v2480_v23 = vld [vmem:[%s3047_s1 + $0x1f8] sm:$0xff] }
 0x316   :  { %817 = vmatpush1.msra.mxu0 %v1849_v12  ;;  %888 = vmatpush1.msra.mxu1 %v1925_v25  ;;  %v3205_v12 = vld [vmem:[#allocation19_spill] sm:$0xff]  ;;  %3216 = vst [vmem:[#allocation5_spill] sm:$0xff] %v2480_v23 }
 0x317   :  { %818 = vmatprep.subr.mxu0 %v1866_v15  ;;  %889 = vmatprep.subr.mxu1 %v1937_v27  ;;  %v3208_v15 = vld [vmem:[#allocation13_spill] sm:$0xff] }
 0x318   :  { %819 = vmatpush1.msra.mxu0 %v1878_v17  ;;  %890 = vmatpush1.msra.mxu1 %v1949_v29  ;;  %v3210_v17 = vld [vmem:[#allocation15_spill] sm:$0xff] }
 0x319   :  { %820 = vmatprep.subr.mxu0 %v1895_v20  ;;  %891 = vmatprep.subr.mxu1 %v1961_v31  ;;  %v3213_v20 = vmov 0.0  }
 0x31a   :  { %821 = vmatpush1.msra.mxu0 %v1907_v22  ;;  %892 = vmatpush1.msra.mxu1 %v1973_v33  ;;  %v2474_v22 = vld [vmem:[%s3047_s1 + $0x1e8] sm:$0xff] }
 0x31b   :  { %822 = vmatprep.subr.mxu0 %v1919_v24  ;;  %893 = vmatprep.subr.mxu1 %v1985_v35  ;;  %3215 = vst [vmem:[#allocation4_spill] sm:$0xff] %v2474_v22  ;;  %v1542_v24 = vld [vmem:[%s3048_s0 + $0x30] sm:$0xff] }
 0x31c   :  { %823 = vmatpush1.msra.mxu0 %v1931_v26  ;;  %894 = vmatpush1.msra.mxu1 %v1997_v37  ;;  %v624_v25 = vunpack.c.l.bf16 %v1542_v24  ;;  %v625_v26 = vunpack.c.h.bf16 %v1542_v24  ;;  %v2649_v24 = vld [vmem:[%s3047_s1 + $0x130] sm:$0xff] }
 0x31d   :  { %824 = vmatprep.subr.mxu0 %v1943_v28  ;;  %895 = vmatprep.subr.mxu1 %v2009_v39 }
 0x31e   :  { %825 = vmatpush1.msra.mxu0 %v1955_v30  ;;  %896 = vmatpush1.msra.mxu1 %v2021_v41 }
 0x31f   :  { %826 = vmatprep.subr.mxu0 %v1967_v32  ;;  %897 = vmatprep.subr.mxu1 %v2033_v43 }
 0x320   :  { %827 = vmatpush1.msra.mxu0 %v1979_v34  ;;  %898 = vmatpush1.msra.mxu1 %v2045_v45  ;;  %v1543_v34 = vld [vmem:[%s3048_s0 + $0x38] sm:$0xff] }
 0x321   :  { %828 = vmatprep.subr.mxu0 %v1991_v36  ;;  %899 = vmatprep.subr.mxu1 %v2057_v47  ;;  %v627_v35 = vunpack.c.h.bf16 %v1543_v34 }
 0x322   :  { %829 = vmatpush1.msra.mxu0 %v2003_v38  ;;  %900 = vmatpush1.msra.mxu1 %v2069_v49  ;;  %v626_v38 = vunpack.c.l.bf16 %v1543_v34  ;;  %v2709_v34 = vld [vmem:[%s3047_s1 + $0xd8] sm:$0xff] }
 0x323   :  { %830 = vmatprep.subr.mxu0 %v2015_v40  ;;  %901 = vmatprep.subr.mxu1 %v2081_v51 }
 0x324   :  { %831 = vmatpush1.msra.mxu0 %v3196_v1  ;;  %902 = vmatpush1.msra.mxu1 %v3197_v2  ;;  %v2559_v1 = vld [vmem:[%s3047_s1 + $0x188] sm:$0xff]  ;;  %v2565_v2 = vld [vmem:[%s3047_s1 + $0x198] sm:$0xff] }
 0x325   :  { %832 = vmatprep.subr.mxu0 %v3198_v4  ;;  %903 = vmatprep.subr.mxu1 %v3199_v5  ;;  %v2571_v4 = vld [vmem:[%s3047_s1 + $0x180] sm:$0xff]  ;;  %v2577_v5 = vld [vmem:[%s3047_s1 + $0x190] sm:$0xff] }
 0x326   :  { %833 = vmatpush1.msra.mxu0 %v3200_v6  ;;  %904 = vmatpush1.msra.mxu1 %v3201_v7  ;;  %v2583_v6 = vld [vmem:[%s3047_s1 + $0x168] sm:$0xff]  ;;  %v2589_v7 = vld [vmem:[%s3047_s1 + $0x178] sm:$0xff] }
 0x327   :  { %834 = vmatprep.subr.mxu0 %v3202_v8  ;;  %905 = vmatprep.subr.mxu1 %v3203_v10  ;;  %v2595_v8 = vld [vmem:[%s3047_s1 + $0x160] sm:$0xff]  ;;  %v2601_v10 = vld [vmem:[%s3047_s1 + $0x170] sm:$0xff] }
 0x328   :  { %835 = vmatpush1.msra.mxu0 %v3204_v11  ;;  %906 = vmatpush1.msra.mxu1 %v3205_v12  ;;  %v2607_v11 = vld [vmem:[%s3047_s1 + $0x148] sm:$0xff]  ;;  %v2613_v12 = vld [vmem:[%s3047_s1 + $0x158] sm:$0xff] }
 0x329   :  { %836 = vmatprep.subr.mxu0 %v3206_v13  ;;  %907 = vmatprep.subr.mxu1 %v3207_v14  ;;  %v2619_v13 = vld [vmem:[%s3047_s1 + $0x140] sm:$0xff]  ;;  %v2625_v14 = vld [vmem:[%s3047_s1 + $0x150] sm:$0xff] }
 0x32a   :  { %837 = vmatpush1.msra.mxu0 %v3208_v15  ;;  %908 = vmatpush1.msra.mxu1 %v3209_v16  ;;  %v2631_v15 = vld [vmem:[%s3047_s1 + $0x128] sm:$0xff] }
 0x32b   :  { %838 = vmatprep.subr.mxu0 %v3210_v17  ;;  %909 = vmatprep.subr.mxu1 %v3211_v18  ;;  %v2637_v17 = vld [vmem:[%s3047_s1 + $0x138] sm:$0xff] }
 0x32c   :  { %839 = vmatpush1.msra.mxu0 %v3212_v19  ;;  %872 = vmatprep.mubr.f32.mxu0 %v3213_v20  ;;  %v2643_v19 = vld [vmem:[%s3047_s1 + $0x120] sm:$0xff] }
 0x32d   :  { %910 = vmatpush1.msra.mxu1 %v3214_v21  ;;  %943 = vmatprep.mubr.f32.mxu1 %v3213_v20 }
 0x32e   :  { %988 = vmatprep.subr.mxu0 %v2474_v22  ;;  %1059 = vmatprep.subr.mxu1 %v2480_v23 }
 0x3cd   :  { %v694_v27 = vpop.f32.mrf.mxu0  ;;  %v765_v32 = vpop.f32.mrf.mxu1 }
 0x3ce   :  { %v770_v28 = vadd.f32 %v694_v27, %v624_v25  ;;  %v772_v41 = vadd.f32 %v765_v32, %v626_v38  ;;  %v2655_v25 = vld [vmem:[%s3047_s1 + $0x108] sm:$0xff]  ;;  %v2667_v27 = vld [vmem:[%s3047_s1 + $0x100] sm:$0xff]  ;;  %v2697_v32 = vld [vmem:[%s3047_s1 + $0xf0] sm:$0xff] }
 0x3cf   :  { %v696_v29 = vpop.f32.mrf.mxu0  ;;  %v767_v36 = vpop.f32.mrf.mxu1  ;;  %v2733_v38 = vld [vmem:[%s3047_s1 + $0xb8] sm:$0xff] }
 0x3d0   :  { %v1544_v30 = vmul.f32 -1.442695, %v770_v28  ;;  %v771_v31 = vadd.f32 %v696_v29, %v625_v26  ;;  %v773_v37 = vadd.f32 %v767_v36, %v627_v35  ;;  %v2661_v26 = vld [vmem:[%s3047_s1 + $0x118] sm:$0xff]  ;;  %v2673_v28 = vld [vmem:[%s3047_s1 + $0x110] sm:$0xff]  ;;  %v2679_v29 = vld [vmem:[%s3047_s1 + $0xe8] sm:$0xff] }
 0x3d1   :  { %v2715_v35 = vld [vmem:[%s3047_s1 + $0xc0] sm:$0xff]  ;;  %v2721_v36 = vld [vmem:[%s3047_s1 + $0xd0] sm:$0xff] }
 0x3d2   :  { %1621 = vpow2.f32 %v1544_v30  ;;  %v1545_v33 = vmul.f32 -1.442695, %v771_v31  ;;  %v1546_v39 = vmul.f32 -1.442695, %v773_v37  ;;  %v2685_v30 = vld [vmem:[%s3047_s1 + $0xf8] sm:$0xff]  ;;  %v2691_v31 = vld [vmem:[%s3047_s1 + $0xe0] sm:$0xff] }
 0x3d3   :  { %v2727_v37 = vld [vmem:[%s3047_s1 + $0xa8] sm:$0xff] }
 0x3d4   :  { %1623 = vpow2.f32 %v1545_v33  ;;  %v2703_v33 = vld [vmem:[%s3047_s1 + $0xc8] sm:$0xff] }
 0x3d5   :  { %1625 = vpow2.f32 %v1546_v39  ;;  %v2739_v39 = vld [vmem:[%s3047_s1 + $0xa0] sm:$0xff] }
 0x3df   :  { %v1622_v40 = vpop.eup %1621 }
 0x3e0   :  { %v777_v43 = vadd.f32 1.0, %v1622_v40  ;;  %v2745_v40 = vld [vmem:[%s3047_s1 + $0xb0] sm:$0xff] }
 0x3e1   :  { %v1624_v45 = vpop.eup %1623 }
 0x3e2   :  { %1627 = vrcp.f32 %v777_v43  ;;  %v783_v47 = vadd.f32 1.0, %v1624_v45  ;;  %v1626_v49 = vpop.eup %1625  ;;  %v2757_v43 = vld [vmem:[%s3047_s1 + $0x98] sm:$0xff]  ;;  %v2763_v45 = vld [vmem:[%s3047_s1 + $0x80] sm:$0xff] }
 0x3e3   :  { %1629 = vtanh.f32 %v772_v41  ;;  %v790_v46 = vadd.f32 1.0, %v1626_v49  ;;  %v2751_v41 = vld [vmem:[%s3047_s1 + $0x88] sm:$0xff]  ;;  %3217 = vst [vmem:[#allocation6_spill] sm:$0xff] %v2763_v45 }
 0x3e4   :  { %1631 = vrcp.f32 %v783_v47  ;;  %v2769_v47 = vld [vmem:[%s3047_s1 + $0x90] sm:$0xff]  ;;  %v2775_v49 = vld [vmem:[%s3047_s1 + $0x68] sm:$0xff] }
 0x3e5   :  { %1633 = vrcp.f32 %v790_v46  ;;  %3218 = vst [vmem:[#allocation12_spill] sm:$0xff] %v2769_v47  ;;  %3219 = vst [vmem:[#allocation7_spill] sm:$0xff] %v2775_v49  ;;  %v2799_v46 = vld [vmem:[%s3047_s1 + $0x48] sm:$0xff] }
 0x3e6   :  { %3223 = vst [vmem:[#allocation9_spill] sm:$0xff] %v2799_v46 }
 0x3ef   :  { %v1628_v51 = vpop.eup %1627 }
 0x3f0   :  { %v1630_v52 = vpop.eup %1629 }
 0x3f1   :  { %v1632_v42 = vpop.eup %1631  ;;  %v794_v62 = vmul.f32 %v1630_v52, %v1628_v51  ;;  %v2781_v51 = vld [vmem:[%s3047_s1 + $0x78] sm:$0xff]  ;;  %v2787_v52 = vld [vmem:[%s3047_s1 + $0x60] sm:$0xff] }
 0x3f2   :  { %v793_v54 = vmul.f32 %v1632_v42, %v2401_v57  ;;  %v1634_v9 = vpop.eup %1633  ;;  %v2529_v57 = vld [vmem:[%s3047_s1 + $0x1d0] sm:$0xff]  ;;  %3220 = vst [vmem:[#allocation14_spill] sm:$0xff] %v2781_v51  ;;  %3221 = vst [vmem:[#allocation8_spill] sm:$0xff] %v2787_v52 }
 0x3f3   :  { %v2793_v42 = vld [vmem:[%s3047_s1 + $0x70] sm:$0xff] }
 0x3f4   :  { %v2490_v61 = vadd.f32 %v794_v62, %v793_v54  ;;  %3222 = vst [vmem:[#allocation16_spill] sm:$0xff] %v2793_v42  ;;  %v2805_v62 = vld [vmem:[%s3047_s1 + $0x58] sm:$0xff]  ;;  %v2811_v54 = vld [vmem:[%s3047_s1 + $0x40] sm:$0xff] }
 0x3f5   :  { %3224 = vst [vmem:[#allocation18_spill] sm:$0xff] %v2805_v62  ;;  %3225 = vst [vmem:[#allocation10_spill] sm:$0xff] %v2811_v54 }
 0x3f6   :  { %1635 = vtanh.f32 %v2490_v61 }
 0x403   :  { %v1636_v63 = vpop.eup %1635 }
 0x404   :  { %v797_v3 = vmul.f32 %v1636_v63, %v1634_v9  ;;  %v2817_v9 = vld [vmem:[%s3047_s1 + $0x50] sm:$0xff]  ;;  %v2823_v63 = vld [vmem:[%s3047_s1 + $0x28] sm:$0xff] }
 0x405   :  { %3226 = vst [vmem:[#allocation19_spill] sm:$0xff] %v2817_v9  ;;  %3227 = vst [vmem:[#allocation11_spill] sm:$0xff] %v2823_v63 }
 0x406   :  { %v798_v60 = vpack.c.bf16 %v797_v3, %v797_v3  ;;  %873 = vmatmul.mubr.f32.vlgmr.msra.gmra.mxu0 %v797_v3  ;;  %944 = vmatmul.mubr.f32.vlgmr.msra.gmra.mxu1 %v797_v3  ;;  %v2829_v3 = vld [vmem:[%s3047_s1 + $0x38] sm:$0xff] }
 0x407   :  { %989 = vmatpush1.msra.mxu0 %v2496_v0  ;;  %1060 = vmatpush1.msra.mxu1 %v2502_v48  ;;  %3228 = vst [vmem:[#allocation20_spill] sm:$0xff] %v2829_v3 }
 0x408   :  { %1547 = vst [vmem:[%s3049_s2 + $0xc] sm:$0xf] %v798_v60  ;;  %990 = vmatprep.subr.mxu0 %v2511_v55  ;;  %1061 = vmatprep.subr.mxu1 %v2517_v58  ;;  %v2835_v60 = vld [vmem:[%s3047_s1 + $0x20] sm:$0xff] }
 0x409   :  { %991 = vmatpush1.msra.mxu0 %v2523_v53  ;;  %1062 = vmatpush1.msra.mxu1 %v2529_v57  ;;  %3229 = vst [vmem:[#allocation13_spill] sm:$0xff] %v2835_v60 }
 0x40a   :  { %992 = vmatprep.subr.mxu0 %v2535_v59  ;;  %1063 = vmatprep.subr.mxu1 %v2541_v50 }
 0x40b   :  { %993 = vmatpush1.msra.mxu0 %v2547_v56  ;;  %1064 = vmatpush1.msra.mxu1 %v2553_v44 }
 0x40c   :  { %994 = vmatprep.subr.mxu0 %v2559_v1  ;;  %1065 = vmatprep.subr.mxu1 %v2565_v2 }
 0x40d   :  { %995 = vmatpush1.msra.mxu0 %v2571_v4  ;;  %1066 = vmatpush1.msra.mxu1 %v2577_v5 }
 0x40e   :  { %996 = vmatprep.subr.mxu0 %v2583_v6  ;;  %1067 = vmatprep.subr.mxu1 %v2589_v7 }
 0x40f   :  { %997 = vmatpush1.msra.mxu0 %v2595_v8  ;;  %1068 = vmatpush1.msra.mxu1 %v2601_v10 }
 0x410   :  { %998 = vmatprep.subr.mxu0 %v2607_v11  ;;  %1069 = vmatprep.subr.mxu1 %v2613_v12 }
 0x411   :  { %999 = vmatpush1.msra.mxu0 %v2619_v13  ;;  %1070 = vmatpush1.msra.mxu1 %v2625_v14 }
 0x412   :  { %1000 = vmatprep.subr.mxu0 %v2631_v15  ;;  %1071 = vmatprep.subr.mxu1 %v2637_v17 }
 0x413   :  { %1001 = vmatpush1.msra.mxu0 %v2643_v19  ;;  %1072 = vmatpush1.msra.mxu1 %v2649_v24 }
 0x414   :  { %1002 = vmatprep.subr.mxu0 %v2655_v25  ;;  %1073 = vmatprep.subr.mxu1 %v2661_v26 }
 0x415   :  { %1003 = vmatpush1.msra.mxu0 %v2667_v27  ;;  %1074 = vmatpush1.msra.mxu1 %v2673_v28 }
 0x416   :  { %1004 = vmatprep.subr.mxu0 %v2679_v29  ;;  %1075 = vmatprep.subr.mxu1 %v2685_v30 }
 0x417   :  { %1005 = vmatpush1.msra.mxu0 %v2691_v31  ;;  %1076 = vmatpush1.msra.mxu1 %v2697_v32 }
 0x418   :  { %1006 = vmatprep.subr.mxu0 %v2703_v33  ;;  %1077 = vmatprep.subr.mxu1 %v2709_v34 }
 0x419   :  { %1007 = vmatpush1.msra.mxu0 %v2715_v35  ;;  %1078 = vmatpush1.msra.mxu1 %v2721_v36 }
 0x41a   :  { %1008 = vmatprep.subr.mxu0 %v2727_v37  ;;  %1079 = vmatprep.subr.mxu1 %v2733_v38 }
 0x41b   :  { %1009 = vmatpush1.msra.mxu0 %v2739_v39  ;;  %1080 = vmatpush1.msra.mxu1 %v2745_v40 }
 0x41c   :  { %1010 = vmatprep.subr.mxu0 %v2751_v41  ;;  %1081 = vmatprep.subr.mxu1 %v2757_v43 }
 0x41d   :  { %1011 = vmatpush1.msra.mxu0 %v2763_v45  ;;  %1082 = vmatpush1.msra.mxu1 %v2769_v47 }
 0x41e   :  { %1012 = vmatprep.subr.mxu0 %v2775_v49  ;;  %1083 = vmatprep.subr.mxu1 %v2781_v51 }
 0x41f   :  { %1013 = vmatpush1.msra.mxu0 %v2787_v52  ;;  %1084 = vmatpush1.msra.mxu1 %v2793_v42 }
 0x420   :  { %1014 = vmatprep.subr.mxu0 %v2799_v46  ;;  %1085 = vmatprep.subr.mxu1 %v2805_v62 }
 0x421   :  { %1015 = vmatpush1.msra.mxu0 %v2811_v54  ;;  %1086 = vmatpush1.msra.mxu1 %v2817_v9 }
 0x422   :  { %1016 = vmatprep.subr.mxu0 %v2823_v63  ;;  %1087 = vmatprep.subr.mxu1 %v2829_v3  ;;  %v2842_v63 = vld [vmem:[%s3047_s1 + $0x8] sm:$0xff]  ;;  %v2849_v3 = vld [vmem:[%s3047_s1] sm:$0xff] }
 0x423   :  { %1017 = vmatpush1.msra.mxu0 %v2835_v60  ;;  %1088 = vmatpush1.msra.mxu1 %v3209_v16  ;;  %3230 = vst [vmem:[#allocation21_spill] sm:$0xff] %v2842_v63  ;;  %3231 = vst [vmem:[#allocation15_spill] sm:$0xff] %v2849_v3  ;;  %v1548_v16 = vld [vmem:[%s3048_s0 + $0x40] sm:$0xff] }
 0x424   :  { %1018 = vmatprep.subr.mxu0 %v2842_v63  ;;  %1089 = vmatprep.subr.mxu1 %v3211_v18  ;;  %v804_v18 = vunpack.c.l.bf16 %v1548_v16  ;;  %v805_v63 = vunpack.c.h.bf16 %v1548_v16 }
 0x425   :  { %1019 = vmatpush1.msra.mxu0 %v2849_v3  ;;  %1052 = vmatprep.mubr.f32.mxu0 %v3213_v20 }
 0x426   :  { %1090 = vmatpush1.msra.mxu1 %v3214_v21  ;;  %1123 = vmatprep.mubr.f32.mxu1 %v3213_v20 }
 0x427   :  { %1168 = vmatprep.subr.mxu0 %v2474_v22  ;;  %1239 = vmatprep.subr.mxu1 %v2480_v23  ;;  %v1549_v22 = vld [vmem:[%s3048_s0 + $0x48] sm:$0xff] }
 0x428   :  { %v807_v23 = vunpack.c.h.bf16 %v1549_v22  ;;  %v806_v52 = vunpack.c.l.bf16 %v1549_v22 }
 0x4c6   :  { %v874_v60 = vpop.f32.mrf.mxu0  ;;  %v945_v46 = vpop.f32.mrf.mxu1 }
 0x4c7   :  { %v950_v9 = vadd.f32 %v874_v60, %v804_v18  ;;  %v952_v16 = vadd.f32 %v945_v46, %v806_v52  ;;  %v3235_v52 = vld [vmem:[#allocation14_spill] sm:$0xff]  ;;  %v3237_v46 = vld [vmem:[#allocation16_spill] sm:$0xff] }
 0x4c8   :  { %v876_v54 = vpop.f32.mrf.mxu0  ;;  %v947_v20 = vpop.f32.mrf.mxu1 }
 0x4c9   :  { %v1550_v3 = vmul.f32 -1.442695, %v950_v9  ;;  %v951_v62 = vadd.f32 %v876_v54, %v805_v63  ;;  %v953_v42 = vadd.f32 %v947_v20, %v807_v23 }
 0x4cb   :  { %1637 = vpow2.f32 %v1550_v3  ;;  %v1551_v21 = vmul.f32 -1.442695, %v951_v62  ;;  %v1552_v51 = vmul.f32 -1.442695, %v953_v42  ;;  %v3236_v42 = vld [vmem:[#allocation8_spill] sm:$0xff] }
 0x4cd   :  { %1639 = vpow2.f32 %v1551_v21 }
 0x4ce   :  { %1641 = vpow2.f32 %v1552_v51  ;;  %v3234_v51 = vld [vmem:[#allocation7_spill] sm:$0xff] }
 0x4d8   :  { %v1638_v49 = vpop.eup %1637 }
 0x4d9   :  { %v957_v47 = vadd.f32 1.0, %v1638_v49 }
 0x4da   :  { %v1640_v60 = vpop.eup %1639 }
 0x4db   :  { %1643 = vrcp.f32 %v957_v47  ;;  %v963_v54 = vadd.f32 1.0, %v1640_v60  ;;  %v1642_v62 = vpop.eup %1641  ;;  %v3239_v60 = vld [vmem:[#allocation18_spill] sm:$0xff] }
 0x4dc   :  { %1645 = vtanh.f32 %v952_v16  ;;  %v970_v18 = vadd.f32 1.0, %v1642_v62  ;;  %v3238_v16 = vld [vmem:[#allocation9_spill] sm:$0xff]  ;;  %v3241_v62 = vld [vmem:[#allocation19_spill] sm:$0xff] }
 0x4dd   :  { %1647 = vrcp.f32 %v963_v54  ;;  %v3240_v54 = vld [vmem:[#allocation10_spill] sm:$0xff] }
 0x4de   :  { %1649 = vrcp.f32 %v970_v18  ;;  %v2930_v18 = vld [vmem:[%s3047_s1 + $0x30] sm:$0xff] }
 0x4df   :  { %3245 = vst [vmem:[#allocation22_spill] sm:$0xff] %v2930_v18 }
 0x4e8   :  { %v1644_v9 = vpop.eup %1643 }
 0x4e9   :  { %v1646_v63 = vpop.eup %1645 }
 0x4ea   :  { %v1648_v3 = vpop.eup %1647  ;;  %v974_v21 = vmul.f32 %v1646_v63, %v1644_v9  ;;  %v3242_v9 = vld [vmem:[#allocation11_spill] sm:$0xff]  ;;  %v3243_v63 = vld [vmem:[#allocation20_spill] sm:$0xff] }
 0x4eb   :  { %v973_v45 = vmul.f32 %v1648_v3, %v2490_v61  ;;  %v1650_v22 = vpop.eup %1649  ;;  %v3232_v61 = vld [vmem:[#allocation6_spill] sm:$0xff]  ;;  %v3244_v3 = vld [vmem:[#allocation13_spill] sm:$0xff] }
 0x4ed   :  { %v2864_v20 = vadd.f32 %v974_v21, %v973_v45  ;;  %v3233_v45 = vld [vmem:[#allocation12_spill] sm:$0xff]  ;;  %v3246_v21 = vld [vmem:[#allocation21_spill] sm:$0xff] }
 0x4ef   :  { %1651 = vtanh.f32 %v2864_v20 }
 0x4fc   :  { %v1652_v23 = vpop.eup %1651 }
 0x4fd   :  { %v977_v49 = vmul.f32 %v1652_v23, %v1650_v22  ;;  %v2937_v22 = vld [vmem:[%s3047_s1 + $0x18] sm:$0xff] }
 0x4fe   :  { %3247 = vst [vmem:[#allocation17_spill] sm:$0xff] %v2937_v22  ;;  %v3248_v23 = vld [vmem:[#allocation15_spill] sm:$0xff] }
 0x4ff   :  { %v978_v47 = vpack.c.bf16 %v977_v49, %v977_v49  ;;  %1053 = vmatmul.mubr.f32.vlgmr.msra.gmra.mxu0 %v977_v49  ;;  %1124 = vmatmul.mubr.f32.vlgmr.msra.gmra.mxu1 %v977_v49  ;;  %v3249_v49 = vmov 0.0  }
 0x500   :  { %1169 = vmatpush1.msra.mxu0 %v2496_v0  ;;  %1240 = vmatpush1.msra.mxu1 %v2502_v48 }
 0x501   :  { %1553 = vst [vmem:[%s3049_s2 + $0x10] sm:$0xf] %v978_v47  ;;  %1170 = vmatprep.subr.mxu0 %v2511_v55  ;;  %1241 = vmatprep.subr.mxu1 %v2517_v58  ;;  %v2945_v47 = vld [vmem:[%s3047_s1 + $0x10] sm:$0xff] }
 0x502   :  { %1171 = vmatpush1.msra.mxu0 %v2523_v53  ;;  %1242 = vmatpush1.msra.mxu1 %v2529_v57  ;;  %3250 = vst [vmem:[#allocation23_spill] sm:$0xff] %v2945_v47 }
 0x503   :  { %1172 = vmatprep.subr.mxu0 %v2535_v59  ;;  %1243 = vmatprep.subr.mxu1 %v2541_v50 }
 0x504   :  { %1173 = vmatpush1.msra.mxu0 %v2547_v56  ;;  %1244 = vmatpush1.msra.mxu1 %v2553_v44 }
 0x505   :  { %1174 = vmatprep.subr.mxu0 %v2559_v1  ;;  %1245 = vmatprep.subr.mxu1 %v2565_v2 }
 0x506   :  { %1175 = vmatpush1.msra.mxu0 %v2571_v4  ;;  %1246 = vmatpush1.msra.mxu1 %v2577_v5 }
 0x507   :  { %1176 = vmatprep.subr.mxu0 %v2583_v6  ;;  %1247 = vmatprep.subr.mxu1 %v2589_v7 }
 0x508   :  { %1177 = vmatpush1.msra.mxu0 %v2595_v8  ;;  %1248 = vmatpush1.msra.mxu1 %v2601_v10 }
 0x509   :  { %1178 = vmatprep.subr.mxu0 %v2607_v11  ;;  %1249 = vmatprep.subr.mxu1 %v2613_v12 }
 0x50a   :  { %1179 = vmatpush1.msra.mxu0 %v2619_v13  ;;  %1250 = vmatpush1.msra.mxu1 %v2625_v14 }
 0x50b   :  { %1180 = vmatprep.subr.mxu0 %v2631_v15  ;;  %1251 = vmatprep.subr.mxu1 %v2637_v17 }
 0x50c   :  { %1181 = vmatpush1.msra.mxu0 %v2643_v19  ;;  %1252 = vmatpush1.msra.mxu1 %v2649_v24 }
 0x50d   :  { %1182 = vmatprep.subr.mxu0 %v2655_v25  ;;  %1253 = vmatprep.subr.mxu1 %v2661_v26 }
 0x50e   :  { %1183 = vmatpush1.msra.mxu0 %v2667_v27  ;;  %1254 = vmatpush1.msra.mxu1 %v2673_v28 }
 0x50f   :  { %1184 = vmatprep.subr.mxu0 %v2679_v29  ;;  %1255 = vmatprep.subr.mxu1 %v2685_v30 }
 0x510   :  { %1185 = vmatpush1.msra.mxu0 %v2691_v31  ;;  %1256 = vmatpush1.msra.mxu1 %v2697_v32 }
 0x511   :  { %1186 = vmatprep.subr.mxu0 %v2703_v33  ;;  %1257 = vmatprep.subr.mxu1 %v2709_v34 }
 0x512   :  { %1187 = vmatpush1.msra.mxu0 %v2715_v35  ;;  %1258 = vmatpush1.msra.mxu1 %v2721_v36 }
 0x513   :  { %1188 = vmatprep.subr.mxu0 %v2727_v37  ;;  %1259 = vmatprep.subr.mxu1 %v2733_v38 }
 0x514   :  { %1189 = vmatpush1.msra.mxu0 %v2739_v39  ;;  %1260 = vmatpush1.msra.mxu1 %v2745_v40 }
 0x515   :  { %1190 = vmatprep.subr.mxu0 %v2751_v41  ;;  %1261 = vmatprep.subr.mxu1 %v2757_v43 }
 0x516   :  { %1191 = vmatpush1.msra.mxu0 %v3232_v61  ;;  %1262 = vmatpush1.msra.mxu1 %v3233_v45 }
 0x517   :  { %1192 = vmatprep.subr.mxu0 %v3234_v51  ;;  %1263 = vmatprep.subr.mxu1 %v3235_v52 }
 0x518   :  { %1193 = vmatpush1.msra.mxu0 %v3236_v42  ;;  %1264 = vmatpush1.msra.mxu1 %v3237_v46 }
 0x519   :  { %1194 = vmatprep.subr.mxu0 %v3238_v16  ;;  %1265 = vmatprep.subr.mxu1 %v3239_v60 }
 0x51a   :  { %1195 = vmatpush1.msra.mxu0 %v3240_v54  ;;  %1266 = vmatpush1.msra.mxu1 %v3241_v62 }
 0x51b   :  { %1196 = vmatprep.subr.mxu0 %v3242_v9  ;;  %1267 = vmatprep.subr.mxu1 %v3243_v63 }
 0x51c   :  { %1197 = vmatpush1.msra.mxu0 %v3244_v3  ;;  %1268 = vmatpush1.msra.mxu1 %v2930_v18  ;;  %v3252_v18 = vld [vmem:[#allocation5_spill] sm:$0xff] }
 0x51d   :  { %1198 = vmatprep.subr.mxu0 %v3246_v21  ;;  %1269 = vmatprep.subr.mxu1 %v2937_v22  ;;  %v3251_v21 = vld [vmem:[#allocation4_spill] sm:$0xff]  ;;  %v1554_v22 = vld [vmem:[%s3048_s0 + $0x50] sm:$0xff] }
 0x51e   :  { %1199 = vmatpush1.msra.mxu0 %v3248_v23  ;;  %1232 = vmatprep.mubr.f32.mxu0 %v3249_v49  ;;  %v984_v23 = vunpack.c.l.bf16 %v1554_v22  ;;  %v985_v3 = vunpack.c.h.bf16 %v1554_v22 }
 0x51f   :  { %1270 = vmatpush1.msra.mxu1 %v2945_v47  ;;  %1303 = vmatprep.mubr.f32.mxu1 %v3249_v49 }
 0x520   :  { %1348 = vmatprep.subr.mxu0 %v3251_v21  ;;  %1419 = vmatprep.subr.mxu1 %v3252_v18  ;;  %v1555_v21 = vld [vmem:[%s3048_s0 + $0x58] sm:$0xff] }
 0x521   :  { %v987_v18 = vunpack.c.h.bf16 %v1555_v21  ;;  %v986_v42 = vunpack.c.l.bf16 %v1555_v21 }
 0x5bf   :  { %v1054_v63 = vpop.f32.mrf.mxu0  ;;  %v1125_v16 = vpop.f32.mrf.mxu1 }
 0x5c0   :  { %v1130_v9 = vadd.f32 %v1054_v63, %v984_v23  ;;  %v1132_v22 = vadd.f32 %v1125_v16, %v986_v42 }
 0x5c1   :  { %v1056_v62 = vpop.f32.mrf.mxu0  ;;  %v1127_v49 = vpop.f32.mrf.mxu1 }
 0x5c2   :  { %v1556_v54 = vmul.f32 -1.442695, %v1130_v9  ;;  %v1131_v60 = vadd.f32 %v1056_v62, %v985_v3  ;;  %v1133_v46 = vadd.f32 %v1127_v49, %v987_v18 }
 0x5c4   :  { %1653 = vpow2.f32 %v1556_v54  ;;  %v1557_v47 = vmul.f32 -1.442695, %v1131_v60  ;;  %v1558_v52 = vmul.f32 -1.442695, %v1133_v46 }
 0x5c6   :  { %1655 = vpow2.f32 %v1557_v47 }
 0x5c7   :  { %1657 = vpow2.f32 %v1558_v52 }
 0x5d1   :  { %v1654_v51 = vpop.eup %1653 }
 0x5d2   :  { %v1137_v45 = vadd.f32 1.0, %v1654_v51 }
 0x5d3   :  { %v1656_v63 = vpop.eup %1655 }
 0x5d4   :  { %1659 = vrcp.f32 %v1137_v45  ;;  %v1143_v62 = vadd.f32 1.0, %v1656_v63  ;;  %v1658_v60 = vpop.eup %1657 }
 0x5d5   :  { %1661 = vtanh.f32 %v1132_v22  ;;  %v1150_v23 = vadd.f32 1.0, %v1658_v60 }
 0x5d6   :  { %1663 = vrcp.f32 %v1143_v62  ;;  %v1566_v62 = vld [vmem:[%s3048_s0 + $0x70] sm:$0xff] }
 0x5d7   :  { %1665 = vrcp.f32 %v1150_v23  ;;  %v1344_v60 = vunpack.c.l.bf16 %v1566_v62 }
 0x5e1   :  { %v1660_v54 = vpop.eup %1659 }
 0x5e2   :  { %v1662_v9 = vpop.eup %1661 }
 0x5e3   :  { %v1664_v3 = vpop.eup %1663  ;;  %v1154_v47 = vmul.f32 %v1662_v9, %v1660_v54  ;;  %v1345_v54 = vunpack.c.h.bf16 %v1566_v62 }
 0x5e4   :  { %v1153_v61 = vmul.f32 %v1664_v3, %v2864_v20  ;;  %v1666_v51 = vpop.eup %1665 }
 0x5e6   :  { %v2958_v49 = vadd.f32 %v1154_v47, %v1153_v61 }
 0x5e8   :  { %1667 = vtanh.f32 %v2958_v49 }
 0x5f5   :  { %v1668_v42 = vpop.eup %1667 }
 0x5f6   :  { %v1157_v52 = vmul.f32 %v1668_v42, %v1666_v51 }
 0x5f8   :  { %v1158_v45 = vpack.c.bf16 %v1157_v52, %v1157_v52  ;;  %1233 = vmatmul.mubr.f32.vlgmr.msra.gmra.mxu0 %v1157_v52  ;;  %1304 = vmatmul.mubr.f32.vlgmr.msra.gmra.mxu1 %v1157_v52  ;;  %v1567_v52 = vld [vmem:[%s3048_s0 + $0x78] sm:$0xff] }
 0x5f9   :  { %1349 = vmatpush1.msra.mxu0 %v2496_v0  ;;  %1420 = vmatpush1.msra.mxu1 %v2502_v48  ;;  %v3253_v0 = vld [vmem:[#allocation6_spill] sm:$0xff]  ;;  %v3254_v48 = vld [vmem:[#allocation12_spill] sm:$0xff] }
 0x5fa   :  { %1559 = vst [vmem:[%s3049_s2 + $0x14] sm:$0xf] %v1158_v45  ;;  %1350 = vmatprep.subr.mxu0 %v2511_v55  ;;  %1421 = vmatprep.subr.mxu1 %v2517_v58  ;;  %v3255_v55 = vld [vmem:[#allocation7_spill] sm:$0xff]  ;;  %v3256_v58 = vld [vmem:[#allocation14_spill] sm:$0xff]  ;;  %v1347_v45 = vunpack.c.h.bf16 %v1567_v52 }
 0x5fb   :  { %1351 = vmatpush1.msra.mxu0 %v2523_v53  ;;  %1422 = vmatpush1.msra.mxu1 %v2529_v57  ;;  %v3257_v53 = vld [vmem:[#allocation8_spill] sm:$0xff] }
 0x5fc   :  { %1352 = vmatprep.subr.mxu0 %v2535_v59  ;;  %1423 = vmatprep.subr.mxu1 %v2541_v50  ;;  %v3258_v57 = vld [vmem:[#allocation16_spill] sm:$0xff]  ;;  %v3259_v59 = vld [vmem:[#allocation9_spill] sm:$0xff]  ;;  %v3260_v50 = vld [vmem:[#allocation18_spill] sm:$0xff] }
 0x5fd   :  { %1353 = vmatpush1.msra.mxu0 %v2547_v56  ;;  %1424 = vmatpush1.msra.mxu1 %v2553_v44  ;;  %v3261_v56 = vld [vmem:[#allocation10_spill] sm:$0xff]  ;;  %v3262_v44 = vld [vmem:[#allocation19_spill] sm:$0xff] }
 0x5fe   :  { %1354 = vmatprep.subr.mxu0 %v2559_v1  ;;  %1425 = vmatprep.subr.mxu1 %v2565_v2  ;;  %v3263_v1 = vld [vmem:[#allocation11_spill] sm:$0xff]  ;;  %v3264_v2 = vld [vmem:[#allocation20_spill] sm:$0xff] }
 0x5ff   :  { %1355 = vmatpush1.msra.mxu0 %v2571_v4  ;;  %1426 = vmatpush1.msra.mxu1 %v2577_v5  ;;  %v3265_v4 = vld [vmem:[#allocation13_spill] sm:$0xff]  ;;  %v3266_v5 = vld [vmem:[#allocation22_spill] sm:$0xff] }
 0x600   :  { %1356 = vmatprep.subr.mxu0 %v2583_v6  ;;  %1427 = vmatprep.subr.mxu1 %v2589_v7  ;;  %v3267_v6 = vld [vmem:[#allocation21_spill] sm:$0xff] }
 0x601   :  { %1357 = vmatpush1.msra.mxu0 %v2595_v8  ;;  %1428 = vmatpush1.msra.mxu1 %v2601_v10  ;;  %v3268_v7 = vld [vmem:[#allocation17_spill] sm:$0xff]  ;;  %v3269_v8 = vld [vmem:[#allocation15_spill] sm:$0xff]  ;;  %v3270_v10 = vmov 0.0  }
 0x602   :  { %1358 = vmatprep.subr.mxu0 %v2607_v11  ;;  %1429 = vmatprep.subr.mxu1 %v2613_v12  ;;  %v3271_v11 = vld [vmem:[#allocation23_spill] sm:$0xff]  ;;  %v1560_v12 = vld [vmem:[%s3048_s0 + $0x60] sm:$0xff] }
 0x603   :  { %1359 = vmatpush1.msra.mxu0 %v2619_v13  ;;  %1430 = vmatpush1.msra.mxu1 %v2625_v14  ;;  %v1164_v13 = vunpack.c.l.bf16 %v1560_v12  ;;  %v1165_v14 = vunpack.c.h.bf16 %v1560_v12 }
 0x604   :  { %1360 = vmatprep.subr.mxu0 %v2631_v15  ;;  %1431 = vmatprep.subr.mxu1 %v2637_v17 }
 0x605   :  { %1361 = vmatpush1.msra.mxu0 %v2643_v19  ;;  %1432 = vmatpush1.msra.mxu1 %v2649_v24 }
 0x606   :  { %1362 = vmatprep.subr.mxu0 %v2655_v25  ;;  %1433 = vmatprep.subr.mxu1 %v2661_v26 }
 0x607   :  { %1363 = vmatpush1.msra.mxu0 %v2667_v27  ;;  %1434 = vmatpush1.msra.mxu1 %v2673_v28  ;;  %v1561_v28 = vld [vmem:[%s3048_s0 + $0x68] sm:$0xff] }
 0x608   :  { %1364 = vmatprep.subr.mxu0 %v2679_v29  ;;  %1435 = vmatprep.subr.mxu1 %v2685_v30  ;;  %v1167_v29 = vunpack.c.h.bf16 %v1561_v28 }
 0x609   :  { %1365 = vmatpush1.msra.mxu0 %v2691_v31  ;;  %1436 = vmatpush1.msra.mxu1 %v2697_v32  ;;  %v1166_v32 = vunpack.c.l.bf16 %v1561_v28 }
 0x60a   :  { %1366 = vmatprep.subr.mxu0 %v2703_v33  ;;  %1437 = vmatprep.subr.mxu1 %v2709_v34 }
 0x60b   :  { %1367 = vmatpush1.msra.mxu0 %v2715_v35  ;;  %1438 = vmatpush1.msra.mxu1 %v2721_v36 }
 0x60c   :  { %1368 = vmatprep.subr.mxu0 %v2727_v37  ;;  %1439 = vmatprep.subr.mxu1 %v2733_v38 }
 0x60d   :  { %1369 = vmatpush1.msra.mxu0 %v2739_v39  ;;  %1440 = vmatpush1.msra.mxu1 %v2745_v40 }
 0x60e   :  { %1370 = vmatprep.subr.mxu0 %v2751_v41  ;;  %1441 = vmatprep.subr.mxu1 %v2757_v43 }
 0x60f   :  { %1371 = vmatpush1.msra.mxu0 %v3253_v0  ;;  %1442 = vmatpush1.msra.mxu1 %v3254_v48 }
 0x610   :  { %1372 = vmatprep.subr.mxu0 %v3255_v55  ;;  %1443 = vmatprep.subr.mxu1 %v3256_v58  ;;  %v1346_v55 = vunpack.c.l.bf16 %v1567_v52 }
 0x611   :  { %1373 = vmatpush1.msra.mxu0 %v3257_v53  ;;  %1444 = vmatpush1.msra.mxu1 %v3258_v57 }
 0x612   :  { %1374 = vmatprep.subr.mxu0 %v3259_v59  ;;  %1445 = vmatprep.subr.mxu1 %v3260_v50 }
 0x613   :  { %1375 = vmatpush1.msra.mxu0 %v3261_v56  ;;  %1446 = vmatpush1.msra.mxu1 %v3262_v44 }
 0x614   :  { %1376 = vmatprep.subr.mxu0 %v3263_v1  ;;  %1447 = vmatprep.subr.mxu1 %v3264_v2 }
 0x615   :  { %1377 = vmatpush1.msra.mxu0 %v3265_v4  ;;  %1448 = vmatpush1.msra.mxu1 %v3266_v5 }
 0x616   :  { %1378 = vmatprep.subr.mxu0 %v3267_v6  ;;  %1449 = vmatprep.subr.mxu1 %v3268_v7 }
 0x617   :  { %1379 = vmatpush1.msra.mxu0 %v3269_v8  ;;  %1412 = vmatprep.mubr.f32.mxu0 %v3270_v10 }
 0x618   :  { %1450 = vmatpush1.msra.mxu1 %v3271_v11  ;;  %1483 = vmatprep.mubr.f32.mxu1 %v3270_v10 }
 0x6b8   :  { %v1234_v15 = vpop.f32.mrf.mxu0  ;;  %v1305_v26 = vpop.f32.mrf.mxu1 }
 0x6b9   :  { %v1310_v17 = vadd.f32 %v1234_v15, %v1164_v13  ;;  %v1312_v35 = vadd.f32 %v1305_v26, %v1166_v32 }
 0x6ba   :  { %v1236_v19 = vpop.f32.mrf.mxu0  ;;  %v1307_v30 = vpop.f32.mrf.mxu1 }
 0x6bb   :  { %v1562_v24 = vmul.f32 -1.442695, %v1310_v17  ;;  %v1311_v25 = vadd.f32 %v1236_v19, %v1165_v14  ;;  %v1313_v31 = vadd.f32 %v1307_v30, %v1167_v29 }
 0x6bd   :  { %1669 = vpow2.f32 %v1562_v24  ;;  %v1563_v27 = vmul.f32 -1.442695, %v1311_v25  ;;  %v1564_v33 = vmul.f32 -1.442695, %v1313_v31 }
 0x6bf   :  { %1671 = vpow2.f32 %v1563_v27 }
 0x6c0   :  { %1673 = vpow2.f32 %v1564_v33 }
 0x6ca   :  { %v1670_v34 = vpop.eup %1669 }
 0x6cb   :  { %v1317_v36 = vadd.f32 1.0, %v1670_v34 }
 0x6cc   :  { %v1672_v37 = vpop.eup %1671 }
 0x6cd   :  { %1675 = vrcp.f32 %v1317_v36  ;;  %v1323_v38 = vadd.f32 1.0, %v1672_v37  ;;  %v1674_v39 = vpop.eup %1673 }
 0x6ce   :  { %1677 = vtanh.f32 %v1312_v35  ;;  %v1330_v20 = vadd.f32 1.0, %v1674_v39 }
 0x6cf   :  { %1679 = vrcp.f32 %v1323_v38 }
 0x6d0   :  { %1681 = vrcp.f32 %v1330_v20 }
 0x6da   :  { %v1676_v40 = vpop.eup %1675 }
 0x6db   :  { %v1678_v41 = vpop.eup %1677 }
 0x6dc   :  { %v1680_v43 = vpop.eup %1679  ;;  %v1334_v61 = vmul.f32 %v1678_v41, %v1676_v40 }
 0x6dd   :  { %v1333_v46 = vmul.f32 %v1680_v43, %v2958_v49  ;;  %v1682_v21 = vpop.eup %1681 }
 0x6df   :  { %v1335_v16 = vadd.f32 %v1334_v61, %v1333_v46 }
 0x6e1   :  { %1683 = vtanh.f32 %v1335_v16 }
 0x6ee   :  { %v1684_v18 = vpop.eup %1683 }
 0x6ef   :  { %v1337_v22 = vmul.f32 %v1684_v18, %v1682_v21 }
 0x6f1   :  { %v1338_v63 = vpack.c.bf16 %v1337_v22, %v1337_v22  ;;  %1413 = vmatmul.mubr.f32.vlgmr.msra.gmra.mxu0 %v1337_v22  ;;  %1484 = vmatmul.mubr.f32.vlgmr.msra.gmra.mxu1 %v1337_v22 }
 0x6f3   :  { %1565 = vst [vmem:[%s3049_s2 + $0x18] sm:$0xf] %v1338_v63 }
 0x7b1   :  { %v1414_v9 = vpop.f32.mrf.mxu0  ;;  %v1485_v51 = vpop.f32.mrf.mxu1 }
 0x7b2   :  { %v1490_v3 = vadd.f32 %v1414_v9, %v1344_v60  ;;  %v1492_v57 = vadd.f32 %v1485_v51, %v1346_v55 }
 0x7b3   :  { %v1416_v23 = vpop.f32.mrf.mxu0  ;;  %v1487_v0 = vpop.f32.mrf.mxu1 }
 0x7b4   :  { %v1568_v47 = vmul.f32 -1.442695, %v1490_v3  ;;  %v1491_v49 = vadd.f32 %v1416_v23, %v1345_v54  ;;  %v1493_v48 = vadd.f32 %v1487_v0, %v1347_v45 }
 0x7b6   :  { %1685 = vpow2.f32 %v1568_v47  ;;  %v1569_v42 = vmul.f32 -1.442695, %v1491_v49  ;;  %v1570_v58 = vmul.f32 -1.442695, %v1493_v48 }
 0x7b8   :  { %1687 = vpow2.f32 %v1569_v42 }
 0x7b9   :  { %1689 = vpow2.f32 %v1570_v58 }
 0x7c3   :  { %v1686_v53 = vpop.eup %1685 }
 0x7c4   :  { %v1497_v59 = vadd.f32 1.0, %v1686_v53 }
 0x7c5   :  { %v1688_v50 = vpop.eup %1687 }
 0x7c6   :  { %1691 = vrcp.f32 %v1497_v59  ;;  %v1503_v56 = vadd.f32 1.0, %v1688_v50  ;;  %v1690_v44 = vpop.eup %1689 }
 0x7c7   :  { %1693 = vtanh.f32 %v1492_v57  ;;  %v1510_v5 = vadd.f32 1.0, %v1690_v44 }
 0x7c8   :  { %1695 = vrcp.f32 %v1503_v56 }
 0x7c9   :  { %1697 = vrcp.f32 %v1510_v5 }
 0x7d3   :  { %v1692_v1 = vpop.eup %1691 }
 0x7d4   :  { %v1694_v2 = vpop.eup %1693 }
 0x7d5   :  { %v1696_v4 = vpop.eup %1695  ;;  %v1514_v6 = vmul.f32 %v1694_v2, %v1692_v1 }
 0x7d6   :  { %v1513_v7 = vmul.f32 %v1696_v4, %v1335_v16  ;;  %v1698_v10 = vpop.eup %1697 }
 0x7d8   :  { %v1515_v8 = vadd.f32 %v1514_v6, %v1513_v7 }
 0x7da   :  { %1699 = vtanh.f32 %v1515_v8 }
 0x7e7   :  { %v1700_v11 = vpop.eup %1699 }
 0x7e8   :  { %v1517_v12 = vmul.f32 %v1700_v11, %v1698_v10 }
 0x7ea   :  { %v1518_v13 = vpack.c.bf16 %v1517_v12, %v1517_v12 }
 0x7ec   :  { %1571 = vst [vmem:[%s3049_s2 + $0x1c] sm:$0xf] %v1518_v13 }

// kernel: forward.16
= control target key start
LH: loop header
LB: loop body
LE: loop exit
PB: predicated region body
PF: predicated region fallthrough
CT: control target
= control target key end

     0   :  { %s641_s12 = smov 0   ;;  %s643_s13 = smov 0   ;;  %s709_s0 = inlined_call_operand.vmem [shape: bf16[2,8,8,8], index: 0, kind: input, shape index: {}]   ;;  %s710_s1 = inlined_call_operand.vmem [shape: bf16[2,8,8,8], index: 1, kind: input, shape index: {}]   ;;  %s711_s2 = inlined_call_operand.vmem [shape: bf16[2,8,8,8], index: 2, kind: input, shape index: {}]   ;;  %s712_s3 = inlined_call_operand.vmem [shape: bf16[2,8,8,8], index: 3, kind: output, shape index: {}]  }
   0x1   :  { %s645_s14 = smov 0   ;;  %s647_s15 = smov 0  }
   0x2   :  { %s649_s16 = smov 0  }
   0x3 LB: > { %s22_s17 = sadd.s32 1, %s609_s14  ;;  %s25_s18 = sadd.s32 1, %s613_s15  ;;  %s617_s16 = sphi %s649_s16, %s13_s16   ;;  %s613_s15 = sphi %s647_s15, %s716_s15   ;;  %s609_s14 = sphi %s645_s14, %s715_s14   ;;  %s605_s13 = sphi %s643_s13, %s714_s13   ;;  %s601_s12 = sphi %s641_s12, %s713_s12  }
   0x4   : > { %p23_p0 = scmp.ge.s32.totalorder %s22_s17, 8  ;;  %p504_p1 = scmp.ge.s32.totalorder %s617_s16, 1 }
   0x5   : > { %p186_p2 = scmp.lt.s32.totalorder %s617_s16, 17 }
   0x6   : > { %s718_s17 = smov (%p23_p0, %s22_s17), 0  ;;  %s720_s18 = smov (!%p23_p0, %s25_s18), %s613_s15 }
   0x7   : > { %p187_p3 = pnand %p504_p1, %p186_p2  ;;  %p27_p4 = scmp.ge.s32.totalorder %s720_s18, 2 }
   0x8   : > { %p232_p5 = scmp.lt.s32.totalorder (!%p187_p3), %s605_s13, 1  ;;  %p234_p6 = scmp.lt.s32.totalorder (!%p187_p3), %s601_s12, 7 }
   0x9   : > { %s722_s18 = smov (%p27_p4, %s720_s18), 0  ;;  %190 = sbr.rel (%p187_p3) target bundleno = 736 (0x2e0), region = 32 }
   0xe   : > { %v619_v0 = vmov 0.0   ;;  %vm620_vm0 = vmmov 0   ;;  %s724_s13 = smov (!%p232_p5, %s605_s13), 1  ;;  %s726_s12 = smov (!%p234_p6, %s601_s12), 7  ;;  %vm268_vm1 = vcmask 64512   ;;  %vm331_vm2 = vcmask 1043456  }
   0xf   : > { %521 = vmatprep.subr.bf16.mxu0 %v619_v0  ;;  %523 = vmatprep.mubr.msk.bf16.mxu0 %vm620_vm0, %v619_v0  ;;  %s505_s19 = sshll.u32 %s724_s13, 3  ;;  %vm376_vm3 = vcmask 60416  }
  0x10   : > { %527 = vmatprep.subr.bf16.mxu1 %v619_v0  ;;  %529 = vmatprep.mubr.msk.bf16.mxu1 %vm620_vm0, %v619_v0  ;;  %s237_s20 = sadd.s32 %s505_s19, %s726_s12 }
  0x11   : > { %s671_s21 = sshll.u32 %s237_s20, 2 }
  0x12   : > { %s247_s24 = scalar_lea.vmem %s710_s1, %s671_s21  ;;  %s239_s27 = scalar_lea.vmem %s709_s0, %s671_s21 }
  0x13   : > { %v266_v1 = vld [vmem:[%s247_s24] sm:$0xf]  ;;  %s255_s30 = scalar_lea.vmem %s711_s2, %s671_s21  ;;  %s263_s6 = scalar_lea.vmem %s712_s3, %s671_s21 }
  0x14   : > { %v273_v2 = vsel %vm268_vm1, %v266_v1, 0  ;;  %v265_v3 = vld [vmem:[%s239_s27] sm:$0xf] }
  0x15   : > { %522 = vmatpush3.bf16.xpose.msra.mxu0 %v273_v2  ;;  %v267_v15 = vld [vmem:[%s255_s30] sm:$0xf] }
  0x16   : > { %v333_v16 = vsel %vm331_vm2, %v267_v15, 0 }
  0x17   : > { %528 = vmatpush3.bf16.msra.mxu1 %v333_v16 }
  0x1c   : > { %524 = vmatmul.mubr.msk.bf16.vlgmr.msra.gmra.mxu0 %vm268_vm1, %v265_v3 }
  0xdc   : > { %v309_v4 = vpop.f32.mrf.mxu0 }
  0xdd   : > { %v315_v5 = vmul.f32 0.35355338, %v309_v4 }
  0xde   : > { %v525_v6 = vpop.f32.mrf.mxu0 }
  0xdf   : > { %v316_v7 = vsel %vm268_vm1, %v315_v5, -inf }
  0xe0   : > { %317 = vmax.xlane.f32.xlu0 %v316_v7  ;;  %v312_v8 = vpop.f32.mrf.mxu0 }
  0xe2   : > { %v526_v9 = vpop.f32.mrf.mxu0 }
 0x169   : > { %v318_v10 = vpop.xlane.xlu0 %317 }
 0x16a   : > { %v319_v11 = vsub.f32 %v315_v5, %v318_v10 }
 0x16c   : > { %v320_v12 = vmul.f32 1.442695, %v319_v11 }
 0x16e   : > { %575 = vpow2.f32 %v320_v12 }
 0x17b   : > { %v576_v13 = vpop.eup %575 }
 0x17c   : > { %v322_v14 = vsel %vm268_vm1, %v576_v13, 0.0 }
 0x17d   : > { %323 = vadd.xlane.f32.xlu0 %v322_v14 }
 0x206   : > { %v324_v17 = vpop.xlane.xlu0 %323 }
 0x207   : > { %577 = vrcp.f32 %v324_v17 }
 0x214   : > { %v578_v18 = vpop.eup %577 }
 0x215   : > { %v326_v19 = vmul.f32 %v578_v18, %v576_v13 }
 0x217   : > { %v327_v20 = vpack.c.bf16 %v326_v19, %v326_v19 }
 0x219   : > { %530 = vmatmul.mubr.msk.bf16.vlgmr.msra.gmra.mxu1 %vm268_vm1, %v327_v20 }
 0x2d9   : > { %v369_v21 = vpop.f32.mrf.mxu1 }
 0x2da   : > { %v375_v22 = vpack.c.bf16 %v369_v21, %v369_v21 }
 0x2db   : > { %v531_v23 = vpop.f32.mrf.mxu1 }
 0x2dc   : > { %377 = vst.msk [vmem:[%s263_s6] sm:$0xf] %vm376_vm3, %v375_v22 }
 0x2dd   : > { %v372_v24 = vpop.f32.mrf.mxu1 }
 0x2df   : > { %v532_v25 = vpop.f32.mrf.mxu1 }
 0x2e0 PF: > { %s13_s16 = sadd.s32 1, %s617_s16   ;;  %s713_s12 = smov %s609_s14 }
 0x2e1   : > { %p10_p7 = scmp.ge.s32.totalorder %s13_s16, 18   ;;  %s714_s13 = smov %s613_s15 }
 0x2e2   : > { %s715_s14 = smov %s718_s17  ;;  %s716_s15 = smov %s722_s18 }
 0x2e3   :  { %12 = sbr.rel (!%p10_p7) target bundleno = 3 (0x3), region = 68 }

// kernel: forward.17
= control target key start
LH: loop header
LB: loop body
LE: loop exit
PB: predicated region body
PF: predicated region fallthrough
CT: control target
= control target key end

     0   :  { %v173_v0 = vmov 0.0   ;;  %vm174_vm0 = vmmov 0   ;;  %vm64_vm1 = vcmask 523264   ;;  %s224_s1 = inlined_call_operand.vmem [shape: bf16[64,128], index: 1, kind: input, shape index: {}]   ;;  %s225_s0 = inlined_call_operand.vmem [shape: bf16[16,64], index: 0, kind: input, shape index: {}]   ;;  %s226_s2 = inlined_call_operand.vmem [shape: f32[1,128], index: 2, kind: input, shape index: {}]   ;;  %s227_s3 = inlined_call_operand.vmem [shape: bf16[16,128], index: 3, kind: input, shape index: {}]   ;;  %s228_s4 = inlined_call_operand.vmem [shape: bf16[16,128], index: 4, kind: output, shape index: {}]  }
   0x1   :  { %154 = vmatprep.subr.bf16.mxu0 %v173_v0  ;;  %v168_v1 = vld [vmem:[%s224_s1 + $0x18] sm:$0xff]   ;;  %162 = vmatprep.mubr.msk.bf16.mxu0 %vm174_vm0, %v173_v0  ;;  %v169_v2 = vld [vmem:[%s224_s1 + $0x10] sm:$0xff]   ;;  %v170_v3 = vld [vmem:[%s224_s1 + $0x8] sm:$0xff]  }
   0x2   :  { %155 = vmatpush3.bf16.msra.mxu0 %v168_v1  ;;  %v171_v4 = vld [vmem:[%s224_s1] sm:$0xff]  }
   0x3   :  { %156 = vmatprep.subr.bf16.mxu0 %v173_v0  ;;  %v172_v5 = vld [vmem:[%s225_s0] sm:$0xff]  }
   0x4   :  { %v129_v6 = vld [vmem:[%s226_s2] ss:$0 sm:$0xff] }
   0x5   :  { %v141_v8 = vld [vmem:[%s227_s3] sm:$0xff]  }
   0x6   :  { %157 = vmatpush3.bf16.msra.mxu0 %v169_v2  ;;  %v142_v11 = vunpack.c.l.bf16 %v141_v8  ;;  %v143_v12 = vunpack.c.h.bf16 %v141_v8 }
   0x7   :  { %158 = vmatprep.subr.bf16.mxu0 %v173_v0 }
   0xa   :  { %159 = vmatpush3.bf16.msra.mxu0 %v170_v3 }
   0xb   :  { %160 = vmatprep.subr.bf16.mxu0 %v173_v0 }
   0xe   :  { %161 = vmatpush3.bf16.msra.mxu0 %v171_v4 }
  0x11   :  { %163 = vmatmul.mubr.msk.bf16.vlgmr.msra.gmra.mxu0 %vm64_vm1, %v172_v5 }
  0xd1   :  { %v102_v7 = vpop.f32.mrf.mxu0 }
  0xd2   :  { %v103_v10 = vadd.f32 %v129_v6, %v102_v7 }
  0xd3   :  { %v164_v9 = vpop.f32.mrf.mxu0 }
  0xd4   :  { %v113_v16 = vadd.f32 %v142_v11, %v103_v10 }
  0xd5   :  { %v105_v13 = vpop.f32.mrf.mxu0 }
  0xd6   :  { %v106_v14 = vadd.f32 %v129_v6, %v105_v13 }
  0xd7   :  { %v165_v15 = vpop.f32.mrf.mxu0 }
  0xd8   :  { %v114_v17 = vadd.f32 %v143_v12, %v106_v14 }
  0xda   :  { %v147_v18 = vpack.c.bf16 %v114_v17, %v113_v16 }
  0xdc   :  { %148 = vst [vmem:[%s228_s4] sm:$0xff] %v147_v18  }

// kernel: forward.18
= control target key start
LH: loop header
LB: loop body
LE: loop exit
PB: predicated region body
PF: predicated region fallthrough
CT: control target
= control target key end

     0   :  { %vm25_vm0 = vcmask 523264   ;;  %v219_v15 = vmov 0.0   ;;  %vm220_vm1 = vmmov 0   ;;  %s283_s0 = inlined_call_operand.vmem [shape: bf16[16,64], index: 0, kind: input, shape index: {}]   ;;  %s284_s1 = inlined_call_operand.vmem [shape: bf16[64,128], index: 1, kind: input, shape index: {}]   ;;  %s285_s3 = inlined_call_operand.vmem [shape: f32[1,64], index: 3, kind: input, shape index: {}]   ;;  %s286_s4 = inlined_call_operand.vmem [shape: f32[1,64], index: 4, kind: input, shape index: {}]   ;;  %s287_s2 = inlined_call_operand.vmem [shape: f32[1,128], index: 2, kind: input, shape index: {}]   ;;  %s288_s5 = inlined_call_operand.vmem [shape: bf16[16,128], index: 5, kind: output, shape index: {}]  }
   0x1   :  { %v184_v0 = vld [vmem:[%s283_s0] sm:$0xff]   ;;  %197 = vmatprep.subr.bf16.mxu0 %v219_v15  ;;  %v211_v16 = vld [vmem:[%s284_s1 + $0x18] sm:$0xff]   ;;  %205 = vmatprep.mubr.msk.bf16.mxu0 %vm220_vm1, %v219_v15  ;;  %v212_v17 = vld [vmem:[%s284_s1 + $0x10] sm:$0xff]  }
   0x2   :  { %v185_v1 = vunpack.c.l.bf16 %v184_v0  ;;  %v186_v2 = vunpack.c.h.bf16 %v184_v0  ;;  %198 = vmatpush3.bf16.msra.mxu0 %v211_v16  ;;  %v213_v18 = vld [vmem:[%s284_s1 + $0x8] sm:$0xff]   ;;  %v214_v19 = vld [vmem:[%s284_s1] sm:$0xff]  }
   0x3   :  { %199 = vmatprep.subr.bf16.mxu0 %v219_v15  ;;  %v171_v28 = vld [vmem:[%s285_s3] ss:$0 sm:$0xff] }
   0x4   :  { %v26_v3 = vsel %vm25_vm0, %v185_v1, 0.0  ;;  %v29_v4 = vsel %vm25_vm0, %v186_v2, 0.0  ;;  %v172_v32 = vld [vmem:[%s286_s4] ss:$0 sm:$0xff] }
   0x5   :  { %27 = vadd.xlane.f32.xlu0 %v26_v3  ;;  %v173_v37 = vld [vmem:[%s287_s2] ss:$0 sm:$0xff] }
   0x6   :  { %200 = vmatpush3.bf16.msra.mxu0 %v212_v17 }
   0x7   :  { %201 = vmatprep.subr.bf16.mxu0 %v219_v15 }
   0x9   :  { %30 = vadd.xlane.f32.xlu0 %v29_v4 }
   0xa   :  { %202 = vmatpush3.bf16.msra.mxu0 %v213_v18 }
   0xb   :  { %203 = vmatprep.subr.bf16.mxu0 %v219_v15 }
   0xe   :  { %204 = vmatpush3.bf16.msra.mxu0 %v214_v19 }
  0x8e   :  { %v28_v5 = vpop.xlane.xlu0 %27 }
  0x8f   :  { %v33_v6 = vmul.f32 0.015625, %v28_v5 }
  0x91   :  { %v35_v7 = vsub.f32 %v185_v1, %v33_v6 }
  0x92   :  { %v31_v8 = vpop.xlane.xlu0 %30 }
  0x93   :  { %v34_v9 = vmul.f32 0.015625, %v31_v8  ;;  %v37_v10 = vmul.f32 %v35_v7, %v35_v7 }
  0x95   :  { %v36_v11 = vsub.f32 %v186_v2, %v34_v9  ;;  %v39_v12 = vsel %vm25_vm0, %v37_v10, 0.0 }
  0x96   :  { %40 = vadd.xlane.f32.xlu1 %v39_v12 }
  0x97   :  { %v38_v13 = vmul.f32 %v36_v11, %v36_v11 }
  0x99   :  { %v42_v14 = vsel %vm25_vm0, %v38_v13, 0.0 }
  0x9a   :  { %43 = vadd.xlane.f32.xlu1 %v42_v14 }
 0x11f   :  { %v41_v20 = vpop.xlane.xlu1 %40 }
 0x120   :  { %v45_v21 = vmul.f32 0.015625, %v41_v20 }
 0x122   :  { %v47_v22 = vadd.f32 1e-05, %v45_v21 }
 0x123   :  { %v44_v23 = vpop.xlane.xlu1 %43 }
 0x124   :  { %215 = vrsqrt.f32 %v47_v22  ;;  %v46_v24 = vmul.f32 0.015625, %v44_v23 }
 0x126   :  { %v48_v25 = vadd.f32 1e-05, %v46_v24 }
 0x128   :  { %217 = vrsqrt.f32 %v48_v25 }
 0x131   :  { %v216_v26 = vpop.eup %215 }
 0x132   :  { %v51_v27 = vmul.f32 %v216_v26, %v35_v7 }
 0x134   :  { %v60_v31 = vmul.f32 %v171_v28, %v51_v27 }
 0x135   :  { %v218_v29 = vpop.eup %217 }
 0x136   :  { %v52_v30 = vmul.f32 %v218_v29, %v36_v11  ;;  %v69_v34 = vadd.f32 %v172_v32, %v60_v31 }
 0x138   :  { %v61_v33 = vmul.f32 %v171_v28, %v52_v30 }
 0x13a   :  { %v70_v35 = vadd.f32 %v172_v32, %v61_v33 }
 0x13c   :  { %v71_v36 = vpack.c.bf16 %v70_v35, %v69_v34 }
 0x13e   :  { %206 = vmatmul.mubr.msk.bf16.vlgmr.msra.gmra.mxu0 %vm25_vm0, %v71_v36 }
 0x1fe   :  { %v148_v38 = vpop.f32.mrf.mxu0 }
 0x1ff   :  { %v149_v40 = vadd.f32 %v173_v37, %v148_v38 }
 0x200   :  { %v207_v39 = vpop.f32.mrf.mxu0 }
 0x201   :  { %v155_v44 = vmax.f32 %v149_v40, 0.0 }
 0x202   :  { %v151_v41 = vpop.f32.mrf.mxu0 }
 0x203   :  { %v152_v42 = vadd.f32 %v173_v37, %v151_v41 }
 0x204   :  { %v208_v43 = vpop.f32.mrf.mxu0 }
 0x205   :  { %v156_v45 = vmax.f32 %v152_v42, 0.0 }
 0x207   :  { %v190_v46 = vpack.c.bf16 %v156_v45, %v155_v44 }
 0x209   :  { %191 = vst [vmem:[%s288_s5] sm:$0xff] %v190_v46  }

// kernel: forward.19
= control target key start
LH: loop header
LB: loop body
LE: loop exit
PB: predicated region body
PF: predicated region fallthrough
CT: control target
= control target key end

     0   :  { %v221_v0 = vmov 0.0   ;;  %vm222_vm0 = vmmov 0   ;;  %s284_s1 = inlined_call_operand.vmem [shape: bf16[128,128], index: 1, kind: input, shape index: {}]   ;;  %s285_s0 = inlined_call_operand.vmem [shape: bf16[16,128], index: 0, kind: input, shape index: {}]   ;;  %s286_s2 = inlined_call_operand.vmem [shape: f32[1,128], index: 2, kind: input, shape index: {}]   ;;  %s287_s3 = inlined_call_operand.vmem [shape: bf16[16,128], index: 3, kind: input, shape index: {}]   ;;  %s288_s4 = inlined_call_operand.vmem [shape: bf16[16,128], index: 4, kind: output, shape index: {}]  }
   0x1   :  { %190 = vmatprep.subr.bf16.mxu0 %v221_v0  ;;  %v212_v1 = vld [vmem:[%s284_s1 + $0x38] sm:$0xff]   ;;  %206 = vmatprep.mubr.msk.bf16.mxu0 %vm222_vm0, %v221_v0  ;;  %v213_v2 = vld [vmem:[%s284_s1 + $0x30] sm:$0xff]   ;;  %v214_v3 = vld [vmem:[%s284_s1 + $0x28] sm:$0xff]  }
   0x2   :  { %191 = vmatpush3.bf16.msra.mxu0 %v212_v1  ;;  %v215_v4 = vld [vmem:[%s284_s1 + $0x20] sm:$0xff]   ;;  %v216_v5 = vld [vmem:[%s284_s1 + $0x18] sm:$0xff]   ;;  %v217_v6 = vld [vmem:[%s284_s1 + $0x10] sm:$0xff]  }
   0x3   :  { %192 = vmatprep.subr.bf16.mxu0 %v221_v0  ;;  %v218_v7 = vld [vmem:[%s284_s1 + $0x8] sm:$0xff]   ;;  %v219_v8 = vld [vmem:[%s284_s1] sm:$0xff]  }
   0x4   :  { %v220_v9 = vld [vmem:[%s285_s0] sm:$0xff]  }
   0x5   :  { %v158_v10 = vld [vmem:[%s286_s2] ss:$0 sm:$0xff] }
   0x6   :  { %193 = vmatpush3.bf16.msra.mxu0 %v213_v2  ;;  %v173_v12 = vld [vmem:[%s287_s3] sm:$0xff]  }
   0x7   :  { %194 = vmatprep.subr.bf16.mxu0 %v221_v0  ;;  %v174_v15 = vunpack.c.l.bf16 %v173_v12  ;;  %v175_v16 = vunpack.c.h.bf16 %v173_v12 }
   0xa   :  { %195 = vmatpush3.bf16.msra.mxu0 %v214_v3 }
   0xb   :  { %196 = vmatprep.subr.bf16.mxu0 %v221_v0 }
   0xe   :  { %197 = vmatpush3.bf16.msra.mxu0 %v215_v4 }
   0xf   :  { %198 = vmatprep.subr.bf16.mxu0 %v221_v0 }
  0x12   :  { %199 = vmatpush3.bf16.msra.mxu0 %v216_v5 }
  0x13   :  { %200 = vmatprep.subr.bf16.mxu0 %v221_v0 }
  0x16   :  { %201 = vmatpush3.bf16.msra.mxu0 %v217_v6 }
  0x17   :  { %202 = vmatprep.subr.bf16.mxu0 %v221_v0 }
  0x1a   :  { %203 = vmatpush3.bf16.msra.mxu0 %v218_v7 }
  0x1b   :  { %204 = vmatprep.subr.bf16.mxu0 %v221_v0 }
  0x1e   :  { %205 = vmatpush3.bf16.msra.mxu0 %v219_v8 }
  0x21   :  { %207 = vmatmul.mubr.bf16.vlgmr.msra.gmra.mxu0 %v220_v9 }
  0xe1   :  { %v131_v11 = vpop.f32.mrf.mxu0 }
  0xe2   :  { %v132_v14 = vadd.f32 %v158_v10, %v131_v11 }
  0xe3   :  { %v208_v13 = vpop.f32.mrf.mxu0 }
  0xe4   :  { %v142_v20 = vadd.f32 %v174_v15, %v132_v14 }
  0xe5   :  { %v134_v17 = vpop.f32.mrf.mxu0 }
  0xe6   :  { %v135_v18 = vadd.f32 %v158_v10, %v134_v17 }
  0xe7   :  { %v209_v19 = vpop.f32.mrf.mxu0 }
  0xe8   :  { %v143_v21 = vadd.f32 %v175_v16, %v135_v18 }
  0xea   :  { %v179_v22 = vpack.c.bf16 %v143_v21, %v142_v20 }
  0xec   :  { %180 = vst [vmem:[%s288_s4] sm:$0xff] %v179_v22  }

// kernel: custom-call.4
= control target key start
LH: loop header
LB: loop body
LE: loop exit
PB: predicated region body
PF: predicated region fallthrough
CT: control target
= control target key end

     0   :  { %s6_s0 = inlined_call_operand.vmem [shape: s32[7,2,8], index: 0, kind: output, shape index: {}]  }

// kernel: forward.21
= control target key start
LH: loop header
LB: loop body
LE: loop exit
PB: predicated region body
PF: predicated region fallthrough
CT: control target
= control target key end

     0   :  { %v117_v0 = vmov 0.0   ;;  %vm118_vm0 = vmmov 0   ;;  %vm45_vm1 = vcmask 261120   ;;  %s157_s1 = inlined_call_operand.vmem [shape: bf16[32,128], index: 1, kind: input, shape index: {}]   ;;  %s158_s0 = inlined_call_operand.vmem [shape: bf16[16,32], index: 0, kind: input, shape index: {}]   ;;  %s159_s2 = inlined_call_operand.vmem [shape: f32[1,128], index: 2, kind: input, shape index: {}]   ;;  %s160_s3 = inlined_call_operand.vmem [shape: f32[16,128], index: 3, kind: output, shape index: {}]  }
   0x1   :  { %104 = vmatprep.subr.bf16.mxu0 %v117_v0  ;;  %v114_v1 = vld [vmem:[%s157_s1 + $0x8] sm:$0xff]   ;;  %108 = vmatprep.mubr.msk.bf16.mxu0 %vm118_vm0, %v117_v0  ;;  %v115_v2 = vld [vmem:[%s157_s1] sm:$0xff]  }
   0x2   :  { %105 = vmatpush3.bf16.msra.mxu0 %v114_v1  ;;  %v116_v3 = vld [vmem:[%s158_s0] sm:$0xff]  }
   0x3   :  { %106 = vmatprep.subr.bf16.mxu0 %v117_v0  ;;  %v96_v4 = vld [vmem:[%s159_s2] ss:$0 sm:$0xff] }
   0x6   :  { %107 = vmatpush3.bf16.msra.mxu0 %v115_v2 }
   0x9   :  { %109 = vmatmul.mubr.msk.bf16.vlgmr.msra.gmra.mxu0 %vm45_vm1, %v116_v3 }
  0xc9   :  { %v83_v5 = vpop.f32.mrf.mxu0 }
  0xca   :  { %v84_v6 = vadd.f32 %v96_v4, %v83_v5 }
  0xcb   :  { %v110_v7 = vpop.f32.mrf.mxu0 }
  0xcc   :  { %90 = vst [vmem:[%s160_s3] sm:$0xff] %v84_v6 }
  0xcd   :  { %v86_v8 = vpop.f32.mrf.mxu0 }
  0xce   :  { %v87_v9 = vadd.f32 %v96_v4, %v86_v8 }
  0xcf   :  { %v111_v10 = vpop.f32.mrf.mxu0 }
  0xd0   :  { %91 = vst [vmem:[%s160_s3 + $0x8] sm:$0xff] %v87_v9 }

</bundles_post_ra>
